<compile_context>
chip_gen: v6e
topology: v6e:2x2x1
jax: 0.10.0
libtpu: 0.0.40
codegen_flags: <defaults>
</compile_context>

<pallas_src>
import jax
import jax.numpy as jnp
from jax import lax
from jax.experimental import pallas as pl
from jax.experimental.pallas import tpu as pltpu

EPS = 1e-5


# ---------------------------------------------------------------------------
# In-kernel building blocks (lane-dense layout: lane index = w*C + c)
# ---------------------------------------------------------------------------
def _silu(x):
    return x * jax.nn.sigmoid(x)


def _group_norm(x3, gamma_row, beta_row, proj):
    """GroupNorm over a (Nb, H, L) slab (L = W*C).

    proj: (L, L) with proj[i, j] = 1/(H*W*Cg) when lanes i, j hold channels of the
    same group; one (Nb, L) @ (L, L) matmul turns per-image column sums into group
    means broadcast back onto every lane.  Variance is two-pass (mean subtracted
    before squaring) to avoid cancellation.
    """
    s = jnp.sum(x3, axis=1)                                            # (Nb, L)
    mean = jnp.dot(s, proj, preferred_element_type=jnp.float32)        # (Nb, L)
    d = x3 - mean[:, None, :]
    var = jnp.dot(jnp.sum(d * d, axis=1), proj,
                  preferred_element_type=jnp.float32)                  # (Nb, L)
    inv = lax.rsqrt(var + EPS)
    return d * inv[:, None, :] * gamma_row + beta_row


def _make_kernel(Nb, H, Lin, Lout, has_res):
    M = Nb * H

    def kernel(x_ref, rows_ref, p1_ref, a1_ref, p2_ref, a2_ref, *rest):
        if has_res:
            rw_ref, o_ref = rest
        else:
            (o_ref,) = rest

        # Packed per-lane row vectors (one DMA): see wrapper for row layout.
        g1, b1 = rows_ref[0:1, :Lin], rows_ref[1:2, :Lin]
        cb1 = rows_ref[2:3, :Lout]
        g2, b2 = rows_ref[3:4, :Lout], rows_ref[4:5, :Lout]
        cb2 = rows_ref[5:6, :Lout]
        rb = rows_ref[6:7, :Lout]

        # Per-slab-row masks: slab row m belongs to image m//H at height m%H, so
        # vertical taps that would cross an image boundary are zeroed (this is
        # exactly the conv's zero padding at the top/bottom rows of each image).
        row = lax.broadcasted_iota(jnp.int32, (M, 1), 0)
        h_in_img = row % H
        has_above = h_in_img != 0
        has_below = h_in_img != (H - 1)

        def conv3x3(h2, a_ref, bias_row):
            # h2: (M, K) f32 activations; a_ref: (3, K, Lout) bf16 banded tap
            # matrices that already encode the horizontal zero padding.
            up = jnp.where(has_above, pltpu.roll(h2, shift=1, axis=0), 0.0)
            dn = jnp.where(has_below, pltpu.roll(h2, shift=M - 1, axis=0), 0.0)
            acc = jnp.dot(up.astype(jnp.bfloat16), a_ref[0],
                          preferred_element_type=jnp.float32)
            acc += jnp.dot(h2.astype(jnp.bfloat16), a_ref[1],
                           preferred_element_type=jnp.float32)
            acc += jnp.dot(dn.astype(jnp.bfloat16), a_ref[2],
                           preferred_element_type=jnp.float32)
            return acc + bias_row

        x3 = x_ref[...]                                          # (Nb, H, Lin) f32

        h = _silu(_group_norm(x3, g1, b1, p1_ref[...]))
        h = conv3x3(h.reshape(M, Lin), a1_ref, cb1)              # (M, Lout)

        h = _silu(_group_norm(h.reshape(Nb, H, Lout), g2, b2, p2_ref[...]))
        h = conv3x3(h.reshape(M, Lout), a2_ref, cb2)             # (M, Lout)

        x2 = x3.reshape(M, Lin)
        if has_res:
            res = jnp.dot(x2.astype(jnp.bfloat16), rw_ref[...],
                          preferred_element_type=jnp.float32) + rb
        else:
            res = x2                                  # identity (Lin == Lout)
        o_ref[...] = (h + res).reshape(Nb, H, Lout).astype(o_ref.dtype)

    return kernel


# ---------------------------------------------------------------------------
# Host-side weight / matrix preparation (plain XLA, outside the kernel)
# ---------------------------------------------------------------------------
def _gn_projection(C, G, H, W):
    assert C % G == 0, f"GroupNorm requires C % num_groups == 0 (C={C}, G={G})"
    Cg = C // G
    gid = jnp.arange(C) // Cg
    same = (gid[:, None] == gid[None, :]).astype(jnp.float32)           # (C, C)
    return jnp.kron(jnp.ones((W, W), jnp.float32), same) / float(H * W * Cg)


def _banded_conv_weights(w9, W):
    """(9, Cin, Cout) HWIO-flattened 3x3 kernel -> (3, W*Cin, W*Cout) tap matrices."""
    KHW, Cin, Cout = w9.shape
    assert KHW == 9
    w = w9.reshape(3, 3, Cin, Cout).astype(jnp.float32)
    wpos = jnp.arange(W)
    mats = []
    for dy in range(3):
        a = jnp.zeros((W * Cin, W * Cout), jnp.float32)
        for dx in range(3):
            # output column w_out reads input column w_in = w_out + dx - 1
            sel = (wpos[:, None] == (wpos[None, :] + dx - 1)).astype(jnp.float32)
            a = a + jnp.kron(sel, w[dy, dx])
        mats.append(a)
    return jnp.stack(mats, axis=0)


def _blockdiag_1x1(w, W):
    """(Cin, Cout) 1x1-conv weight -> (W*Cin, W*Cout) block-diagonal matrix."""
    return jnp.kron(jnp.eye(W, dtype=jnp.float32), w.astype(jnp.float32))


# ---------------------------------------------------------------------------
# Wrapper
# ---------------------------------------------------------------------------
def resnet_forward(x_nchw, params, num_groups, block_n=8):
    N, Cin, H, W = x_nchw.shape
    Cout = params["conv1_w"].shape[-1]
    Lin, Lout = W * Cin, W * Cout
    Lmax = max(Lin, Lout)
    has_res = params.get("res_w") is not None
    if not has_res:
        assert Cin == Cout, "identity residual requires in_channels == out_channels"

    # Nb images per grid step; Nb*H is the MXU M dimension (raise block_n for big N
    # so Nb*H >= 256 on v6e/v7x while keeping >= 2 steps per TensorCore).
    Nb = max(1, min(block_n, N))
    n_steps = pl.cdiv(N, Nb)
    Npad = n_steps * Nb

    # NCHW -> lane-dense (N, H, W*C) slabs (channels innermost on the lane axis).
    x = jnp.transpose(x_nchw, (0, 2, 3, 1)).reshape(N, H, Lin).astype(jnp.float32)
    if Npad != N:
        x = jnp.concatenate([x, jnp.zeros((Npad - N, H, Lin), jnp.float32)], axis=0)

    def _row(v):
        r = jnp.tile(v.astype(jnp.float32), W)            # lane index = w*C + c
        return jnp.pad(r, (0, Lmax - r.shape[0]))

    rows = jnp.stack([
        _row(params["gn1_w"]), _row(params["gn1_b"]),
        _row(params["conv1_b"]),
        _row(params["gn2_w"]), _row(params["gn2_b"]),
        _row(params["conv2_b"]),
        _row(params["res_b"]) if has_res else jnp.zeros((Lmax,), jnp.float32),
        jnp.zeros((Lmax,), jnp.float32),
    ])                                                     # (8, Lmax): 1 DMA not 7

    p1 = _gn_projection(Cin, num_groups, H, W)             # GN stats stay f32
    p2 = _gn_projection(Cout, num_groups, H, W)
    a1 = _banded_conv_weights(params["conv1_w"], W).astype(jnp.bfloat16)
    a2 = _banded_conv_weights(params["conv2_w"], W).astype(jnp.bfloat16)

    inputs = [x, rows, p1, a1, p2, a2]
    in_specs = [
        pl.BlockSpec((Nb, H, Lin), lambda n: (n, 0, 0)),
        pl.BlockSpec(rows.shape, lambda n: (0, 0)),
        pl.BlockSpec(p1.shape, lambda n: (0, 0)),
        pl.BlockSpec(a1.shape, lambda n: (0, 0, 0)),
        pl.BlockSpec(p2.shape, lambda n: (0, 0)),
        pl.BlockSpec(a2.shape, lambda n: (0, 0, 0)),
    ]
    if has_res:
        rw = _blockdiag_1x1(params["res_w"], W).astype(jnp.bfloat16)
        inputs.append(rw)
        in_specs.append(pl.BlockSpec(rw.shape, lambda n: (0, 0)))

    # Advisory cost estimate for XLA scheduling around the custom call.
    M = Nb * H
    flops = int(n_steps * (2 * M * (3 * Lin * Lout + 3 * Lout * Lout)
                           + (2 * M * Lin * Lout if has_res else 0)
                           + 4 * Nb * (Lin * Lin + Lout * Lout)))
    transcendentals = int(n_steps * M * (Lin + Lout))
    bytes_accessed = int(4 * (x.size + Npad * H * Lout)
                         + sum(int(a.size) * a.dtype.itemsize for a in inputs[1:]))

    out = pl.pallas_call(
        _make_kernel(Nb, H, Lin, Lout, has_res),
        out_shape=jax.ShapeDtypeStruct((Npad, H, Lout), jnp.float32),
        grid_spec=pltpu.PrefetchScalarGridSpec(
            num_scalar_prefetch=0,
            grid=(n_steps,),
            in_specs=in_specs,
            out_specs=pl.BlockSpec((Nb, H, Lout), lambda n: (n, 0, 0)),
        ),
        compiler_params=pltpu.CompilerParams(
            dimension_semantics=("parallel",),
            vmem_limit_bytes=32 * 1024 * 1024,
        ),
        cost_estimate=pl.CostEstimate(flops=flops,
                                      transcendentals=transcendentals,
                                      bytes_accessed=bytes_accessed),
    )(*inputs)

    # Lane-dense (N, H, W*Cout) -> NCHW in the wrapper (layout plumbing only).
    out = out[:N].reshape(N, H, W, Cout)
    return jnp.transpose(out, (0, 3, 1, 2))


# ---------------------------------------------------------------------------
# Plain-JAX reference (mirrors the PyTorch module).  With matmul_dtype=bfloat16 it
# also mirrors the kernel's bf16 MXU operands (f32 accumulation) for a tight check.
# ---------------------------------------------------------------------------
def resnet_reference(x_nchw, params, num_groups, matmul_dtype=jnp.float32):
    def gn(x, g, b, G):
        N, C, H, W = x.shape
        xg = x.reshape(N, G, C // G, H, W)
        m = xg.mean(axis=(2, 3, 4), keepdims=True)
        v = ((xg - m) ** 2).mean(axis=(2, 3, 4), keepdims=True)
        xn = ((xg - m) / jnp.sqrt(v + EPS)).reshape(N, C, H, W)
        return xn * g[None, :, None, None] + b[None, :, None, None]

    def conv(x, w_hwio, b, pad):
        w = jnp.transpose(w_hwio, (3, 2, 0, 1)).astype(matmul_dtype)    # OIHW
        y = lax.conv_general_dilated(
            x.astype(matmul_dtype), w, (1, 1), [(pad, pad), (pad, pad)],
            dimension_numbers=("NCHW", "OIHW", "NCHW"),
            preferred_element_type=jnp.float32)
        return y + b[None, :, None, None]

    Cin = x_nchw.shape[1]
    Cout = params["conv1_w"].shape[-1]
    c1w = params["conv1_w"].reshape(3, 3, Cin, Cout)
    c2w = params["conv2_w"].reshape(3, 3, Cout, Cout)

    h = gn(x_nchw, params["gn1_w"], params["gn1_b"], num_groups)
    h = h * jax.nn.sigmoid(h)
    h = conv(h, c1w, params["conv1_b"], 1)
    h = gn(h, params["gn2_w"], params["gn2_b"], num_groups)
    h = h * jax.nn.sigmoid(h)
    h = conv(h, c2w, params["conv2_b"], 1)
    if params.get("res_w") is not None:
        rw = params["res_w"][None, None, :, :]                 # (1, 1, Cin, Cout)
        r = conv(x_nchw, rw, params["res_b"], 0)
    else:
        r = x_nchw
    return h + r


# ---------------------------------------------------------------------------
if __name__ == "__main__":
    # Module config: in_channels=4, out_channels=8 -> num_groups=4, 1x1-conv residual.
    Cin, Cout, num_groups = 4, 8, 4
    N, H, W = 16, 16, 16            # batch folded into the matmul M axis (Nb=8 -> M=128)

    key = jax.random.PRNGKey(0)
    ks = jax.random.split(key, 11)
    params = {
        "gn1_w": 1.0 + 0.1 * jax.random.normal(ks[0], (Cin,), jnp.float32),
        "gn1_b": 0.1 * jax.random.normal(ks[1], (Cin,), jnp.float32),
        "conv1_w": 0.1 * jax.random.normal(ks[2], (9, Cin, Cout), jnp.float32),
        "conv1_b": 0.1 * jax.random.normal(ks[3], (Cout,), jnp.float32),
        "gn2_w": 1.0 + 0.1 * jax.random.normal(ks[4], (Cout,), jnp.float32),
        "gn2_b": 0.1 * jax.random.normal(ks[5], (Cout,), jnp.float32),
        "conv2_w": 0.1 * jax.random.normal(ks[6], (9, Cout, Cout), jnp.float32),
        "conv2_b": 0.1 * jax.random.normal(ks[7], (Cout,), jnp.float32),
        "res_w": 0.1 * jax.random.normal(ks[8], (Cin, Cout), jnp.float32),
        "res_b": 0.1 * jax.random.normal(ks[9], (Cout,), jnp.float32),
    }
    x = jax.random.normal(ks[10], (N, Cin, H, W), jnp.float32)     # NCHW like PyTorch

    out = jax.block_until_ready(resnet_forward(x, params, num_groups, block_n=8))

    # Compare against a reference that also uses bf16 matmul operands (f32 accumulate);
    # the bf16 rounding itself costs ~1e-3-level deviations, hence the 2e-2 tolerance.
    ref = jax.block_until_ready(
        resnet_reference(x, params, num_groups, matmul_dtype=jnp.bfloat16))

    assert out.shape == (N, Cout, H, W), out.shape
    err = float(jnp.max(jnp.abs(out - ref)))
    assert jnp.allclose(out, ref, atol=2e-2, rtol=2e-2), err

    print("KERNEL_OK")
</pallas_src>

<mosaic_0001>
module attributes {stable_mosaic.version = 11 : i64} {
  func.func @kernel(%arg0: i32, %arg1: memref<8x16x64xf32, #tpu.memory_space<vmem>>, %arg2: memref<8x128xf32, #tpu.memory_space<vmem>>, %arg3: memref<64x64xf32, #tpu.memory_space<vmem>>, %arg4: memref<3x64x128xbf16, #tpu.memory_space<vmem>>, %arg5: memref<128x128xf32, #tpu.memory_space<vmem>>, %arg6: memref<3x128x128xbf16, #tpu.memory_space<vmem>>, %arg7: memref<64x128xbf16, #tpu.memory_space<vmem>>, %arg8: memref<8x16x128xf32, #tpu.memory_space<vmem>>) attributes {dimension_semantics = [#tpu.dimension_semantics<parallel>], iteration_bounds = array<i64: 2>, scalar_prefetch = 0 : i64, scratch_operands = 0 : i64, tpu.core_type = #tpu.core_type<tc>, window_params = [{transform_indices = @transform_0, window_bounds = array<i64: 8, 16, 64>}, {pipeline_mode = #tpu.pipeline_mode<synchronous>, transform_indices = @transform_1, window_bounds = array<i64: 8, 128>}, {pipeline_mode = #tpu.pipeline_mode<synchronous>, transform_indices = @transform_2, window_bounds = array<i64: 64, 64>}, {pipeline_mode = #tpu.pipeline_mode<synchronous>, transform_indices = @transform_3, window_bounds = array<i64: 3, 64, 128>}, {pipeline_mode = #tpu.pipeline_mode<synchronous>, transform_indices = @transform_4, window_bounds = array<i64: 128, 128>}, {pipeline_mode = #tpu.pipeline_mode<synchronous>, transform_indices = @transform_5, window_bounds = array<i64: 3, 128, 128>}, {pipeline_mode = #tpu.pipeline_mode<synchronous>, transform_indices = @transform_6, window_bounds = array<i64: 64, 128>}, {transform_indices = @transform_7, window_bounds = array<i64: 8, 16, 128>}]} {
    %c0 = arith.constant 0 : index
    %c0_0 = arith.constant 0 : index
    %0 = vector.load %arg2[%c0, %c0_0] : memref<8x128xf32, #tpu.memory_space<vmem>>, vector<1x64xf32>
    %c1 = arith.constant 1 : index
    %c0_1 = arith.constant 0 : index
    %1 = vector.load %arg2[%c1, %c0_1] : memref<8x128xf32, #tpu.memory_space<vmem>>, vector<1x64xf32>
    %c2 = arith.constant 2 : index
    %c0_2 = arith.constant 0 : index
    %2 = vector.load %arg2[%c2, %c0_2] : memref<8x128xf32, #tpu.memory_space<vmem>>, vector<1x128xf32>
    %c3 = arith.constant 3 : index
    %c0_3 = arith.constant 0 : index
    %3 = vector.load %arg2[%c3, %c0_3] : memref<8x128xf32, #tpu.memory_space<vmem>>, vector<1x128xf32>
    %c4 = arith.constant 4 : index
    %c0_4 = arith.constant 0 : index
    %4 = vector.load %arg2[%c4, %c0_4] : memref<8x128xf32, #tpu.memory_space<vmem>>, vector<1x128xf32>
    %c5 = arith.constant 5 : index
    %c0_5 = arith.constant 0 : index
    %5 = vector.load %arg2[%c5, %c0_5] : memref<8x128xf32, #tpu.memory_space<vmem>>, vector<1x128xf32>
    %c6 = arith.constant 6 : index
    %c0_6 = arith.constant 0 : index
    %6 = vector.load %arg2[%c6, %c0_6] : memref<8x128xf32, #tpu.memory_space<vmem>>, vector<1x128xf32>
    %7 = tpu.iota {dimensions = array<i32: 0>} : vector<128x1xi32>
    %c16_i32 = arith.constant 16 : i32
    %c0_i32 = arith.constant 0 : i32
    %8 = arith.cmpi eq, %c16_i32, %c0_i32 : i32
    %c1_i32 = arith.constant 1 : i32
    %9 = arith.select %8, %c1_i32, %c16_i32 : i32
    %10 = vector.broadcast %9 : i32 to vector<128x1xi32>
    %11 = arith.remsi %7, %10 : vector<128x1xi32>
    %c0_i32_7 = arith.constant 0 : i32
    %12 = vector.broadcast %c0_i32_7 : i32 to vector<128x1xi32>
    %13 = arith.cmpi ne, %11, %12 : vector<128x1xi32>
    %c0_i32_8 = arith.constant 0 : i32
    %14 = vector.broadcast %c0_i32_8 : i32 to vector<128x1xi32>
    %15 = arith.cmpi slt, %11, %14 : vector<128x1xi32>
    %c0_i32_9 = arith.constant 0 : i32
    %16 = arith.cmpi slt, %9, %c0_i32_9 : i32
    %17 = vector.broadcast %16 : i1 to vector<128x1xi1>
    %18 = vector.broadcast %17 : vector<128x1xi1> to vector<128x1xi1>
    %19 = arith.xori %15, %18 : vector<128x1xi1>
    %20 = arith.andi %19, %13 : vector<128x1xi1>
    %21 = vector.broadcast %9 : i32 to vector<128x1xi32>
    %22 = arith.addi %11, %21 : vector<128x1xi32>
    %23 = arith.select %20, %22, %11 : vector<128x1xi1>, vector<128x1xi32>
    %c0_i32_10 = arith.constant 0 : i32
    %24 = vector.broadcast %c0_i32_10 : i32 to vector<128x1xi32>
    %25 = arith.cmpi ne, %23, %24 : vector<128x1xi32>
    %c15_i32 = arith.constant 15 : i32
    %26 = vector.broadcast %c15_i32 : i32 to vector<128x1xi32>
    %27 = arith.cmpi ne, %23, %26 : vector<128x1xi32>
    %c0_11 = arith.constant 0 : index
    %c0_12 = arith.constant 0 : index
    %c0_13 = arith.constant 0 : index
    %28 = vector.load %arg1[%c0_11, %c0_12, %c0_13] : memref<8x16x64xf32, #tpu.memory_space<vmem>>, vector<8x16x64xf32>
    %c0_14 = arith.constant 0 : index
    %c0_15 = arith.constant 0 : index
    %29 = vector.load %arg3[%c0_14, %c0_15] : memref<64x64xf32, #tpu.memory_space<vmem>>, vector<64x64xf32>
    %cst = arith.constant dense<0.000000e+00> : vector<8x64xf32>
    %30 = vector.multi_reduction <add>, %28, %cst [1] : vector<8x16x64xf32> to vector<8x64xf32>
    %cst_16 = arith.constant dense<0.000000e+00> : vector<8x64xf32>
    %31 = tpu.matmul %30, %29, %cst_16 {dimension_numbers = #tpu.dot_dimension_numbers<[1], [0], [0], [1], [0, 0, 1, 1], [], []>} : vector<8x64xf32>, vector<64x64xf32>, vector<8x64xf32> -> vector<8x64xf32>
    %32 = vector.shape_cast %31 : vector<8x64xf32> to vector<8x1x64xf32>
    %33 = vector.broadcast %32 : vector<8x1x64xf32> to vector<8x16x64xf32>
    %34 = arith.subf %28, %33 : vector<8x16x64xf32>
    %35 = arith.mulf %34, %34 : vector<8x16x64xf32>
    %cst_17 = arith.constant dense<0.000000e+00> : vector<8x64xf32>
    %36 = vector.multi_reduction <add>, %35, %cst_17 [1] : vector<8x16x64xf32> to vector<8x64xf32>
    %cst_18 = arith.constant dense<0.000000e+00> : vector<8x64xf32>
    %37 = tpu.matmul %36, %29, %cst_18 {dimension_numbers = #tpu.dot_dimension_numbers<[1], [0], [0], [1], [0, 0, 1, 1], [], []>} : vector<8x64xf32>, vector<64x64xf32>, vector<8x64xf32> -> vector<8x64xf32>
    %cst_19 = arith.constant 9.99999974E-6 : f32
    %38 = vector.broadcast %cst_19 : f32 to vector<8x64xf32>
    %39 = arith.addf %37, %38 : vector<8x64xf32>
    %40 = math.rsqrt %39 : vector<8x64xf32>
    %41 = vector.shape_cast %40 : vector<8x64xf32> to vector<8x1x64xf32>
    %42 = vector.broadcast %41 : vector<8x1x64xf32> to vector<8x16x64xf32>
    %43 = arith.mulf %34, %42 : vector<8x16x64xf32>
    %44 = vector.shape_cast %0 : vector<1x64xf32> to vector<1x1x64xf32>
    %45 = vector.broadcast %44 : vector<1x1x64xf32> to vector<8x16x64xf32>
    %46 = arith.mulf %43, %45 : vector<8x16x64xf32>
    %47 = vector.shape_cast %1 : vector<1x64xf32> to vector<1x1x64xf32>
    %48 = vector.broadcast %47 : vector<1x1x64xf32> to vector<8x16x64xf32>
    %49 = arith.addf %46, %48 : vector<8x16x64xf32>
    %50 = arith.negf %49 : vector<8x16x64xf32>
    %51 = math.exp %50 : vector<8x16x64xf32>
    %cst_20 = arith.constant 1.000000e+00 : f32
    %52 = vector.broadcast %cst_20 : f32 to vector<8x16x64xf32>
    %53 = arith.addf %52, %51 : vector<8x16x64xf32>
    %54 = arith.divf %52, %53 : vector<8x16x64xf32>
    %55 = arith.mulf %49, %54 : vector<8x16x64xf32>
    %56 = vector.shape_cast %55 : vector<8x16x64xf32> to vector<128x64xf32>
    %c1_i32_21 = arith.constant 1 : i32
    %57 = tpu.dynamic_rotate %56 by %c1_i32_21 dim 0 : vector<128x64xf32>, i32 -> vector<128x64xf32>
    %cst_22 = arith.constant 0.000000e+00 : f32
    %58 = vector.shape_cast %25 : vector<128x1xi1> to vector<128x1xi1>
    %59 = vector.broadcast %58 : vector<128x1xi1> to vector<128x64xi1>
    %60 = vector.broadcast %cst_22 : f32 to vector<128x64xf32>
    %61 = arith.select %59, %57, %60 : vector<128x64xi1>, vector<128x64xf32>
    %c127_i32 = arith.constant 127 : i32
    %62 = tpu.dynamic_rotate %56 by %c127_i32 dim 0 : vector<128x64xf32>, i32 -> vector<128x64xf32>
    %cst_23 = arith.constant 0.000000e+00 : f32
    %63 = vector.shape_cast %27 : vector<128x1xi1> to vector<128x1xi1>
    %64 = vector.broadcast %63 : vector<128x1xi1> to vector<128x64xi1>
    %65 = vector.broadcast %cst_23 : f32 to vector<128x64xf32>
    %66 = arith.select %64, %62, %65 : vector<128x64xi1>, vector<128x64xf32>
    %67 = arith.truncf %61 : vector<128x64xf32> to vector<128x64xbf16>
    %c0_24 = arith.constant 0 : index
    %c0_25 = arith.constant 0 : index
    %c0_26 = arith.constant 0 : index
    %68 = vector.load %arg4[%c0_24, %c0_25, %c0_26] : memref<3x64x128xbf16, #tpu.memory_space<vmem>>, vector<1x64x128xbf16>
    %69 = vector.shape_cast %68 : vector<1x64x128xbf16> to vector<64x128xbf16>
    %cst_27 = arith.constant dense<0.000000e+00> : vector<128x128xf32>
    %70 = tpu.matmul %67, %69, %cst_27 {dimension_numbers = #tpu.dot_dimension_numbers<[1], [0], [0], [1], [0, 0, 1, 1], [], []>} : vector<128x64xbf16>, vector<64x128xbf16>, vector<128x128xf32> -> vector<128x128xf32>
    %71 = arith.truncf %56 : vector<128x64xf32> to vector<128x64xbf16>
    %c1_28 = arith.constant 1 : index
    %c0_29 = arith.constant 0 : index
    %c0_30 = arith.constant 0 : index
    %72 = vector.load %arg4[%c1_28, %c0_29, %c0_30] : memref<3x64x128xbf16, #tpu.memory_space<vmem>>, vector<1x64x128xbf16>
    %73 = vector.shape_cast %72 : vector<1x64x128xbf16> to vector<64x128xbf16>
    %cst_31 = arith.constant dense<0.000000e+00> : vector<128x128xf32>
    %74 = tpu.matmul %71, %73, %cst_31 {dimension_numbers = #tpu.dot_dimension_numbers<[1], [0], [0], [1], [0, 0, 1, 1], [], []>} : vector<128x64xbf16>, vector<64x128xbf16>, vector<128x128xf32> -> vector<128x128xf32>
    %75 = arith.addf %70, %74 : vector<128x128xf32>
    %76 = arith.truncf %66 : vector<128x64xf32> to vector<128x64xbf16>
    %c2_32 = arith.constant 2 : index
    %c0_33 = arith.constant 0 : index
    %c0_34 = arith.constant 0 : index
    %77 = vector.load %arg4[%c2_32, %c0_33, %c0_34] : memref<3x64x128xbf16, #tpu.memory_space<vmem>>, vector<1x64x128xbf16>
    %78 = vector.shape_cast %77 : vector<1x64x128xbf16> to vector<64x128xbf16>
    %cst_35 = arith.constant dense<0.000000e+00> : vector<128x128xf32>
    %79 = tpu.matmul %76, %78, %cst_35 {dimension_numbers = #tpu.dot_dimension_numbers<[1], [0], [0], [1], [0, 0, 1, 1], [], []>} : vector<128x64xbf16>, vector<64x128xbf16>, vector<128x128xf32> -> vector<128x128xf32>
    %80 = arith.addf %75, %79 : vector<128x128xf32>
    %81 = vector.broadcast %2 : vector<1x128xf32> to vector<128x128xf32>
    %82 = arith.addf %80, %81 : vector<128x128xf32>
    %83 = vector.shape_cast %82 : vector<128x128xf32> to vector<8x16x128xf32>
    %c0_36 = arith.constant 0 : index
    %c0_37 = arith.constant 0 : index
    %84 = vector.load %arg5[%c0_36, %c0_37] : memref<128x128xf32, #tpu.memory_space<vmem>>, vector<128x128xf32>
    %cst_38 = arith.constant dense<0.000000e+00> : vector<8x128xf32>
    %85 = vector.multi_reduction <add>, %83, %cst_38 [1] : vector<8x16x128xf32> to vector<8x128xf32>
    %cst_39 = arith.constant dense<0.000000e+00> : vector<8x128xf32>
    %86 = tpu.matmul %85, %84, %cst_39 {dimension_numbers = #tpu.dot_dimension_numbers<[1], [0], [0], [1], [0, 0, 1, 1], [], []>} : vector<8x128xf32>, vector<128x128xf32>, vector<8x128xf32> -> vector<8x128xf32>
    %87 = vector.shape_cast %86 : vector<8x128xf32> to vector<8x1x128xf32>
    %88 = vector.broadcast %87 : vector<8x1x128xf32> to vector<8x16x128xf32>
    %89 = arith.subf %83, %88 : vector<8x16x128xf32>
    %90 = arith.mulf %89, %89 : vector<8x16x128xf32>
    %cst_40 = arith.constant dense<0.000000e+00> : vector<8x128xf32>
    %91 = vector.multi_reduction <add>, %90, %cst_40 [1] : vector<8x16x128xf32> to vector<8x128xf32>
    %cst_41 = arith.constant dense<0.000000e+00> : vector<8x128xf32>
    %92 = tpu.matmul %91, %84, %cst_41 {dimension_numbers = #tpu.dot_dimension_numbers<[1], [0], [0], [1], [0, 0, 1, 1], [], []>} : vector<8x128xf32>, vector<128x128xf32>, vector<8x128xf32> -> vector<8x128xf32>
    %cst_42 = arith.constant 9.99999974E-6 : f32
    %93 = vector.broadcast %cst_42 : f32 to vector<8x128xf32>
    %94 = arith.addf %92, %93 : vector<8x128xf32>
    %95 = math.rsqrt %94 : vector<8x128xf32>
    %96 = vector.shape_cast %95 : vector<8x128xf32> to vector<8x1x128xf32>
    %97 = vector.broadcast %96 : vector<8x1x128xf32> to vector<8x16x128xf32>
    %98 = arith.mulf %89, %97 : vector<8x16x128xf32>
    %99 = vector.shape_cast %3 : vector<1x128xf32> to vector<1x1x128xf32>
    %100 = vector.broadcast %99 : vector<1x1x128xf32> to vector<8x16x128xf32>
    %101 = arith.mulf %98, %100 : vector<8x16x128xf32>
    %102 = vector.shape_cast %4 : vector<1x128xf32> to vector<1x1x128xf32>
    %103 = vector.broadcast %102 : vector<1x1x128xf32> to vector<8x16x128xf32>
    %104 = arith.addf %101, %103 : vector<8x16x128xf32>
    %105 = arith.negf %104 : vector<8x16x128xf32>
    %106 = math.exp %105 : vector<8x16x128xf32>
    %cst_43 = arith.constant 1.000000e+00 : f32
    %107 = vector.broadcast %cst_43 : f32 to vector<8x16x128xf32>
    %108 = arith.addf %107, %106 : vector<8x16x128xf32>
    %109 = arith.divf %107, %108 : vector<8x16x128xf32>
    %110 = arith.mulf %104, %109 : vector<8x16x128xf32>
    %111 = vector.shape_cast %110 : vector<8x16x128xf32> to vector<128x128xf32>
    %c1_i32_44 = arith.constant 1 : i32
    %112 = tpu.dynamic_rotate %111 by %c1_i32_44 dim 0 : vector<128x128xf32>, i32 -> vector<128x128xf32>
    %cst_45 = arith.constant 0.000000e+00 : f32
    %113 = vector.shape_cast %25 : vector<128x1xi1> to vector<128x1xi1>
    %114 = vector.broadcast %113 : vector<128x1xi1> to vector<128x128xi1>
    %115 = vector.broadcast %cst_45 : f32 to vector<128x128xf32>
    %116 = arith.select %114, %112, %115 : vector<128x128xi1>, vector<128x128xf32>
    %c127_i32_46 = arith.constant 127 : i32
    %117 = tpu.dynamic_rotate %111 by %c127_i32_46 dim 0 : vector<128x128xf32>, i32 -> vector<128x128xf32>
    %cst_47 = arith.constant 0.000000e+00 : f32
    %118 = vector.shape_cast %27 : vector<128x1xi1> to vector<128x1xi1>
    %119 = vector.broadcast %118 : vector<128x1xi1> to vector<128x128xi1>
    %120 = vector.broadcast %cst_47 : f32 to vector<128x128xf32>
    %121 = arith.select %119, %117, %120 : vector<128x128xi1>, vector<128x128xf32>
    %122 = arith.truncf %116 : vector<128x128xf32> to vector<128x128xbf16>
    %c0_48 = arith.constant 0 : index
    %c0_49 = arith.constant 0 : index
    %c0_50 = arith.constant 0 : index
    %123 = vector.load %arg6[%c0_48, %c0_49, %c0_50] : memref<3x128x128xbf16, #tpu.memory_space<vmem>>, vector<1x128x128xbf16>
    %124 = vector.shape_cast %123 : vector<1x128x128xbf16> to vector<128x128xbf16>
    %cst_51 = arith.constant dense<0.000000e+00> : vector<128x128xf32>
    %125 = tpu.matmul %122, %124, %cst_51 {dimension_numbers = #tpu.dot_dimension_numbers<[1], [0], [0], [1], [0, 0, 1, 1], [], []>} : vector<128x128xbf16>, vector<128x128xbf16>, vector<128x128xf32> -> vector<128x128xf32>
    %126 = arith.truncf %111 : vector<128x128xf32> to vector<128x128xbf16>
    %c1_52 = arith.constant 1 : index
    %c0_53 = arith.constant 0 : index
    %c0_54 = arith.constant 0 : index
    %127 = vector.load %arg6[%c1_52, %c0_53, %c0_54] : memref<3x128x128xbf16, #tpu.memory_space<vmem>>, vector<1x128x128xbf16>
    %128 = vector.shape_cast %127 : vector<1x128x128xbf16> to vector<128x128xbf16>
    %cst_55 = arith.constant dense<0.000000e+00> : vector<128x128xf32>
    %129 = tpu.matmul %126, %128, %cst_55 {dimension_numbers = #tpu.dot_dimension_numbers<[1], [0], [0], [1], [0, 0, 1, 1], [], []>} : vector<128x128xbf16>, vector<128x128xbf16>, vector<128x128xf32> -> vector<128x128xf32>
    %130 = arith.addf %125, %129 : vector<128x128xf32>
    %131 = arith.truncf %121 : vector<128x128xf32> to vector<128x128xbf16>
    %c2_56 = arith.constant 2 : index
    %c0_57 = arith.constant 0 : index
    %c0_58 = arith.constant 0 : index
    %132 = vector.load %arg6[%c2_56, %c0_57, %c0_58] : memref<3x128x128xbf16, #tpu.memory_space<vmem>>, vector<1x128x128xbf16>
    %133 = vector.shape_cast %132 : vector<1x128x128xbf16> to vector<128x128xbf16>
    %cst_59 = arith.constant dense<0.000000e+00> : vector<128x128xf32>
    %134 = tpu.matmul %131, %133, %cst_59 {dimension_numbers = #tpu.dot_dimension_numbers<[1], [0], [0], [1], [0, 0, 1, 1], [], []>} : vector<128x128xbf16>, vector<128x128xbf16>, vector<128x128xf32> -> vector<128x128xf32>
    %135 = arith.addf %130, %134 : vector<128x128xf32>
    %136 = vector.broadcast %5 : vector<1x128xf32> to vector<128x128xf32>
    %137 = arith.addf %135, %136 : vector<128x128xf32>
    %138 = vector.shape_cast %28 : vector<8x16x64xf32> to vector<128x64xf32>
    %139 = arith.truncf %138 : vector<128x64xf32> to vector<128x64xbf16>
    %c0_60 = arith.constant 0 : index
    %c0_61 = arith.constant 0 : index
    %140 = vector.load %arg7[%c0_60, %c0_61] : memref<64x128xbf16, #tpu.memory_space<vmem>>, vector<64x128xbf16>
    %cst_62 = arith.constant dense<0.000000e+00> : vector<128x128xf32>
    %141 = tpu.matmul %139, %140, %cst_62 {dimension_numbers = #tpu.dot_dimension_numbers<[1], [0], [0], [1], [0, 0, 1, 1], [], []>} : vector<128x64xbf16>, vector<64x128xbf16>, vector<128x128xf32> -> vector<128x128xf32>
    %142 = vector.broadcast %6 : vector<1x128xf32> to vector<128x128xf32>
    %143 = arith.addf %141, %142 : vector<128x128xf32>
    %144 = arith.addf %137, %143 : vector<128x128xf32>
    %145 = vector.shape_cast %144 : vector<128x128xf32> to vector<8x16x128xf32>
    %c0_63 = arith.constant 0 : index
    %c0_64 = arith.constant 0 : index
    %c0_65 = arith.constant 0 : index
    %146 = vector.load %arg8[%c0_63, %c0_64, %c0_65] : memref<8x16x128xf32, #tpu.memory_space<vmem>>, vector<8x16x128xf32>
    tpu.vector_store %arg8[%c0_63, %c0_64, %c0_65], %145 {strides = array<i32>} : memref<8x16x128xf32, #tpu.memory_space<vmem>>, vector<8x16x128xf32>,
    return
  }
  func.func @transform_0(%arg0: i32) -> (i32, i32, i32) {
    %c0_i32 = arith.constant 0 : i32
    %c0_i32_0 = arith.constant 0 : i32
    %c0_i32_1 = arith.constant 0 : i32
    return %arg0, %c0_i32, %c0_i32_0 : i32, i32, i32
  }
  func.func @transform_1(%arg0: i32) -> (i32, i32) {
    %c0_i32 = arith.constant 0 : i32
    %c0_i32_0 = arith.constant 0 : i32
    %c0_i32_1 = arith.constant 0 : i32
    return %c0_i32, %c0_i32_0 : i32, i32
  }
  func.func @transform_2(%arg0: i32) -> (i32, i32) {
    %c0_i32 = arith.constant 0 : i32
    %c0_i32_0 = arith.constant 0 : i32
    %c0_i32_1 = arith.constant 0 : i32
    return %c0_i32, %c0_i32_0 : i32, i32
  }
  func.func @transform_3(%arg0: i32) -> (i32, i32, i32) {
    %c0_i32 = arith.constant 0 : i32
    %c0_i32_0 = arith.constant 0 : i32
    %c0_i32_1 = arith.constant 0 : i32
    %c0_i32_2 = arith.constant 0 : i32
    return %c0_i32, %c0_i32_0, %c0_i32_1 : i32, i32, i32
  }
  func.func @transform_4(%arg0: i32) -> (i32, i32) {
    %c0_i32 = arith.constant 0 : i32
    %c0_i32_0 = arith.constant 0 : i32
    %c0_i32_1 = arith.constant 0 : i32
    return %c0_i32, %c0_i32_0 : i32, i32
  }
  func.func @transform_5(%arg0: i32) -> (i32, i32, i32) {
    %c0_i32 = arith.constant 0 : i32
    %c0_i32_0 = arith.constant 0 : i32
    %c0_i32_1 = arith.constant 0 : i32
    %c0_i32_2 = arith.constant 0 : i32
    return %c0_i32, %c0_i32_0, %c0_i32_1 : i32, i32, i32
  }
  func.func @transform_6(%arg0: i32) -> (i32, i32) {
    %c0_i32 = arith.constant 0 : i32
    %c0_i32_0 = arith.constant 0 : i32
    %c0_i32_1 = arith.constant 0 : i32
    return %c0_i32, %c0_i32_0 : i32, i32
  }
  func.func @transform_7(%arg0: i32) -> (i32, i32, i32) {
    %c0_i32 = arith.constant 0 : i32
    %c0_i32_0 = arith.constant 0 : i32
    %c0_i32_1 = arith.constant 0 : i32
    return %arg0, %c0_i32, %c0_i32_0 : i32, i32, i32
  }
}

</mosaic_0001>

<bundles_post_ra>
// kernel: tpu_custom_call.1
= control target key start
LH: loop header
LB: loop body
LE: loop exit
PB: predicated region body
PF: predicated region fallthrough
CT: control target
= control target key end

     0   :  { %s6640_s0 = inlined_call_operand.hbm [shape: f32[16,16,64], index: 0, kind: input, shape index: {}]   ;;  %s6641_s1 = inlined_call_operand.hbm [shape: f32[8,128], index: 1, kind: input, shape index: {}]   ;;  %s6642_s2 = inlined_call_operand.hbm [shape: f32[64,64], index: 2, kind: input, shape index: {}]   ;;  %s6643_s3 = inlined_call_operand.hbm [shape: bf16[3,64,128], index: 3, kind: input, shape index: {}]   ;;  %s6644_s4 = inlined_call_operand.hbm [shape: f32[128,128], index: 4, kind: input, shape index: {}]   ;;  %s6645_s5 = inlined_call_operand.hbm [shape: bf16[3,128,128], index: 5, kind: input, shape index: {}]   ;;  %s6646_s6 = inlined_call_operand.hbm [shape: bf16[64,128], index: 6, kind: input, shape index: {}]   ;;  %s6647_s7 = inlined_call_operand.hbm [shape: f32[16,16,128], index: 7, kind: output, shape index: {}]  }
   0x1   :  { %6679 = sst [smem:[#allocation27_spill]] %s6641_s1 }
   0x2   :  { %12 = vsyncpa [#allocation3], 0 }
   0x3   :  { %14 = vsyncpa [#allocation3 + $0x1], 0 }
   0x4   :  { %15 = vsyncpa [#allocation6], 0 }
   0x5   :  { %16 = vsyncpa [#allocation9], 0 }
   0x6   :  { %17 = vsyncpa [#allocation12], 0 }
   0x7   :  { %18 = vsyncpa [#allocation4], 0 }
   0x8   :  { %20 = vsyncpa [#allocation4 + $0x1], 0  ;;  %s4978_s24 = smov 0   ;;  %s4980_s25 = smov 0  }
   0x9   :  { %s4982_s26 = smov 0   ;;  %s4984_s27 = smov 0  }
   0xa LB: > { %s4920_s28 = smov [#allocation5]   ;;  %s4999_s30 = sadd.s32 4294967295, %s4918_s27   ;;  %s4918_s27 = sphi %s4984_s27, %s6813_s27   ;;  %s4914_s26 = sphi %s4982_s26, %s6812_s26   ;;  %s4910_s25 = sphi %s4980_s25, %s6811_s25   ;;  %s4906_s24 = sphi %s4978_s24, %s6810_s24  }
   0xb   : > { %s222_s29 = sshll.u32 %s4920_s28, 4  ;;  %p3713_p0 = scmp.ge.s32.totalorder %s4918_s27, 1  ;;  %s223_s29 = int_to_ptr.vmem [resolvable:$true] %s222_s29 }
   0xc   : > { %p6650_p1 = scmp.eq.s32.totalorder %s4999_s30, 0  ;;  %p209_p2 = scmp.lt.s32.totalorder %s4918_s27, 3 }
   0xd   : > { %s4921_s9 = smov [#allocation8]   ;;  %s4922_s12 = smov [#allocation11]  }
   0xe   : > { %p5004_p3 = pnand %p3713_p0, %p209_p2  ;;  %s245_s10 = sshll.u32 %s4921_s9, 4  ;;  %s5011_s10 = int_to_ptr.vmem [resolvable:$true] %s245_s10 }
   0xf   : > { %s271_s13 = sshll.u32 %s4922_s12, 4  ;;  %s4669_s15 = scalar_lea.vmem %s223_s29, 128  ;;  %s5019_s13 = int_to_ptr.vmem [resolvable:$true] %s271_s13 }
  0x10   : > { %s6680_s8 = scalar_select %p5004_p3, 1, 0 }
  0x11   : > { %p4381_p5 = pneg %p5004_p3  ;;  %p4670_p8 = scmp.ne.s32.totalorder %s223_s29, %s4669_s15 }
  0x12   : > { %p4677_p11 = scmp.lt.s32.totalorder %s223_s29, %s223_s29  ;;  %p4678_p12 = scmp.lt.s32.totalorder %s4669_s15, %s4669_s15 }
  0x13   : > { %p5015_p6 = pnand %p4381_p5, %p6650_p1 }
  0x14   : > { %p4679_p13 = por %p4678_p12, %p4677_p11 }
  0x15   : > { %p5023_p7 = pneg %p5015_p6 }
  0x17   : > { %p4672_p9 = pnand %p4670_p8, %p5023_p7 }
  0x19   : > { %p4673_p10 = pneg %p4672_p9 }
  0x1b   : > { %p4680_p0 = pnand %p4679_p13, %p4673_p10 }
  0x1d   : > { %4683 = shalt.err (!%p4680_p0)
}
  0x1e   : > { %s6683_s1 = sld [smem:[#allocation27_spill]]  ;;  %s4695_s18 = scalar_lea.vmem %s5011_s10, 1536 }
  0x1f   : > { %p4696_p2 = scmp.ne.s32.totalorder %s5011_s10, %s4695_s18  ;;  %p4703_p9 = scmp.lt.s32.totalorder %s5011_s10, %s5011_s10 }
  0x20   : > { %p4704_p11 = scmp.lt.s32.totalorder %s4695_s18, %s4695_s18 }
  0x21   : > { %p4698_p5 = pnand %p4696_p2, %p5023_p7 }
  0x22   : > { %p4705_p10 = por %p4704_p11, %p4703_p9 }
  0x23   : > { %p4699_p8 = pneg %p4698_p5 }
  0x24   : > { %4384 = dma.hbm_to_vmem [thread:$0]  (!%p5015_p6), %s6683_s1, 128, %s223_s29, [#allocation6]  }
  0x25   : > { %p4706_p12 = pnand %p4705_p10, %p4699_p8 }
  0x27   : > { %4709 = shalt.err (!%p4706_p12)
}
  0x28   : > { %s4923_s19 = smov 64   ;;  %s4924_s20 = smov 4  }
  0x29   : > { %4390 = dma.hbm_to_vmem [thread:$0]  (!%p5015_p6), %s6643_s3, 1536, %s5011_s10, [#allocation9], %s4923_s19, %s4923_s19, %s4924_s20  }
  0x2a   : > { %s4721_s23 = scalar_lea.vmem %s5019_s13, 3072  ;;  %p4729_p5 = scmp.lt.s32.totalorder %s5019_s13, %s5019_s13 }
  0x2b   : > { %p4722_p13 = scmp.ne.s32.totalorder %s5019_s13, %s4721_s23  ;;  %p4730_p8 = scmp.lt.s32.totalorder %s4721_s23, %s4721_s23 }
  0x2d   : > { %p4724_p0 = pnand %p4722_p13, %p5023_p7  ;;  %p4731_p9 = por %p4730_p8, %p4729_p5 }
  0x2f   : > { %p4725_p2 = pneg %p4724_p0 }
  0x31   : > { %p4732_p11 = pnand %p4731_p9, %p4725_p2 }
  0x33   : > { %4735 = shalt.err (!%p4732_p11)
}
  0x34   : > { %4396 = dma.hbm_to_vmem [thread:$0]  (!%p5015_p6), %s6645_s5, 3072, %s5019_s13, [#allocation12], %s4923_s19, %s4923_s19, %s4924_s20  }
  0x35   : > { %s4925_s9 = smov [#allocation7]  }
  0x36   : > { %s232_s10 = sshll.u32 %s4925_s9, 4  ;;  %s233_s10 = int_to_ptr.vmem [resolvable:$true] %s232_s10 }
  0x37   : > { %s4747_s12 = scalar_lea.vmem %s233_s10, 1024  ;;  %p4755_p0 = scmp.lt.s32.totalorder %s233_s10, %s233_s10 }
  0x38   : > { %p4748_p10 = scmp.ne.s32.totalorder %s233_s10, %s4747_s12  ;;  %p4756_p2 = scmp.lt.s32.totalorder %s4747_s12, %s4747_s12 }
  0x3a   : > { %p4750_p12 = pnand %p4748_p10, %p5023_p7  ;;  %p4757_p5 = por %p4756_p2, %p4755_p0 }
  0x3c   : > { %p4751_p13 = pneg %p4750_p12 }
  0x3e   : > { %p4758_p8 = pnand %p4757_p5, %p4751_p13 }
  0x40   : > { %4761 = shalt.err (!%p4758_p8)
}
  0x41   : > { %s6648_s15 = smov 128   ;;  %s6649_s16 = smov 8  }
  0x42   : > { %4387 = dma.hbm_to_vmem [thread:$0]  (!%p5015_p6), %s6642_s2, 1024, %s233_s10, [#allocation6], %s6648_s15, %s6648_s15, %s6649_s16  }
  0x43   : > { %s4928_s18 = smov [#allocation10]   ;;  %s4929_s22 = smov [#allocation13]  }
  0x44   : > { %s258_s21 = sshll.u32 %s4928_s18, 4  ;;  %s284_s23 = sshll.u32 %s4929_s22, 4  ;;  %s259_s21 = int_to_ptr.vmem [resolvable:$true] %s258_s21  ;;  %s285_s23 = int_to_ptr.vmem [resolvable:$true] %s284_s23 }
  0x45   : > { %s4773_s28 = scalar_lea.vmem %s259_s21, 2048  ;;  %p4781_p12 = scmp.lt.s32.totalorder %s259_s21, %s259_s21 }
  0x46   : > { %p4774_p9 = scmp.ne.s32.totalorder %s259_s21, %s4773_s28  ;;  %p4782_p13 = scmp.lt.s32.totalorder %s4773_s28, %s4773_s28 }
  0x48   : > { %p4776_p11 = pnand %p4774_p9, %p5023_p7  ;;  %p4783_p0 = por %p4782_p13, %p4781_p12 }
  0x4a   : > { %p4777_p10 = pneg %p4776_p11 }
  0x4c   : > { %p4784_p2 = pnand %p4783_p0, %p4777_p10 }
  0x4e   : > { %4787 = shalt.err (!%p4784_p2)
}
  0x4f   : > { %4393 = dma.hbm_to_vmem [thread:$0]  (!%p5015_p6), %s6644_s4, 2048, %s259_s21, [#allocation9], %s6648_s15, %s6648_s15, %s6649_s16  }
  0x50   : > { %s4799_s10 = scalar_lea.vmem %s285_s23, 512  ;;  %p4807_p11 = scmp.lt.s32.totalorder %s285_s23, %s285_s23 }
  0x51   : > { %p4800_p5 = scmp.ne.s32.totalorder %s285_s23, %s4799_s10  ;;  %p4808_p4 = scmp.lt.s32.totalorder %s4799_s10, %s4799_s10 }
  0x53   : > { %p4802_p8 = pnand %p4800_p5, %p5023_p7  ;;  %p4809_p12 = por %p4808_p4, %p4807_p11 }
  0x55   : > { %p4803_p9 = pneg %p4802_p8 }
  0x57   : > { %p4810_p10 = pnand %p4809_p12, %p4803_p9 }
  0x59   : > { %4813 = shalt.err (!%p4810_p10)
}
  0x5a   : > { %4399 = dma.hbm_to_vmem [thread:$0]  (!%p5015_p6), %s6646_s6, 512, %s285_s23, [#allocation12], %s4923_s19, %s4923_s19, %s4924_s20  }
  0x5b   : > { %s3712_s11 = sadd.s32 4294967294, %s4918_s27   ;;  %s5096_s14 = sadd.s32 1, %s4918_s27  }
  0x5c   : > { %s30_s17 = ssub.s32 %s4918_s27, %s5096_s14  ;;  %s33_s18 = sadd.s32 1, %s4914_s26 }
  0x5d   : > { %p31_p4 = scmp.eq.s32.totalorder %s30_s17, 0  ;;  %p40_p7 = scmp.ne.s32.totalorder %s4914_s26, %s4910_s25 }
  0x5e   : > { %p41_p13 = scmp.eq.s32.totalorder %s4918_s27, 0  ;;  %p46_p0 = scmp.ne.s32.totalorder %s4910_s25, %s4906_s24 }
  0x5f   : > { %s5107_s21 = scalar_select %p31_p4, %s4914_s26, %s33_s18  }
  0x60   : > { %p5109_p2 = por %p41_p13, %p40_p7  ;;  %p5115_p6 = por %p6650_p1, %p46_p0 }
  0x61   : > { %p196_p5 = scmp.eq.s32.totalorder %s4999_s30, 1  ;;  %p202_p8 = scmp.eq.s32.totalorder %s3712_s11, 1 }
  0x62   : > { %s6685_s19 = scalar_select %p5115_p6, 1, 0 }
  0x63   : > { %p4414_p9 = scmp.lt.s32.totalorder %s4918_s27, 2  ;;  %s298_s20 = sand.u32 1, %s4914_s26  }
  0x64   : > { %p5122_p11 = por %p196_p5, %p40_p7  ;;  %p5126_p12 = por %p202_p8, %p46_p0 }
  0x65   : > { %s3721_s29 = sshll.u32 %s298_s20, 7  ;;  %s3902_s9 = sshll.u32 %s4918_s27, 11 }
  0x66   : > { %s6686_s23 = scalar_select %p5122_p11, 1, 0 }
  0x67   : > { %s6687_s28 = scalar_select %p5126_p12, 1, 0 }
  0x68   : > { %s5134_s13 = scalar_lea.hbm %s6640_s0, %s3902_s9  ;;  %s302_s11 = scalar_lea.vmem [#allocation2], %s3721_s29 }
  0x69   : > { %s310_s17 = sshll.u32 %s302_s11, 4  ;;  %p5140_p10 = pnand %p4414_p9, %p5109_p2  ;;  %s5136_s17 = int_to_ptr.vmem [resolvable:$true] %s310_s17 }
  0x6a   : > { %s5144_s15 = scalar_lea.sflag [#allocation3], %s298_s20  ;;  %s4814_s16 = scalar_lea.hbm %s5134_s13, 2048 }
  0x6b   : > { %p4815_p4 = scmp.ne.s32.totalorder %s5134_s13, %s4814_s16  ;;  %p4816_p7 = pneg %p5140_p10 }
  0x6c   : > { %s4819_s29 = scalar_lea.hbm %s6640_s0, 4096  ;;  %p4820_p2 = scmp.lt.s32.totalorder %s5134_s13, %s6640_s0 }
  0x6d   : > { %p4817_p13 = pnand %p4816_p7, %p4815_p4  ;;  %p4821_p5 = scmp.lt.s32.totalorder %s4819_s29, %s4814_s16 }
  0x6f   : > { %p4818_p0 = pneg %p4817_p13  ;;  %p4822_p8 = por %p4821_p5, %p4820_p2 }
  0x71   : > { %p4823_p9 = pnand %p4822_p8, %p4818_p0 }
  0x73   : > { %4826 = shalt.err (!%p4823_p9)
}
  0x74   : > { %s4827_s22 = scalar_lea.vmem %s5136_s17, 2048  ;;  %s4930_s20 = smov [#allocation2]  }
  0x75   : > { %p4828_p1 = scmp.ne.s32.totalorder %s5136_s17, %s4827_s22  ;;  %s4832_s1 = sshll.u32 %s4930_s20, 4  ;;  %s4833_s1 = int_to_ptr.vmem [resolvable:$false] %s4832_s1 }
  0x76   : > { %s4834_s9 = scalar_lea.vmem %s4833_s1, 4096  ;;  %p4835_p13 = scmp.lt.s32.totalorder %s5136_s17, %s4833_s1 }
  0x77   : > { %p4830_p12 = pnand %p4828_p1, %p4816_p7  ;;  %p4836_p11 = scmp.lt.s32.totalorder %s4834_s9, %s4827_s22 }
  0x79   : > { %p4831_p4 = pneg %p4830_p12  ;;  %p4837_p6 = por %p4836_p11, %p4835_p13 }
  0x7b   : > { %p4838_p3 = pnand %p4837_p6, %p4831_p4 }
  0x7d   : > { %4841 = shalt.err (!%p4838_p3)
}
  0x7e   : > { %s6689_s16 = smov 8   ;;  %s6690_s10 = smov 128  }
  0x7f   : > { %4403 = dma.hbm_to_vmem [thread:$0]  (!%p5140_p10), %s5134_s13, 2048, %s5136_s17, %s5144_s15, %s6690_s10, %s6690_s10, %s6689_s16  }
  0x80   : > { %p6691_p1 = scmp.ne.s32.totalorder %s6680_s8, 0 }
  0x82   : > { %322 = sbr.rel (%p6691_p1) target bundleno = 1723 (0x6bb), region = 48 }
  0x87   : > { %s5171_s29 = sand.u32 1, %s4910_s25   ;;  %p6692_p3 = scmp.ne.s32.totalorder %s6685_s19, 0 }
  0x88   : > { %s3726_s1 = sshll.u32 %s5171_s29, 7  ;;  %s325_s12 = scalar_lea.sflag [#allocation3], %s5171_s29 }
  0x89   : > { %s5177_s18 = scalar_lea.vmem [#allocation2], %s3726_s1 }
  0x8a   : > { %4885 = dma.done.wait (%p6692_p3), %s325_s12, 2048  }
  0x8b   : > { %4887 = vsyncadd (%p6692_p3), %s325_s12, 4294965248  ;;  %p6693_p6 = scmp.eq.s32.totalorder %s4999_s30, 0 }
  0x8d   : > { %4889 = dma.done.wait (%p6693_p6), [#allocation6], 1152   ;;  %p6694_p11 = pmov %p6693_p6 }
  0x8e   : > { %p6695_p12 = pmov %p6693_p6 }
  0x8f   : > { %4891 = vsyncadd (%p6694_p11), [#allocation6], 4294966144 }
  0x90   : > { %4893 = dma.done.wait (%p6695_p12), [#allocation9], 3584   ;;  %p6696_p10 = pmov %p6693_p6 }
  0x91   : > { %p6697_p7 = pmov %p6693_p6 }
  0x92   : > { %4895 = vsyncadd (%p6696_p10), [#allocation9], 4294963712 }
  0x93   : > { %4897 = dma.done.wait (%p6697_p7), [#allocation12], 3584   ;;  %p6698_p0 = pmov %p6693_p6 }
  0x94   : > { %v4931_v0 = vmov 0.0   ;;  %vm6662_vm0 = vmmov 0   ;;  %v5198_v1 = vld [vmem:[#allocation7 + $0x38] sm:$0xff]  ;;  %v5200_v2 = vld [vmem:[#allocation7 + $0x30] sm:$0xff]  ;;  %vm6669_vm1 = vcmask 523264   ;;  %v5204_v3 = vld [vmem:[#allocation7 + $0x28] sm:$0xff] }
  0x95   : > { %4899 = vsyncadd (%p6698_p0), [#allocation12], 4294963712  ;;  %4053 = vmatprep.subr.mxu1 %v4931_v0  ;;  %4069 = vmatprep.mubr.msk.f32.mxu1 %vm6662_vm0, %v4931_v0  ;;  %v5206_v4 = vld [vmem:[#allocation7 + $0x20] sm:$0xff]  ;;  %v5209_v5 = vld [vmem:[%s5177_s18] sm:$0xff]  ;;  %vm6661_vm2 = vcmask 1041409   ;;  %vm6659_vm3 = vcmask 1042434  }
  0x96   : > { %4054 = vmatpush3.msra.mxu1 %v5198_v1  ;;  %v5213_v6 = vld [vmem:[%s5177_s18 + $0x8] sm:$0xff]  ;;  %v5216_v7 = vld [vmem:[%s5177_s18 + $0x10] sm:$0xff]  ;;  %v5219_v8 = vld [vmem:[%s5177_s18 + $0x18] sm:$0xff]  ;;  %v659_v9 = vsel %vm6669_vm1, %v5209_v5, 0.0  ;;  %vm6658_vm4 = vcmask 1043459   ;;  %vm6657_vm5 = vcmask 1044484  }
  0x97   : > { %4055 = vmatprep.subr.mxu1 %v4931_v0  ;;  %v5225_v10 = vld [vmem:[%s5177_s18 + $0x20] sm:$0xff]  ;;  %v5228_v11 = vld [vmem:[%s5177_s18 + $0x28] sm:$0xff]  ;;  %v5231_v12 = vld [vmem:[%s5177_s18 + $0x30] sm:$0xff]  ;;  %v660_v13 = vsel %vm6669_vm1, %v5213_v6, 0.0  ;;  %v668_v14 = vsel %vm6669_vm1, %v5216_v7, 0.0  ;;  %v669_v15 = vsel %vm6669_vm1, %v5219_v8, 0.0 }
  0x98   : > { %4056 = vmatpush3.msra.mxu1 %v5200_v2  ;;  %v5241_v16 = vld [vmem:[%s5177_s18 + $0x38] sm:$0xff]  ;;  %v5244_v17 = vld [vmem:[%s5177_s18 + $0x40] sm:$0xff]  ;;  %v5247_v18 = vld [vmem:[%s5177_s18 + $0x48] sm:$0xff]  ;;  %v661_v19 = vadd.f32 %v660_v13, %v659_v9  ;;  %v670_v20 = vadd.f32 %v669_v15, %v668_v14  ;;  %v677_v21 = vsel %vm6669_vm1, %v5225_v10, 0.0  ;;  %v678_v22 = vsel %vm6669_vm1, %v5228_v11, 0.0  ;;  %s6528_s8 = scalar_lea.vmem [#allocation14], %s3726_s1 }
  0x99   : > { %4057 = vmatprep.subr.mxu1 %v4931_v0  ;;  %v5254_v23 = vld [vmem:[#allocation7 + $0x18] sm:$0xff]  ;;  %v5257_v24 = vld [vmem:[%s5177_s18 + $0x50] sm:$0xff]  ;;  %v5260_v25 = vld [vmem:[%s5177_s18 + $0x58] sm:$0xff]  ;;  %v679_v26 = vadd.f32 %v678_v22, %v677_v21  ;;  %v686_v27 = vsel %vm6669_vm1, %v5231_v12, 0.0  ;;  %v687_v28 = vsel %vm6669_vm1, %v5241_v16, 0.0  ;;  %v695_v29 = vsel %vm6669_vm1, %v5244_v17, 0.0 }
  0x9a   : > { %4058 = vmatpush3.msra.mxu1 %v5204_v3  ;;  %v5269_v30 = vld [vmem:[#allocation7 + $0x10] sm:$0xff]  ;;  %v5272_v31 = vld [vmem:[%s5177_s18 + $0x60] sm:$0xff]  ;;  %v5275_v32 = vld [vmem:[%s5177_s18 + $0x68] sm:$0xff]  ;;  %v662_v33 = vrot.slane %v661_v19, 4  ;;  %v671_v34 = vrot.slane %v670_v20, 4  ;;  %v688_v35 = vadd.f32 %v687_v28, %v686_v27  ;;  %v696_v36 = vsel %vm6669_vm1, %v5247_v18, 0.0 }
  0x9b   : > { %4059 = vmatprep.subr.mxu1 %v4931_v0  ;;  %v5280_v37 = vld [vmem:[#allocation7 + $0x8] sm:$0xff]  ;;  %v680_v38 = vrot.slane %v679_v26, 4  ;;  %v697_v39 = vadd.f32 %v696_v36, %v695_v29  ;;  %v704_v40 = vsel %vm6669_vm1, %v5257_v24, 0.0  ;;  %v705_v41 = vsel %vm6669_vm1, %v5260_v25, 0.0  ;;  %v5291_v47 = vld [vmem:[#allocation7] sm:$0xff]  ;;  %v5299_v52 = vld [vmem:[%s5177_s18 + $0x78] sm:$0xff] }
  0x9c   : > { %4060 = vmatpush3.msra.mxu1 %v5206_v4  ;;  %v5288_v42 = vld [vmem:[%s5177_s18 + $0x70] sm:$0xff]  ;;  %v663_v43 = vadd.f32 %v662_v33, %v661_v19  ;;  %v672_v44 = vadd.f32 %v671_v34, %v670_v20  ;;  %v689_v45 = vrot.slane %v688_v35, 4  ;;  %v706_v46 = vadd.f32 %v705_v41, %v704_v40  ;;  %s3904_s15 = sshll.u32 %s4999_s30, 11  ;;  %s3582_s19 = sshll.u32 %s6528_s8, 4  ;;  %s6595_s19 = int_to_ptr.vmem [resolvable:$true] %s3582_s19 }
  0x9d   : > { %4061 = vmatprep.subr.mxu1 %v4931_v0  ;;  %v681_v48 = vadd.f32 %v680_v38, %v679_v26  ;;  %v698_v49 = vrot.slane %v697_v39, 4  ;;  %v713_v50 = vsel %vm6669_vm1, %v5272_v31, 0.0  ;;  %v714_v51 = vsel %vm6669_vm1, %v5275_v32, 0.0  ;;  %s6593_s11 = scalar_lea.hbm %s6647_s7, %s3904_s15  ;;  %s3568_s30 = scalar_lea.sflag [#allocation4], %s5171_s29 }
  0x9e   : > { %4062 = vmatpush3.msra.mxu1 %v5254_v23  ;;  %v664_v53 = vrot.slane %v663_v43, 2  ;;  %v673_v54 = vrot.slane %v672_v44, 2  ;;  %v690_v55 = vadd.f32 %v689_v45, %v688_v35  ;;  %v707_v56 = vrot.slane %v706_v46, 4  ;;  %s4842_s22 = scalar_lea.vmem %s6595_s19, 2048  ;;  %p6807_p5 = scmp.ne.s32.totalorder %s6686_s23, 0 }
  0x9f   : > { %4063 = vmatprep.subr.mxu1 %v4931_v0  ;;  %v682_v57 = vrot.slane %v681_v48, 2  ;;  %v699_v58 = vadd.f32 %v698_v49, %v697_v39  ;;  %v715_v59 = vadd.f32 %v714_v51, %v713_v50  ;;  %v722_v60 = vsel %vm6669_vm1, %v5288_v42, 0.0  ;;  %p4843_p2 = scmp.ne.s32.totalorder %s6595_s19, %s4842_s22  ;;  %s4935_s20 = smov [#allocation14]  }
  0xa0   : > { %4064 = vmatpush3.msra.mxu1 %v5269_v30  ;;  %v665_v61 = vadd.f32 %v664_v53, %v663_v43  ;;  %v674_v62 = vadd.f32 %v673_v54, %v672_v44  ;;  %v691_v63 = vrot.slane %v690_v55, 2  ;;  %v708_v9 = vadd.f32 %v707_v56, %v706_v46  ;;  %s4846_s9 = sshll.u32 %s4935_s20, 4  ;;  %s4847_s9 = int_to_ptr.vmem [resolvable:$false] %s4846_s9 }
  0xa1   : > { %4065 = vmatprep.subr.mxu1 %v4931_v0  ;;  %vm6656_vm6 = vcmask 1045509   ;;  %v683_v13 = vadd.f32 %v682_v57, %v681_v48  ;;  %v700_v14 = vrot.slane %v699_v58, 2  ;;  %v716_v15 = vrot.slane %v715_v59, 4  ;;  %p4844_p8 = pnand %p4843_p2, %p6807_p5  ;;  %s4848_s16 = scalar_lea.vmem %s4847_s9, 4096 }
  0xa2   : > { %4066 = vmatpush3.msra.mxu1 %v5280_v37  ;;  %v723_v19 = vsel %vm6669_vm1, %v5299_v52, 0.0  ;;  %v666_v20 = vrot.slane %v665_v61, 1  ;;  %v675_v21 = vrot.slane %v674_v62, 1  ;;  %v692_v22 = vadd.f32 %v691_v63, %v690_v55  ;;  %p4849_p4 = scmp.lt.s32.totalorder %s6595_s19, %s4847_s9  ;;  %p4850_p13 = scmp.lt.s32.totalorder %s4848_s16, %s4842_s22 }
  0xa3   : > { %4067 = vmatprep.subr.mxu1 %v4931_v0  ;;  %v709_v26 = vrot.slane %v708_v9, 2  ;;  %v684_v27 = vrot.slane %v683_v13, 1  ;;  %v701_v28 = vadd.f32 %v700_v14, %v699_v58  ;;  %v717_v29 = vadd.f32 %v716_v15, %v715_v59  ;;  %p4845_p9 = pneg %p4844_p8 }
  0xa4   : > { %4068 = vmatpush3.msra.mxu1 %v5291_v47  ;;  %v724_v33 = vadd.f32 %v723_v19, %v722_v60  ;;  %v667_v34 = vadd.f32 %v666_v20, %v665_v61  ;;  %v676_v35 = vadd.f32 %v675_v21, %v674_v62  ;;  %v693_v36 = vrot.slane %v692_v22, 1  ;;  %p4851_p1 = por %p4850_p13, %p4849_p4 }
  0xa5   : > { %4072 = vmatprep.subr.mxu1 %v4931_v0  ;;  %v710_v38 = vadd.f32 %v709_v26, %v708_v9  ;;  %v685_v39 = vadd.f32 %v684_v27, %v683_v13  ;;  %v702_v40 = vrot.slane %v701_v28, 1  ;;  %v718_v41 = vrot.slane %v717_v29, 2 }
  0xa6   : > { %v725_v43 = vrot.slane %v724_v33, 4  ;;  %v694_v44 = vadd.f32 %v693_v36, %v692_v22  ;;  %v740_v46 = vsel %vm6661_vm2, %v676_v35, %v667_v34  ;;  %vm6655_vm7 = vcmask 1046534   ;;  %p4852_p3 = pnand %p4851_p1, %p4845_p9 }
  0xa7   : > { %v711_v45 = vrot.slane %v710_v38, 1  ;;  %v703_v48 = vadd.f32 %v702_v40, %v701_v28  ;;  %v719_v49 = vadd.f32 %v718_v41, %v717_v29  ;;  %v742_v51 = vsel %vm6659_vm3, %v685_v39, %v740_v46 }
  0xa8   : > { %v726_v50 = vadd.f32 %v725_v43, %v724_v33  ;;  %v744_v54 = vsel %vm6658_vm4, %v694_v44, %v742_v51  ;;  %vm6654_vm8 = vcmask 1047559  }
  0xa9   : > { %v712_v53 = vadd.f32 %v711_v45, %v710_v38  ;;  %v720_v55 = vrot.slane %v719_v49, 1  ;;  %v746_v57 = vsel %vm6657_vm5, %v703_v48, %v744_v54 }
  0xaa   : > { %v727_v56 = vrot.slane %v726_v50, 2 }
  0xab   : > { %v721_v58 = vadd.f32 %v720_v55, %v719_v49  ;;  %v748_v60 = vsel %vm6656_vm6, %v712_v53, %v746_v57 }
  0xac   : > { %v728_v59 = vadd.f32 %v727_v56, %v726_v50 }
  0xad   : > { %v750_v62 = vsel %vm6655_vm7, %v721_v58, %v748_v60 }
  0xae   : > { %v729_v61 = vrot.slane %v728_v59, 1 }
  0xb0   : > { %v730_v63 = vadd.f32 %v729_v61, %v728_v59 }
  0xb2   : > { %v752_v9 = vsel %vm6654_vm8, %v730_v63, %v750_v62 }
  0xb3   : > { %4070 = vmatmul.mubr.msk.f32.vlgmr.msra.gmra.mxu1 %vm6669_vm1, %v752_v9 }
  0xb4   : > { %4073 = vmatpush3.msra.mxu1 %v5198_v1  ;;  %4088 = vmatprep.mubr.msk.f32.mxu1 %vm6662_vm0, %v4931_v0  ;;  %v393_v1 = vlaneseq }
  0xb5   : > { %4074 = vmatprep.subr.mxu1 %v4931_v0 }
  0xb6   : > { %4075 = vmatpush3.msra.mxu1 %v5200_v2  ;;  %v4933_v2 = vmov 1966171168  }
  0xb7   : > { %4076 = vmatprep.subr.mxu1 %v4931_v0 }
  0xb8   : > { %4077 = vmatpush3.msra.mxu1 %v5204_v3  ;;  %v828_v3 = vunpack.c.l.s4 %v4933_v2 }
  0xb9   : > { %4078 = vmatprep.subr.mxu1 %v4931_v0 }
  0xba   : > { %4079 = vmatpush3.msra.mxu1 %v5206_v4  ;;  %v5335_v4 = vshrl.u32 %v393_v1, 7  ;;  %v829_v13 = vunpack.c.0.s8 %v828_v3 }
  0xbb   : > { %4080 = vmatprep.subr.mxu1 %v4931_v0 }
  0xbc   : > { %4081 = vmatpush3.msra.mxu1 %v5254_v23  ;;  %v5338_v23 = vsub.s32 %v829_v13, %v5335_v4  ;;  %v5342_v19 = vsub.s32 0, %v5335_v4  ;;  %vm6660_vm10 = vcmp.lt.s32.totalorder %v5335_v4, 1 }
  0xbd   : > { %4082 = vmatprep.subr.mxu1 %v4931_v0 }
  0xbe   : > { %4083 = vmatpush3.msra.mxu1 %v5269_v30 }
  0xbf   : > { %4084 = vmatprep.subr.mxu1 %v4931_v0 }
  0xc0   : > { %4085 = vmatpush3.msra.mxu1 %v5280_v37 }
  0xc1   : > { %4086 = vmatprep.subr.mxu1 %v4931_v0 }
  0xc2   : > { %4087 = vmatpush3.msra.mxu1 %v5291_v47 }
 0x173   : > { %v821_v14 = vpop.f32.mrf.mxu1 }
 0x174   : > { %v826_v15 = vcombine.high %v821_v14, %v821_v14  ;;  %v833_v30 = vrot.slane %v821_v14, %v5338_v23 }
 0x175   : > { %v4071_v37 = vpop.f32.mrf.mxu1 }
 0x176   : > { %v840_v20 = vrot.slane %v826_v15, %v5338_v23  ;;  %v841_v47 = vcombine.high %v833_v30, %v833_v30  ;;  %v849_v21 = vrot.slane %v833_v30, %v5338_v23 }
 0x178   : > { %v842_v22 = vcombine.high %v840_v20, %v840_v20  ;;  %v856_v26 = vrot.slane %v840_v20, %v5338_v23  ;;  %v863_v27 = vrot.slane %v841_v47, %v5338_v23  ;;  %v871_v28 = vcombine.high %v849_v21, %v849_v21 }
 0x179   : > { %v878_v29 = vrot.slane %v849_v21, %v5342_v19 }
 0x17a   : > { %v870_v33 = vrot.slane %v842_v22, %v5338_v23  ;;  %v872_v34 = vcombine.high %v856_v26, %v856_v26  ;;  %v873_v35 = vcombine.high %v863_v27, %v863_v27  ;;  %v882_v36 = vrot.slane %v863_v27, %v5342_v19 }
 0x17b   : > { %v886_v38 = vrot.slane %v871_v28, %v5342_v19  ;;  %v894_v39 = vrot.slane %v856_v26, %v5342_v19  ;;  %v5354_v40 = vsub.f32 %v5209_v5, %v878_v29  ;;  %v5357_v41 = vsub.f32 %v5213_v6, %v878_v29 }
 0x17c   : > { %v874_v43 = vcombine.high %v870_v33, %v870_v33  ;;  %v890_v44 = vrot.slane %v873_v35, %v5342_v19  ;;  %v898_v45 = vrot.slane %v870_v33, %v5342_v19  ;;  %v902_v46 = vrot.slane %v872_v34, %v5342_v19 }
 0x17d   : > { %v5363_v48 = vsub.f32 %v5216_v7, %v882_v36  ;;  %v5366_v49 = vsub.f32 %v5219_v8, %v882_v36  ;;  %v5369_v50 = vsub.f32 %v5225_v10, %v886_v38  ;;  %v5372_v5 = vsub.f32 %v5228_v11, %v886_v38 }
 0x17e   : > { %v906_v6 = vrot.slane %v874_v43, %v5342_v19  ;;  %v5376_v51 = vsub.f32 %v5231_v12, %v890_v44  ;;  %v5379_v53 = vsub.f32 %v5241_v16, %v890_v44  ;;  %v5382_v7 = vsub.f32 %v5244_v17, %v894_v39 }
 0x17f   : > { %v5385_v8 = vsub.f32 %v5247_v18, %v894_v39  ;;  %v5388_v10 = vsub.f32 %v5257_v24, %v898_v45  ;;  %v5391_v11 = vsub.f32 %v5260_v25, %v898_v45  ;;  %v5394_v54 = vsub.f32 %v5272_v31, %v902_v46 }
 0x180   : > { %v5397_v12 = vsub.f32 %v5275_v32, %v902_v46  ;;  %v5400_v16 = vsub.f32 %v5288_v42, %v906_v6  ;;  %v5403_v17 = vsub.f32 %v5299_v52, %v906_v6  ;;  %v931_v18 = vmul.f32 %v5354_v40, %v5354_v40 }
 0x181   : > { %v932_v24 = vmul.f32 %v5357_v41, %v5357_v41  ;;  %v933_v25 = vmul.f32 %v5363_v48, %v5363_v48  ;;  %v934_v31 = vmul.f32 %v5366_v49, %v5366_v49  ;;  %v935_v32 = vmul.f32 %v5369_v50, %v5369_v50 }
 0x182   : > { %v936_v42 = vmul.f32 %v5372_v5, %v5372_v5  ;;  %v937_v52 = vmul.f32 %v5376_v51, %v5376_v51  ;;  %v938_v55 = vmul.f32 %v5379_v53, %v5379_v53  ;;  %v939_v56 = vmul.f32 %v5382_v7, %v5382_v7 }
 0x183   : > { %v940_v57 = vmul.f32 %v5385_v8, %v5385_v8  ;;  %v941_v58 = vmul.f32 %v5388_v10, %v5388_v10  ;;  %v942_v59 = vmul.f32 %v5391_v11, %v5391_v11  ;;  %v943_v60 = vmul.f32 %v5394_v54, %v5394_v54 }
 0x184   : > { %v944_v61 = vmul.f32 %v5397_v12, %v5397_v12  ;;  %v945_v62 = vmul.f32 %v5400_v16, %v5400_v16  ;;  %v946_v63 = vmul.f32 %v5403_v17, %v5403_v17  ;;  %v947_v9 = vsel %vm6669_vm1, %v931_v18, 0.0 }
 0x185   : > { %v948_v1 = vsel %vm6669_vm1, %v932_v24, 0.0  ;;  %v956_v2 = vsel %vm6669_vm1, %v933_v25, 0.0  ;;  %v957_v3 = vsel %vm6669_vm1, %v934_v31, 0.0  ;;  %v965_v13 = vsel %vm6669_vm1, %v935_v32, 0.0 }
 0x186   : > { %v949_v14 = vadd.f32 %v948_v1, %v947_v9  ;;  %v958_v15 = vadd.f32 %v957_v3, %v956_v2  ;;  %v966_v30 = vsel %vm6669_vm1, %v936_v42, 0.0  ;;  %v974_v37 = vsel %vm6669_vm1, %v937_v52, 0.0 }
 0x187   : > { %v967_v20 = vadd.f32 %v966_v30, %v965_v13  ;;  %v975_v47 = vsel %vm6669_vm1, %v938_v55, 0.0  ;;  %v983_v21 = vsel %vm6669_vm1, %v939_v56, 0.0  ;;  %v984_v22 = vsel %vm6669_vm1, %v940_v57, 0.0 }
 0x188   : > { %v950_v26 = vrot.slane %v949_v14, 4  ;;  %v959_v27 = vrot.slane %v958_v15, 4  ;;  %v976_v28 = vadd.f32 %v975_v47, %v974_v37  ;;  %v985_v29 = vadd.f32 %v984_v22, %v983_v21 }
 0x189   : > { %v968_v33 = vrot.slane %v967_v20, 4  ;;  %v992_v34 = vsel %vm6669_vm1, %v941_v58, 0.0  ;;  %v993_v35 = vsel %vm6669_vm1, %v942_v59, 0.0  ;;  %v1001_v36 = vsel %vm6669_vm1, %v943_v60, 0.0 }
 0x18a   : > { %v951_v38 = vadd.f32 %v950_v26, %v949_v14  ;;  %v960_v39 = vadd.f32 %v959_v27, %v958_v15  ;;  %v977_v43 = vrot.slane %v976_v28, 4  ;;  %v986_v44 = vrot.slane %v985_v29, 4 }
 0x18b   : > { %v969_v45 = vadd.f32 %v968_v33, %v967_v20  ;;  %v994_v46 = vadd.f32 %v993_v35, %v992_v34  ;;  %v1002_v6 = vsel %vm6669_vm1, %v944_v61, 0.0  ;;  %v1010_v18 = vsel %vm6669_vm1, %v945_v62, 0.0 }
 0x18c   : > { %v952_v24 = vrot.slane %v951_v38, 2  ;;  %v961_v25 = vrot.slane %v960_v39, 2  ;;  %v978_v31 = vadd.f32 %v977_v43, %v976_v28  ;;  %v987_v32 = vadd.f32 %v986_v44, %v985_v29 }
 0x18d   : > { %v970_v42 = vrot.slane %v969_v45, 2  ;;  %v995_v52 = vrot.slane %v994_v46, 4  ;;  %v1003_v55 = vadd.f32 %v1002_v6, %v1001_v36  ;;  %v1011_v56 = vsel %vm6669_vm1, %v946_v63, 0.0 }
 0x18e   : > { %v953_v57 = vadd.f32 %v952_v24, %v951_v38  ;;  %v962_v58 = vadd.f32 %v961_v25, %v960_v39  ;;  %v979_v59 = vrot.slane %v978_v31, 2  ;;  %v988_v60 = vrot.slane %v987_v32, 2 }
 0x18f   : > { %v971_v9 = vadd.f32 %v970_v42, %v969_v45  ;;  %v996_v1 = vadd.f32 %v995_v52, %v994_v46  ;;  %v1004_v2 = vrot.slane %v1003_v55, 4  ;;  %v1012_v3 = vadd.f32 %v1011_v56, %v1010_v18  ;;  %v4471_v56 = vld [vmem:[#allocation8 + $0x30] sm:$0xff]  }
 0x190   : > { %v954_v61 = vrot.slane %v953_v57, 1  ;;  %v963_v13 = vrot.slane %v962_v58, 1  ;;  %v980_v62 = vadd.f32 %v979_v59, %v978_v31  ;;  %v989_v14 = vadd.f32 %v988_v60, %v987_v32  ;;  %v4472_v59 = vld [vmem:[#allocation8 + $0x28] sm:$0xff]   ;;  %v4474_v60 = vld [vmem:[#allocation8 + $0x20] sm:$0xff]  }
 0x191   : > { %v972_v15 = vrot.slane %v971_v9, 1  ;;  %v997_v30 = vrot.slane %v996_v1, 2  ;;  %v1005_v37 = vadd.f32 %v1004_v2, %v1003_v55  ;;  %v1013_v20 = vrot.slane %v1012_v3, 4  ;;  %v4470_v55 = vld [vmem:[#allocation8 + $0x38] sm:$0xff]   ;;  %v4478_v2 = vld [vmem:[#allocation8] sm:$0xff]  }
 0x192   : > { %v955_v47 = vadd.f32 %v954_v61, %v953_v57  ;;  %v964_v21 = vadd.f32 %v963_v13, %v962_v58  ;;  %v981_v22 = vrot.slane %v980_v62, 1  ;;  %v990_v63 = vrot.slane %v989_v14, 1  ;;  %v4473_v57 = vld [vmem:[#allocation8 + $0x18] sm:$0xff]   ;;  %v4475_v58 = vld [vmem:[#allocation8 + $0x10] sm:$0xff]   ;;  %4091 = vmatprep.subr.bf16.mxu0 %v4470_v55 }
 0x193   : > { %v973_v26 = vadd.f32 %v972_v15, %v971_v9  ;;  %v998_v27 = vadd.f32 %v997_v30, %v996_v1  ;;  %v1006_v28 = vrot.slane %v1005_v37, 2  ;;  %v1014_v29 = vadd.f32 %v1013_v20, %v1012_v3  ;;  %4092 = vmatpush3.bf16.msra.mxu0 %v4470_v55  ;;  %4115 = vmatprep.subr.bf16.mxu1 %v4473_v57  ;;  %v5461_v9 = vld [vmem:[#allocation8 + $0x58] sm:$0xff]   ;;  %v4477_v1 = vld [vmem:[#allocation8 + $0x8] sm:$0xff]  }
 0x194   : > { %v982_v33 = vadd.f32 %v981_v22, %v980_v62  ;;  %v991_v34 = vadd.f32 %v990_v63, %v989_v14  ;;  %v1027_v35 = vsel %vm6661_vm2, %v964_v21, %v955_v47  ;;  %4093 = vmatprep.subr.bf16.mxu0 %v4471_v56 }
 0x195   : > { %v999_v36 = vrot.slane %v998_v27, 1  ;;  %v1007_v38 = vadd.f32 %v1006_v28, %v1005_v37  ;;  %v1015_v39 = vrot.slane %v1014_v29, 2  ;;  %v1028_v43 = vsel %vm6659_vm3, %v973_v26, %v1027_v35 }
 0x196   : > { %v1029_v44 = vsel %vm6658_vm4, %v982_v33, %v1028_v43  ;;  %v5472_v33 = vld [vmem:[#allocation5] ss:$0 sm:$0xff] }
 0x197   : > { %v1000_v45 = vadd.f32 %v999_v36, %v998_v27  ;;  %v1008_v46 = vrot.slane %v1007_v38, 1  ;;  %v1016_v6 = vadd.f32 %v1015_v39, %v1014_v29  ;;  %v1030_v18 = vsel %vm6657_vm5, %v991_v34, %v1029_v44  ;;  %4094 = vmatpush3.bf16.msra.mxu0 %v4471_v56  ;;  %v5479_v44 = vld [vmem:[#allocation5 + $0x1] ss:$0 sm:$0xff] }
 0x198   : > { %4095 = vmatprep.subr.bf16.mxu0 %v4472_v59 }
 0x199   : > { %v1009_v24 = vadd.f32 %v1008_v46, %v1007_v38  ;;  %v1017_v25 = vrot.slane %v1016_v6, 1  ;;  %v1031_v31 = vsel %vm6656_vm6, %v1000_v45, %v1030_v18 }
 0x19b   : > { %v1018_v32 = vadd.f32 %v1017_v25, %v1016_v6  ;;  %v1032_v42 = vsel %vm6655_vm7, %v1009_v24, %v1031_v31  ;;  %4096 = vmatpush3.bf16.msra.mxu0 %v4472_v59  ;;  %vm6670_vm7 = vcmp.lt.s32.totalorder %v5335_v4, 7 }
 0x19c   : > { %4097 = vmatprep.subr.bf16.mxu0 %v4474_v60 }
 0x19d   : > { %v1033_v52 = vsel %vm6654_vm8, %v1018_v32, %v1032_v42 }
 0x19e   : > { %4089 = vmatmul.mubr.msk.f32.vlgmr.msra.gmra.mxu1 %vm6669_vm1, %v1033_v52 }
 0x19f   : > { %4116 = vmatpush3.bf16.msra.mxu1 %v4473_v57  ;;  %4098 = vmatpush3.bf16.msra.mxu0 %v4474_v60 }
 0x1a0   : > { %4117 = vmatprep.subr.bf16.mxu1 %v4475_v58  ;;  %4139 = vmatprep.subr.bf16.mxu0 %v5461_v9 }
 0x1a3   : > { %4118 = vmatpush3.bf16.msra.mxu1 %v4475_v58 }
 0x1a4   : > { %4119 = vmatprep.subr.bf16.mxu1 %v4477_v1 }
 0x1a7   : > { %4120 = vmatpush3.bf16.msra.mxu1 %v4477_v1 }
 0x1a8   : > { %4121 = vmatprep.subr.bf16.mxu1 %v4478_v2 }
 0x1ab   : > { %4122 = vmatpush3.bf16.msra.mxu1 %v4478_v2 }
 0x1ac   : > { %4163 = vmatprep.subr.mxu1 %v4931_v0 }
 0x25e   : > { %v1102_v3 = vpop.f32.mrf.mxu1 }
 0x25f   : > { %v1103_v61 = vadd.f32 1e-05, %v1102_v3 }
 0x260   : > { %v4090_v13 = vpop.f32.mrf.mxu1 }
 0x261   : > { %4510 = vrsqrt.f32 %v1103_v61 }
 0x26e   : > { %v4511_v62 = vpop.eup %4510 }
 0x26f   : > { %v1108_v14 = vcombine.high %v4511_v62, %v4511_v62  ;;  %v1115_v15 = vrot.slane %v4511_v62, %v5338_v23 }
 0x271   : > { %v1122_v30 = vrot.slane %v1108_v14, %v5338_v23  ;;  %v1123_v37 = vcombine.high %v1115_v15, %v1115_v15  ;;  %v1131_v20 = vrot.slane %v1115_v15, %v5338_v23 }
 0x273   : > { %v1124_v47 = vcombine.high %v1122_v30, %v1122_v30  ;;  %v1138_v21 = vrot.slane %v1122_v30, %v5338_v23  ;;  %v1145_v22 = vrot.slane %v1123_v37, %v5338_v23  ;;  %v1153_v63 = vcombine.high %v1131_v20, %v1131_v20 }
 0x274   : > { %v1160_v26 = vrot.slane %v1131_v20, %v5342_v19 }
 0x275   : > { %v1152_v27 = vrot.slane %v1124_v47, %v5338_v23  ;;  %v1154_v28 = vcombine.high %v1138_v21, %v1138_v21  ;;  %v1155_v29 = vcombine.high %v1145_v22, %v1145_v22  ;;  %v1164_v34 = vrot.slane %v1145_v22, %v5342_v19 }
 0x276   : > { %v1197_v35 = vmul.f32 %v1160_v26, %v5354_v40  ;;  %v1198_v36 = vmul.f32 %v1160_v26, %v5357_v41  ;;  %v1168_v38 = vrot.slane %v1153_v63, %v5342_v19  ;;  %v1176_v39 = vrot.slane %v1138_v21, %v5342_v19 }
 0x277   : > { %v1156_v43 = vcombine.high %v1152_v27, %v1152_v27  ;;  %v1199_v45 = vmul.f32 %v1164_v34, %v5363_v48  ;;  %v1200_v46 = vmul.f32 %v1164_v34, %v5366_v49  ;;  %v1172_v6 = vrot.slane %v1155_v29, %v5342_v19 }
 0x278   : > { %v1217_v18 = vmul.f32 %v5472_v33, %v1197_v35  ;;  %v1218_v24 = vmul.f32 %v5472_v33, %v1198_v36  ;;  %v1201_v40 = vmul.f32 %v1168_v38, %v5369_v50  ;;  %v1202_v41 = vmul.f32 %v1168_v38, %v5372_v5 }
 0x279   : > { %v5489_v25 = vrot.slane %v1156_v43, %v5342_v19  ;;  %v1219_v31 = vmul.f32 %v5472_v33, %v1199_v45  ;;  %v1220_v32 = vmul.f32 %v5472_v33, %v1200_v46  ;;  %v1203_v48 = vmul.f32 %v1172_v6, %v5376_v51 }
 0x27a   : > { %v5495_v49 = vadd.f32 %v5479_v44, %v1217_v18  ;;  %v5498_v42 = vadd.f32 %v5479_v44, %v1218_v24  ;;  %v1221_v52 = vmul.f32 %v5472_v33, %v1201_v40  ;;  %v1222_v50 = vmul.f32 %v5472_v33, %v1202_v41 }
 0x27b   : > { %v5503_v5 = vadd.f32 %v5479_v44, %v1219_v31  ;;  %v5506_v55 = vadd.f32 %v5479_v44, %v1220_v32  ;;  %v1204_v56 = vmul.f32 %v1172_v6, %v5379_v53  ;;  %v1223_v51 = vmul.f32 %v5472_v33, %v1203_v48 }
 0x27c   : > { %v3738_v57 = vmul.f32 -1.442695, %v5495_v49  ;;  %v3739_v58 = vmul.f32 -1.442695, %v5498_v42  ;;  %v5513_v59 = vadd.f32 %v5479_v44, %v1221_v52  ;;  %v5516_v60 = vadd.f32 %v5479_v44, %v1222_v50 }
 0x27d   : > { %v3740_v1 = vmul.f32 -1.442695, %v5503_v5  ;;  %v3741_v2 = vmul.f32 -1.442695, %v5506_v55  ;;  %v1224_v3 = vmul.f32 %v5472_v33, %v1204_v56  ;;  %v5522_v53 = vadd.f32 %v5479_v44, %v1223_v51 }
 0x27e   : > { %4512 = vpow2.f32 %v3738_v57  ;;  %v3742_v61 = vmul.f32 -1.442695, %v5513_v59  ;;  %v3743_v13 = vmul.f32 -1.442695, %v5516_v60  ;;  %v1212_v62 = vmul.f32 %v5489_v25, %v5403_v17 }
 0x27f   : > { %4514 = vpow2.f32 %v3739_v58  ;;  %v5529_v14 = vadd.f32 %v5479_v44, %v1224_v3  ;;  %v3744_v15 = vmul.f32 -1.442695, %v5522_v53  ;;  %v1205_v30 = vmul.f32 %v1176_v39, %v5382_v7 }
 0x280   : > { %4516 = vpow2.f32 %v3740_v1  ;;  %v1232_v37 = vmul.f32 %v5472_v33, %v1212_v62  ;;  %v1206_v20 = vmul.f32 %v1176_v39, %v5385_v8  ;;  %v1180_v47 = vrot.slane %v1152_v27, %v5342_v19 }
 0x281   : > { %4518 = vpow2.f32 %v3741_v2  ;;  %v3745_v21 = vmul.f32 -1.442695, %v5529_v14  ;;  %v1225_v17 = vmul.f32 %v5472_v33, %v1205_v30  ;;  %v1184_v22 = vrot.slane %v1154_v28, %v5342_v19 }
 0x282   : > { %4520 = vpow2.f32 %v3742_v61  ;;  %v5540_v63 = vadd.f32 %v5479_v44, %v1232_v37  ;;  %v1226_v7 = vmul.f32 %v5472_v33, %v1206_v20  ;;  %v1207_v26 = vmul.f32 %v1180_v47, %v5388_v10 }
 0x283   : > { %4522 = vpow2.f32 %v3743_v13  ;;  %v5545_v8 = vadd.f32 %v5479_v44, %v1225_v17  ;;  %v1208_v27 = vmul.f32 %v1180_v47, %v5391_v11  ;;  %v1209_v29 = vmul.f32 %v1184_v22, %v5394_v54 }
 0x284   : > { %4524 = vpow2.f32 %v3744_v15  ;;  %v3753_v34 = vmul.f32 -1.442695, %v5540_v63  ;;  %v5551_v28 = vadd.f32 %v5479_v44, %v1226_v7  ;;  %v1227_v35 = vmul.f32 %v5472_v33, %v1207_v26 }
 0x285   : > { %4526 = vpow2.f32 %v3745_v21  ;;  %v3746_v36 = vmul.f32 -1.442695, %v5545_v8  ;;  %v1228_v10 = vmul.f32 %v5472_v33, %v1208_v27  ;;  %v1210_v38 = vmul.f32 %v1184_v22, %v5397_v12 }
 0x286   : > { %4528 = vpow2.f32 %v3753_v34  ;;  %v3747_v11 = vmul.f32 -1.442695, %v5551_v28  ;;  %v5559_v54 = vadd.f32 %v5479_v44, %v1227_v35  ;;  %v1229_v39 = vmul.f32 %v5472_v33, %v1209_v29 }
 0x287   : > { %4530 = vpow2.f32 %v3746_v36  ;;  %v5563_v43 = vadd.f32 %v5479_v44, %v1228_v10  ;;  %v1230_v45 = vmul.f32 %v5472_v33, %v1210_v38  ;;  %v1211_v40 = vmul.f32 %v5489_v25, %v5400_v16 }
 0x288   : > { %4532 = vpow2.f32 %v3747_v11  ;;  %v3748_v46 = vmul.f32 -1.442695, %v5559_v54  ;;  %v5568_v6 = vadd.f32 %v5479_v44, %v1229_v39  ;;  %v396_v11 = vadd.s32 16, %v5335_v4 }
 0x289   : > { %v3749_v12 = vmul.f32 -1.442695, %v5563_v43  ;;  %v5572_v18 = vadd.f32 %v5479_v44, %v1230_v45  ;;  %v1231_v57 = vmul.f32 %v5472_v33, %v1211_v40  ;;  %v414_v40 = vand.u32 15, %v5335_v4 }
 0x28a   : > { %4534 = vpow2.f32 %v3748_v46  ;;  %v3750_v24 = vmul.f32 -1.442695, %v5568_v6  ;;  %v398_v46 = vadd.s32 32, %v5335_v4 }
 0x28b   : > { %v4513_v41 = vpop.eup %4512  ;;  %4536 = vpow2.f32 %v3749_v12  ;;  %v3751_v31 = vmul.f32 -1.442695, %v5572_v18  ;;  %v5580_v62 = vadd.f32 %v5479_v44, %v1231_v57  ;;  %vm5611_vm9 = vcmp.ne.s32.totalorder %v414_v40, 0 }
 0x28c   : > { %v4515_v32 = vpop.eup %4514  ;;  %v1301_v48 = vadd.f32 1.0, %v4513_v41  ;;  %4538 = vpow2.f32 %v3750_v24  ;;  %v442_v57 = vand.u32 15, %v398_v46 }
 0x28d   : > { %v4517_v52 = vpop.eup %4516  ;;  %v1302_v50 = vadd.f32 1.0, %v4515_v32  ;;  %4540 = vpow2.f32 %v3751_v31  ;;  %v3752_v17 = vmul.f32 -1.442695, %v5580_v62 }
 0x28e   : > { %v4519_v56 = vpop.eup %4518  ;;  %4542 = vrcp.f32 %v1301_v48  ;;  %v1303_v51 = vadd.f32 1.0, %v4517_v52  ;;  %v428_v48 = vand.u32 15, %v396_v11  ;;  %vm5641_vm12 = vcmp.ne.s32.totalorder %v442_v57, 0 }
 0x28f   : > { %v4521_v58 = vpop.eup %4520  ;;  %4544 = vrcp.f32 %v1302_v50  ;;  %v1304_v1 = vadd.f32 1.0, %v4519_v56 }
 0x290   : > { %v4523_v2 = vpop.eup %4522  ;;  %4546 = vrcp.f32 %v1303_v51  ;;  %v1305_v16 = vadd.f32 1.0, %v4521_v58  ;;  %v4479_v51 = vld [vmem:[#allocation8 + $0x50] sm:$0xff]   ;;  %vm5635_vm11 = vcmp.ne.s32.totalorder %v428_v48, 0 }
 0x291   : > { %v4525_v25 = vpop.eup %4524  ;;  %4548 = vrcp.f32 %v1304_v1  ;;  %v1306_v3 = vadd.f32 1.0, %v4523_v2  ;;  %v400_v1 = vadd.s32 48, %v5335_v4 }
 0x292   : > { %v4527_v61 = vpop.eup %4526  ;;  %4550 = vrcp.f32 %v1305_v16  ;;  %v1307_v13 = vadd.f32 1.0, %v4525_v25 }
 0x293   : > { %v4529_v15 = vpop.eup %4528  ;;  %4552 = vrcp.f32 %v1306_v3  ;;  %v1308_v30 = vadd.f32 1.0, %v4527_v61  ;;  %v402_v3 = vadd.s32 64, %v5335_v4 }
 0x294   : > { %v4531_v37 = vpop.eup %4530  ;;  %4554 = vrcp.f32 %v1307_v13  ;;  %v1316_v33 = vadd.f32 1.0, %v4529_v15 }
 0x295   : > { %v4533_v20 = vpop.eup %4532  ;;  %4556 = vrcp.f32 %v1308_v30  ;;  %v1309_v47 = vadd.f32 1.0, %v4531_v37 }
 0x296   : > { %4558 = vrcp.f32 %v1316_v33  ;;  %v1310_v21 = vadd.f32 1.0, %v4533_v20 }
 0x297   : > { %v4535_v22 = vpop.eup %4534  ;;  %4560 = vrcp.f32 %v1309_v47 }
 0x298   : > { %v4537_v7 = vpop.eup %4536  ;;  %4562 = vrcp.f32 %v1310_v21  ;;  %v1311_v26 = vadd.f32 1.0, %v4535_v22 }
 0x299   : > { %v4539_v44 = vpop.eup %4538  ;;  %v1312_v27 = vadd.f32 1.0, %v4537_v7  ;;  %4564 = vpow2.f32 %v3752_v17 }
 0x29a   : > { %v4541_v29 = vpop.eup %4540  ;;  %v1313_v34 = vadd.f32 1.0, %v4539_v44  ;;  %4566 = vrcp.f32 %v1311_v26  ;;  %v456_v44 = vand.u32 15, %v400_v1 }
 0x29b   : > { %v4543_v35 = vpop.eup %4542  ;;  %v1314_v36 = vadd.f32 1.0, %v4541_v29  ;;  %4568 = vrcp.f32 %v1312_v27  ;;  %v470_v27 = vand.u32 15, %v402_v3 }
 0x29c   : > { %v4545_v10 = vpop.eup %4544  ;;  %v5584_v38 = vmul.f32 %v4543_v35, %v5495_v49  ;;  %4570 = vrcp.f32 %v1313_v34  ;;  %vm5678_vm13 = vcmp.ne.s32.totalorder %v456_v44, 0 }
 0x29d   : > { %v4547_v39 = vpop.eup %4546  ;;  %v5588_v45 = vmul.f32 %v4545_v10, %v5498_v42  ;;  %4572 = vrcp.f32 %v1314_v36  ;;  %vm5682_vm14 = vcmp.ne.s32.totalorder %v470_v27, 0 }
 0x29e   : > { %v4549_v12 = vpop.eup %4548  ;;  %v5592_v24 = vmul.f32 %v4547_v39, %v5503_v5  ;;  %v1365_v16 = vrot.slane %v5584_v38, 7 }
 0x29f   : > { %v4551_v41 = vpop.eup %4550  ;;  %v1543_v49 = vpack.c.bf16 %v5588_v45, %v5584_v38  ;;  %v5598_v31 = vmul.f32 %v4549_v12, %v5506_v55  ;;  %v1366_v25 = vrot.slane %v5588_v45, 7 }
 0x2a0   : > { %v4553_v32 = vpop.eup %4552  ;;  %v5601_v42 = vmul.f32 %v4551_v41, %v5513_v59  ;;  %v1367_v5 = vrot.slane %v5592_v24, 7 }
 0x2a1   : > { %v4555_v52 = vpop.eup %4554  ;;  %4099 = vmatprep.mubr.msk.bf16.mxu0 %vm6669_vm1, %v1543_v49  ;;  %v1544_v50 = vpack.c.bf16 %v5598_v31, %v5592_v24  ;;  %v5608_v56 = vmul.f32 %v4553_v32, %v5516_v60  ;;  %v1368_v58 = vrot.slane %v5598_v31, 7  ;;  %v1396_v26 = vsel %vm6660_vm10, %v1365_v16, %v1366_v25  ;;  %v4481_v32 = vld [vmem:[#allocation8 + $0x40] sm:$0xff]  }
 0x2a2   : > { %v4557_v55 = vpop.eup %4556  ;;  %v5625_v13 = vmul.f32 %v4555_v52, %v5522_v53  ;;  %v1369_v37 = vrot.slane %v5601_v42, 7 }
 0x2a3   : > { %v4559_v2 = vpop.eup %4558  ;;  %4100 = vmatmul.mubr.msk.bf16.vlgmr.msra.gmra.mxu0 %vm6669_vm1, %v1544_v50  ;;  %v1545_v60 = vpack.c.bf16 %v5608_v56, %v5601_v42  ;;  %v5628_v15 = vmul.f32 %v4557_v55, %v5529_v14  ;;  %v1370_v14 = vrot.slane %v5608_v56, 7 }
 0x2a4   : > { %v4561_v61 = vpop.eup %4560  ;;  %4140 = vmatpush3.bf16.msra.mxu0 %v5461_v9  ;;  %v5631_v30 = vmul.f32 %v4559_v2, %v5540_v63  ;;  %v1395_v9 = vsel %vm6660_vm10, %v1366_v25, %v1367_v5  ;;  %v4480_v63 = vld [vmem:[#allocation8 + $0x48] sm:$0xff]   ;;  %v1393_v22 = vsel %vm6660_vm10, %v1368_v58, %v1369_v37  ;;  %v1371_v46 = vrot.slane %v5625_v13, 7 }
 0x2a5   : > { %v4563_v33 = vpop.eup %4562  ;;  %4103 = vmatprep.mubr.msk.bf16.mxu0 %vm6669_vm1, %v1545_v60  ;;  %4141 = vmatprep.subr.bf16.mxu0 %v4479_v51  ;;  %v5648_v21 = vmul.f32 %v4561_v61, %v5545_v8  ;;  %v1546_v34 = vpack.c.bf16 %v5628_v15, %v5625_v13  ;;  %v1432_v35 = vsel %vm5635_vm11, %v1395_v9, 0.0  ;;  %v1392_v11 = vsel %vm6660_vm10, %v1369_v37, %v1370_v14 }
 0x2a6   : > { %v1380_v47 = vrot.slane %v5631_v30, 7  ;;  %v5651_v17 = vmul.f32 %v4563_v33, %v5551_v28  ;;  %v4565_v7 = vpop.eup %4564  ;;  %v1394_v28 = vsel %vm6660_vm10, %v1367_v5, %v1368_v58  ;;  %v1434_v39 = vsel %vm5641_vm12, %v1393_v22, 0.0 }
 0x2a7   : > { %v4567_v29 = vpop.eup %4566  ;;  %v1372_v49 = vrot.slane %v5628_v15, 7  ;;  %v1528_v52 = vpack.c.bf16 %v1394_v28, %v1432_v35  ;;  %v1373_v57 = vrot.slane %v5648_v21, 7  ;;  %v1315_v55 = vadd.f32 1.0, %v4565_v7 }
 0x2a8   : > { %v1397_v8 = vsel %vm6660_vm10, %v1380_v47, %v1365_v16  ;;  %4142 = vmatpush3.bf16.msra.mxu0 %v4479_v51  ;;  %v4569_v36 = vpop.eup %4568  ;;  %v1547_v41 = vpack.c.bf16 %v5651_v17, %v5648_v21  ;;  %v1529_v51 = vpack.c.bf16 %v1392_v11, %v1434_v39  ;;  %v404_v58 = vadd.s32 80, %v5335_v4 }
 0x2a9   : > { %v1430_v10 = vsel %vm5611_vm9, %v1397_v8, 0.0  ;;  %4143 = vmatprep.subr.bf16.mxu0 %v4480_v63  ;;  %v4571_v12 = vpop.eup %4570  ;;  %v5692_v1 = vmul.f32 %v4567_v29, %v5559_v54  ;;  %v5695_v2 = vmul.f32 %v4569_v36, %v5563_v43  ;;  %v1391_v16 = vsel %vm6660_vm10, %v1370_v14, %v1371_v46 }
 0x2aa   : > { %v1527_v40 = vpack.c.bf16 %v1396_v26, %v1430_v10  ;;  %v4573_v48 = vpop.eup %4572  ;;  %v406_v25 = vadd.s32 96, %v5335_v4  ;;  %v5702_v60 = vmul.f32 %v4571_v12, %v5568_v6  ;;  %v1389_v54 = vsel %vm6660_vm10, %v1372_v49, %v1373_v57 }
 0x2ab   : > { %4104 = vmatmul.mubr.msk.bf16.gmra.mxu0 %vm6669_vm1, %v1546_v34  ;;  %v5705_v3 = vmul.f32 %v4573_v48, %v5572_v18  ;;  %4574 = vrcp.f32 %v1315_v55  ;;  %v1374_v43 = vrot.slane %v5651_v17, 7  ;;  %v1390_v61 = vsel %vm6660_vm10, %v1371_v46, %v1372_v49 }
 0x2ac   : > { %4123 = vmatprep.mubr.msk.bf16.mxu1 %vm6669_vm1, %v1527_v40  ;;  %4107 = vmatprep.mubr.msk.bf16.mxu0 %vm6669_vm1, %v1547_v41  ;;  %v1436_v37 = vsel %vm5678_vm13, %v1391_v16, 0.0  ;;  %v395_v33 = vadd.s32 8, %v5335_v4  ;;  %v1548_v6 = vpack.c.bf16 %v5695_v2, %v5692_v1  ;;  %v1438_v18 = vsel %vm5682_vm14, %v1389_v54, 0.0 }
 0x2ad   : > { %4124 = vmatmul.mubr.msk.bf16.vlgmr.msra.gmra.mxu1 %vm6669_vm1, %v1528_v52  ;;  %4144 = vmatpush3.bf16.msra.mxu0 %v4480_v63  ;;  %v484_v9 = vand.u32 15, %v404_v58  ;;  %v1375_v14 = vrot.slane %v5692_v1, 7  ;;  %v1549_v63 = vpack.c.bf16 %v5705_v3, %v5702_v60  ;;  %v1376_v22 = vrot.slane %v5695_v2, 7 }
 0x2ae   : > { %4127 = vmatprep.mubr.msk.bf16.mxu1 %vm6669_vm1, %v1529_v51  ;;  %4145 = vmatprep.subr.bf16.mxu0 %v4481_v32  ;;  %v498_v7 = vand.u32 15, %v406_v25  ;;  %v1377_v26 = vrot.slane %v5702_v60, 7  ;;  %v1530_v44 = vpack.c.bf16 %v1390_v61, %v1436_v37  ;;  %v1388_v27 = vsel %vm6660_vm10, %v1373_v57, %v1374_v43 }
 0x2af   : > { %v1531_v29 = vpack.c.bf16 %v1388_v27, %v1438_v18  ;;  %v421_v34 = vand.u32 15, %v395_v33  ;;  %vm5730_vm15 = vcmp.ne.s32.totalorder %v484_v9, 0  ;;  %v1387_v28 = vsel %vm6660_vm10, %v1374_v43, %v1375_v14 }
 0x2b0   : > { %v1448_v35 = vrot.slane %v5592_v24, 1  ;;  %v1378_v36 = vrot.slane %v5705_v3, 7  ;;  %vm5739_vm8 = vcmp.ne.s32.totalorder %v498_v7, 0  ;;  %v1385_v11 = vsel %vm6660_vm10, %v1376_v22, %v1377_v26 }
 0x2b1   : > { %4146 = vmatpush3.bf16.msra.mxu0 %v4481_v32  ;;  %v408_v39 = vadd.s32 112, %v5335_v4  ;;  %v1447_v46 = vrot.slane %v5588_v45, 1  ;;  %v397_v12 = vadd.s32 24, %v5335_v4  ;;  %v1386_v24 = vsel %vm6660_vm10, %v1375_v14, %v1376_v22 }
 0x2b2   : > { %4198 = vmatprep.subr.mxu0 %v4931_v0  ;;  %v1440_v40 = vsel %vm5730_vm15, %v1387_v28, 0.0  ;;  %v399_v41 = vadd.s32 40, %v5335_v4  ;;  %vm5754_vm6 = vcmp.ne.s32.totalorder %v421_v34, 15  ;;  %v1384_v45 = vsel %vm6660_vm10, %v1377_v26, %v1378_v36 }
 0x2b3   : > { %4108 = vmatmul.mubr.msk.bf16.gmra.mxu0 %vm6669_vm1, %v1548_v6  ;;  %v1476_v32 = vsel %vm6670_vm7, %v1447_v46, %v1448_v35  ;;  %v1442_v48 = vsel %vm5739_vm8, %v1385_v11, 0.0  ;;  %v1446_v52 = vrot.slane %v5584_v38, 1  ;;  %v512_v51 = vand.u32 15, %v408_v39  ;;  %v2062_v38 = vld [vmem:[#allocation10 + $0x70] sm:$0xff] }
 0x2b4   : > { %4111 = vmatprep.mubr.msk.bf16.mxu0 %vm6669_vm1, %v1549_v63  ;;  %v1449_v55 = vrot.slane %v5598_v31, 1  ;;  %v1532_v58 = vpack.c.bf16 %v1386_v24, %v1440_v40  ;;  %v435_v16 = vand.u32 15, %v397_v12  ;;  %v1450_v25 = vrot.slane %v5601_v42, 1 }
 0x2b5   : > { %4128 = vmatmul.mubr.msk.bf16.gmra.mxu1 %vm6669_vm1, %v1530_v44  ;;  %v1512_v43 = vsel %vm5754_vm6, %v1476_v32, 0.0  ;;  %v1533_v61 = vpack.c.bf16 %v1384_v45, %v1442_v48  ;;  %v449_v37 = vand.u32 15, %v399_v41  ;;  %v1452_v33 = vrot.slane %v5625_v13, 1 }
 0x2b6   : > { %4131 = vmatprep.mubr.msk.bf16.mxu1 %vm6669_vm1, %v1531_v29  ;;  %v1477_v31 = vsel %vm6670_vm7, %v1446_v52, %v1447_v46  ;;  %vm5781_vm5 = vcmp.ne.s32.totalorder %v512_v51, 0  ;;  %v1451_v9 = vrot.slane %v5608_v56, 1  ;;  %v401_v13 = vadd.s32 56, %v5335_v4 }
 0x2b7   : > { %v1850_v18 = vpack.c.bf16 %v1512_v43, %v1477_v31  ;;  %vm5789_vm4 = vcmp.ne.s32.totalorder %v435_v16, 15  ;;  %v6717_v14 = vmov 0  ;;  %v1474_v63 = vsel %vm6670_vm7, %v1449_v55, %v1450_v25 }
 0x2b8   : > { %v4575_v57 = vpop.eup %4574  ;;  %v6718_v14 = vsel %vm5789_vm4, 4294967295, %v6717_v14  ;;  %vm5804_vm3 = vcmp.ne.s32.totalorder %v449_v37, 15  ;;  %v6720_v26 = vmov 0  ;;  %v1472_v44 = vsel %vm6670_vm7, %v1451_v9, %v1452_v33 }
 0x2b9   : > { %v5768_v54 = vmul.f32 %v4575_v57, %v5580_v62  ;;  %6719 = vst [vmem:[#allocation20_spill] sm:$0xff] %v6718_v14  ;;  %v6721_v26 = vsel %vm5804_vm3, 4294967295, %v6720_v26  ;;  %v403_v27 = vadd.s32 72, %v5335_v4  ;;  %v1514_v29 = vsel %vm5789_vm4, %v1474_v63, 0.0 }
 0x2ba   : > { %6722 = vst [vmem:[#allocation21_spill] sm:$0xff] %v6721_v26  ;;  %v1516_v28 = vsel %vm5804_vm3, %v1472_v44, 0.0  ;;  %v1453_v11 = vrot.slane %v5628_v15, 1  ;;  %v1456_v46 = vrot.slane %v5692_v1, 1  ;;  %v1473_v24 = vsel %vm6670_vm7, %v1450_v25, %v1451_v9 }
 0x2bb   : > { %v1550_v6 = vpack.c.bf16 %v5631_v30, %v5768_v54  ;;  %v1379_v42 = vrot.slane %v5768_v54, 7  ;;  %v477_v39 = vand.u32 15, %v403_v27  ;;  %v1852_v40 = vpack.c.bf16 %v1516_v28, %v1473_v24  ;;  %v2060_v28 = vld [vmem:[#allocation10 + $0x60] sm:$0xff]  ;;  %v2054_v24 = vld [vmem:[#allocation10 + $0x30] sm:$0xff] }
 0x2bc   : > { %v1455_v41 = vrot.slane %v5651_v17, 1  ;;  %v6723_v15 = vmov 0  ;;  %v405_v32 = vadd.s32 88, %v5335_v4  ;;  %v407_v45 = vadd.s32 104, %v5335_v4 }
 0x2bd   : > { %4132 = vmatmul.mubr.msk.bf16.gmra.mxu1 %vm6669_vm1, %v1532_v58  ;;  %4112 = vmatmul.mubr.msk.bf16.gmra.mxu0 %vm6669_vm1, %v1550_v6  ;;  %v1382_v22 = vsel %vm6660_vm10, %v1379_v42, %v1380_v47  ;;  %v1383_v7 = vsel %vm6660_vm10, %v1378_v36, %v1379_v42  ;;  %v1475_v47 = vsel %vm6670_vm7, %v1448_v35, %v1449_v55  ;;  %v463_v36 = vand.u32 15, %v401_v13 }
 0x2be   : > { %4135 = vmatprep.mubr.msk.bf16.mxu1 %vm6669_vm1, %v1533_v61  ;;  %4147 = vmatprep.mubr.msk.bf16.mxu0 %vm6669_vm1, %v1850_v18  ;;  %v1444_v56 = vsel %vm5781_vm5, %v1383_v7, 0.0  ;;  %v1851_v12 = vpack.c.bf16 %v1514_v29, %v1475_v47  ;;  %v1454_v35 = vrot.slane %v5648_v21, 1  ;;  %vm5835_vm2 = vcmp.ne.s32.totalorder %v477_v39, 15  ;;  %v2057_v39 = vld [vmem:[#allocation10 + $0x48] sm:$0xff] }
 0x2bf   : > { %v1534_v34 = vpack.c.bf16 %v1382_v22, %v1444_v56  ;;  %vm5827_vm10 = vcmp.ne.s32.totalorder %v463_v36, 15  ;;  %v6726_v21 = vmov 0  ;;  %v1468_v17 = vsel %vm6670_vm7, %v1455_v41, %v1456_v46  ;;  %v2059_v36 = vld [vmem:[#allocation10 + $0x58] sm:$0xff] }
 0x2c0   : > { %v6724_v15 = vsel %vm5827_vm10, 4294967295, %v6723_v15  ;;  %v1470_v1 = vsel %vm6670_vm7, %v1453_v11, %v1454_v35  ;;  %v6727_v21 = vsel %vm5835_vm2, 4294967295, %v6726_v21  ;;  %v1471_v48 = vsel %vm6670_vm7, %v1452_v33, %v1453_v11  ;;  %v2058_v11 = vld [vmem:[#allocation10 + $0x50] sm:$0xff] }
 0x2c1   : > { %6725 = vst [vmem:[#allocation22_spill] sm:$0xff] %v6724_v15  ;;  %6728 = vst [vmem:[#allocation23_spill] sm:$0xff] %v6727_v21  ;;  %v1518_v51 = vsel %vm5827_vm10, %v1470_v1, 0.0  ;;  %v1520_v57 = vsel %vm5835_vm2, %v1468_v17, 0.0  ;;  %v491_v55 = vand.u32 15, %v405_v32  ;;  %v1457_v58 = vrot.slane %v5695_v2, 1 }
 0x2c2   : > { %v1458_v16 = vrot.slane %v5702_v60, 1  ;;  %v505_v25 = vand.u32 15, %v407_v45  ;;  %v1460_v43 = vrot.slane %v5768_v54, 1  ;;  %v1853_v61 = vpack.c.bf16 %v1518_v51, %v1471_v48  ;;  %v2050_v1 = vld [vmem:[#allocation10 + $0x10] sm:$0xff]  ;;  %v2049_v32 = vld [vmem:[#allocation10 + $0x8] sm:$0xff]  ;;  %v2048_v17 = vld [vmem:[#allocation10] sm:$0xff] }
 0x2c3   : > { %v1469_v37 = vsel %vm6670_vm7, %v1454_v35, %v1455_v41  ;;  %v1459_v33 = vrot.slane %v5705_v3, 1  ;;  %v6729_v31 = vmov 0  ;;  %v409_v60 = vadd.s32 120, %v5335_v4  ;;  %v2053_v35 = vld [vmem:[#allocation10 + $0x28] sm:$0xff]  ;;  %v2051_v41 = vld [vmem:[#allocation10 + $0x18] sm:$0xff] }
 0x2c4   : > { %v1854_v6 = vpack.c.bf16 %v1520_v57, %v1469_v37  ;;  %v1466_v2 = vsel %vm6670_vm7, %v1457_v58, %v1458_v16  ;;  %vm5863_vm2 = vcmp.ne.s32.totalorder %v505_v25, 15  ;;  %v6732_v54 = vmov 0 }
 0x2c5   : > { %4136 = vmatmul.mubr.msk.bf16.gmra.mxu1 %vm6669_vm1, %v1534_v34  ;;  %4148 = vmatmul.mubr.msk.bf16.vlgmr.msra.gmra.mxu0 %vm6669_vm1, %v1851_v12  ;;  %v6733_v54 = vsel %vm5863_vm2, 4294967295, %v6732_v54  ;;  %v1464_v3 = vsel %vm6670_vm7, %v1459_v33, %v1460_v43  ;;  %v1467_v42 = vsel %vm6670_vm7, %v1456_v46, %v1457_v58  ;;  %v519_v13 = vand.u32 15, %v409_v60  ;;  %v2063_v34 = vld [vmem:[#allocation10 + $0x78] sm:$0xff]  ;;  %v2056_v46 = vld [vmem:[#allocation10 + $0x40] sm:$0xff] }
 0x2c6   : > { %4195 = vmatprep.mubr.msk.f32.mxu1 %vm6662_vm0, %v4931_v0  ;;  %4151 = vmatprep.mubr.msk.bf16.mxu0 %vm6669_vm1, %v1852_v40  ;;  %vm5855_vm0 = vcmp.ne.s32.totalorder %v491_v55, 15  ;;  %6734 = vst [vmem:[#allocation25_spill] sm:$0xff] %v6733_v54  ;;  %v1524_v9 = vsel %vm5863_vm2, %v1464_v3, 0.0  ;;  %v1461_v63 = vrot.slane %v5631_v30, 1  ;;  %v1465_v7 = vsel %vm6670_vm7, %v1458_v16, %v1459_v33  ;;  %v2055_v12 = vld [vmem:[#allocation10 + $0x38] sm:$0xff]  ;;  %v2052_v40 = vld [vmem:[#allocation10 + $0x20] sm:$0xff] }
 0x2c7   : > { %v6730_v31 = vsel %vm5855_vm0, 4294967295, %v6729_v31  ;;  %v1522_v18 = vsel %vm5855_vm0, %v1466_v2, 0.0  ;;  %v1856_v56 = vpack.c.bf16 %v1524_v9, %v1465_v7  ;;  %vm5879_vm10 = vcmp.ne.s32.totalorder %v519_v13, 15  ;;  %4164 = vmatpush3.msra.mxu1 %v2063_v34  ;;  %4199 = vmatpush3.msra.mxu0 %v2063_v34 }
 0x2c8   : > { %6731 = vst [vmem:[#allocation24_spill] sm:$0xff] %v6730_v31  ;;  %v1855_v22 = vpack.c.bf16 %v1522_v18, %v1467_v42  ;;  %v6735_v44 = vmov 0  ;;  %v1478_v27 = vsel %vm6670_vm7, %v1461_v63, %v1446_v52  ;;  %v1463_v30 = vsel %vm6670_vm7, %v1460_v43, %v1461_v63  ;;  %4165 = vmatprep.subr.mxu1 %v4931_v0  ;;  %v2061_v52 = vld [vmem:[#allocation10 + $0x68] sm:$0xff] }
 0x2c9   : > { %v6736_v44 = vsel %vm5879_vm10, 4294967295, %v6735_v44  ;;  %v1526_v47 = vsel %vm5879_vm10, %v1478_v27, 0.0  ;;  %vm6738_vm2 = vmmov 0   ;;  %4200 = vmatprep.subr.mxu0 %v4931_v0  ;;  %4166 = vmatpush3.msra.mxu1 %v2062_v38  ;;  %vm6741_vm7 = vcmask 1043459  }
 0x2ca   : > { %6737 = vst [vmem:[#allocation26_spill] sm:$0xff] %v6736_v44  ;;  %v1857_v29 = vpack.c.bf16 %v1526_v47, %v1463_v30  ;;  %4201 = vmatpush3.msra.mxu0 %v2062_v38  ;;  %4167 = vmatprep.subr.mxu1 %v4931_v0  ;;  %vm6742_vm10 = vcmask 1044484   ;;  %vm6743_vm0 = vcmask 1045509   ;;  %vm6751_vm3 = vcmask 1046534  }
 0x2cb   : > { %4202 = vmatprep.subr.mxu0 %v4931_v0  ;;  %4168 = vmatpush3.msra.mxu1 %v2061_v52  ;;  %vm6752_vm4 = vcmask 1047559  }
 0x2cc   : > { %4203 = vmatpush3.msra.mxu0 %v2061_v52  ;;  %4169 = vmatprep.subr.mxu1 %v4931_v0 }
 0x2cd   : > { %4152 = vmatmul.mubr.msk.bf16.gmra.mxu0 %vm6669_vm1, %v1853_v61  ;;  %4204 = vmatprep.subr.mxu0 %v4931_v0 }
 0x2ce   : > { %4155 = vmatprep.mubr.msk.bf16.mxu0 %vm6669_vm1, %v1854_v6  ;;  %4170 = vmatpush3.msra.mxu1 %v2060_v28 }
 0x2cf   : > { %4205 = vmatpush3.msra.mxu0 %v2060_v28  ;;  %4171 = vmatprep.subr.mxu1 %v4931_v0 }
 0x2d0   : > { %4206 = vmatprep.subr.mxu0 %v4931_v0  ;;  %4172 = vmatpush3.msra.mxu1 %v2059_v36 }
 0x2d1   : > { %4207 = vmatpush3.msra.mxu0 %v2059_v36  ;;  %4173 = vmatprep.subr.mxu1 %v4931_v0 }
 0x2d2   : > { %4208 = vmatprep.subr.mxu0 %v4931_v0  ;;  %4174 = vmatpush3.msra.mxu1 %v2058_v11 }
 0x2d3   : > { %4209 = vmatpush3.msra.mxu0 %v2058_v11  ;;  %4175 = vmatprep.subr.mxu1 %v4931_v0 }
 0x2d4   : > { %4210 = vmatprep.subr.mxu0 %v4931_v0  ;;  %4176 = vmatpush3.msra.mxu1 %v2057_v39 }
 0x2d5   : > { %4156 = vmatmul.mubr.msk.bf16.gmra.mxu0 %vm6669_vm1, %v1855_v22  ;;  %4177 = vmatprep.subr.mxu1 %v4931_v0 }
 0x2d6   : > { %4159 = vmatprep.mubr.msk.bf16.mxu0 %vm6669_vm1, %v1856_v56  ;;  %4211 = vmatpush3.msra.mxu0 %v2057_v39 }
 0x2d7   : > { %4212 = vmatprep.subr.mxu0 %v4931_v0  ;;  %4178 = vmatpush3.msra.mxu1 %v2056_v46 }
 0x2d8   : > { %4213 = vmatpush3.msra.mxu0 %v2056_v46  ;;  %4179 = vmatprep.subr.mxu1 %v4931_v0 }
 0x2d9   : > { %4214 = vmatprep.subr.mxu0 %v4931_v0  ;;  %4180 = vmatpush3.msra.mxu1 %v2055_v12 }
 0x2da   : > { %4215 = vmatpush3.msra.mxu0 %v2055_v12  ;;  %4181 = vmatprep.subr.mxu1 %v4931_v0 }
 0x2db   : > { %4216 = vmatprep.subr.mxu0 %v4931_v0  ;;  %4182 = vmatpush3.msra.mxu1 %v2054_v24 }
 0x2dc   : > { %4217 = vmatpush3.msra.mxu0 %v2054_v24  ;;  %4183 = vmatprep.subr.mxu1 %v4931_v0  ;;  %v5933_v24 = vld [vmem:[#allocation5 + $0x2] ss:$0 sm:$0xff] }
 0x2dd   : > { %4160 = vmatmul.mubr.msk.bf16.gmra.mxu0 %vm6669_vm1, %v1857_v29  ;;  %4218 = vmatprep.subr.mxu0 %v4931_v0  ;;  %vm6740_vm1 = vcmask 1042434  }
 0x2de   : > { %4230 = vmatprep.mubr.msk.f32.mxu0 %vm6738_vm2, %v4931_v0  ;;  %4184 = vmatpush3.msra.mxu1 %v2053_v35  ;;  %vm6739_vm2 = vcmask 1041409  }
 0x2df   : > { %4219 = vmatpush3.msra.mxu0 %v2053_v35  ;;  %4185 = vmatprep.subr.mxu1 %v4931_v0 }
 0x2e0   : > { %4220 = vmatprep.subr.mxu0 %v4931_v0  ;;  %4186 = vmatpush3.msra.mxu1 %v2052_v40 }
 0x2e1   : > { %4221 = vmatpush3.msra.mxu0 %v2052_v40  ;;  %4187 = vmatprep.subr.mxu1 %v4931_v0 }
 0x2e2   : > { %4222 = vmatprep.subr.mxu0 %v4931_v0  ;;  %4188 = vmatpush3.msra.mxu1 %v2051_v41 }
 0x2e3   : > { %4223 = vmatpush3.msra.mxu0 %v2051_v41  ;;  %4189 = vmatprep.subr.mxu1 %v4931_v0 }
 0x2e4   : > { %4224 = vmatprep.subr.mxu0 %v4931_v0  ;;  %4190 = vmatpush3.msra.mxu1 %v2050_v1 }
 0x2e5   : > { %4225 = vmatpush3.msra.mxu0 %v2050_v1  ;;  %4191 = vmatprep.subr.mxu1 %v4931_v0 }
 0x2e6   : > { %4226 = vmatprep.subr.mxu0 %v4931_v0  ;;  %4192 = vmatpush3.msra.mxu1 %v2049_v32 }
 0x2e7   : > { %4227 = vmatpush3.msra.mxu0 %v2049_v32  ;;  %4193 = vmatprep.subr.mxu1 %v4931_v0 }
 0x2e8   : > { %4228 = vmatprep.subr.mxu0 %v4931_v0  ;;  %4194 = vmatpush3.msra.mxu1 %v2048_v17 }
 0x2e9   : > { %4229 = vmatpush3.msra.mxu0 %v2048_v17 }
 0x363   : > { %v4101_v45 = vpop.f32.mrf.mxu0 }
 0x365   : > { %v1642_v48 = vpop.f32.mrf.mxu0 }
 0x367   : > { %v4102_v51 = vpop.f32.mrf.mxu0 }
 0x369   : > { %v1645_v57 = vpop.f32.mrf.mxu0 }
 0x36b   : > { %v4105_v55 = vpop.f32.mrf.mxu0 }
 0x36d   : > { %v4125_v58 = vpop.f32.mrf.mxu1  ;;  %v1658_v16 = vpop.f32.mrf.mxu0 }
 0x36e   : > { %v1796_v28 = vadd.f32 %v4125_v58, %v4101_v45 }
 0x36f   : > { %v1787_v25 = vpop.f32.mrf.mxu1  ;;  %v4106_v43 = vpop.f32.mrf.mxu0 }
 0x370   : > { %v1788_v29 = vadd.f32 %v1787_v25, %v1642_v48 }
 0x371   : > { %v4126_v61 = vpop.f32.mrf.mxu1  ;;  %v1661_v37 = vpop.f32.mrf.mxu0 }
 0x372   : > { %v1799_v34 = vadd.f32 %v4126_v61, %v4102_v51 }
 0x373   : > { %v1790_v6 = vpop.f32.mrf.mxu1  ;;  %v4109_v33 = vpop.f32.mrf.mxu0 }
 0x374   : > { %v1791_v52 = vadd.f32 %v1790_v6, %v1645_v57 }
 0x375   : > { %v1674_v2 = vpop.f32.mrf.mxu0  ;;  %v4129_v60 = vpop.f32.mrf.mxu1 }
 0x376   : > { %v1812_v1 = vadd.f32 %v4129_v60, %v4105_v55 }
 0x377   : > { %v4110_v3 = vpop.f32.mrf.mxu0  ;;  %v1803_v42 = vpop.f32.mrf.mxu1 }
 0x378   : > { %v1804_v51 = vadd.f32 %v1803_v42, %v1658_v16 }
 0x379   : > { %v1677_v0 = vpop.f32.mrf.mxu0  ;;  %v4130_v18 = vpop.f32.mrf.mxu1 }
 0x37a   : > { %v1815_v57 = vadd.f32 %v4130_v18, %v4106_v43 }
 0x37b   : > { %v1806_v13 = vpop.f32.mrf.mxu1 }
 0x37d   : > { %v5925_v9 = vpop.f32.mrf.mxu0  ;;  %v4133_v7 = vpop.f32.mrf.mxu1 }
 0x37f   : > { %v5927_v63 = vpop.f32.mrf.mxu0  ;;  %v1819_v30 = vpop.f32.mrf.mxu1 }
 0x381   : > { %v5929_v22 = vpop.f32.mrf.mxu0  ;;  %v4134_v36 = vpop.f32.mrf.mxu1 }
 0x383   : > { %v5931_v56 = vpop.f32.mrf.mxu0  ;;  %v1822_v32 = vpop.f32.mrf.mxu1 }
 0x385   : > { %v4149_v27 = vpop.f32.mrf.mxu0 }
 0x386   : > { %v2014_v35 = vadd.f32 %v4149_v27, %v1796_v28  ;;  %v1807_v27 = vadd.f32 %v1806_v13, %v1661_v37  ;;  %v1828_v13 = vadd.f32 %v4133_v7, %v4109_v33 }
 0x387   : > { %v1949_v47 = vpop.f32.mrf.mxu0 }
 0x388   : > { %v2012_v11 = vadd.f32 %v1949_v47, %v1788_v29  ;;  %v5945_v58 = vadd.f32 %v5933_v24, %v2014_v35  ;;  %v4137_v47 = vpop.f32.mrf.mxu1 }
 0x389   : > { %v4150_v38 = vpop.f32.mrf.mxu0 }
 0x38a   : > { %v2015_v39 = vadd.f32 %v4150_v38, %v1799_v34  ;;  %v5939_v17 = vadd.f32 %v5933_v24, %v2012_v11  ;;  %v1835_v28 = vpop.f32.mrf.mxu1 }
 0x38b   : > { %v1952_v46 = vpop.f32.mrf.mxu0 }
 0x38c   : > { %v2013_v12 = vadd.f32 %v1952_v46, %v1791_v52  ;;  %v5942_v48 = vadd.f32 %v5933_v24, %v2015_v39 }
 0x38d   : > { %v4153_v40 = vpop.f32.mrf.mxu0 }
 0x38e   : > { %v5936_v41 = vadd.f32 %v5933_v24, %v2013_v12  ;;  %v2018_v61 = vadd.f32 %v4153_v40, %v1812_v1  ;;  %v2071_v29 = vadd.f32 %v5942_v48, %v5945_v58  ;;  %v1820_v12 = vadd.f32 %v1819_v30, %v1674_v2 }
 0x38f   : > { %v1965_v45 = vpop.f32.mrf.mxu0  ;;  %v1831_v40 = vadd.f32 %v4134_v36, %v4110_v3 }
 0x390   : > { %v2064_v25 = vadd.f32 %v5936_v41, %v5939_v17  ;;  %v2016_v55 = vadd.f32 %v1965_v45, %v1804_v51  ;;  %v5955_v42 = vadd.f32 %v5933_v24, %v2018_v61  ;;  %v2072_v11 = vrot.slane %v2071_v29, 4 }
 0x391   : > { %v4154_v6 = vpop.f32.mrf.mxu0 }
 0x392   : > { %v2019_v60 = vadd.f32 %v4154_v6, %v1815_v57  ;;  %v2065_v43 = vrot.slane %v2064_v25, 4  ;;  %v5958_v52 = vadd.f32 %v5933_v24, %v2016_v55  ;;  %v1823_v57 = vadd.f32 %v1822_v32, %v1677_v0  ;;  %v4138_v55 = vpop.f32.mrf.mxu1 }
 0x393   : > { %v1968_v34 = vpop.f32.mrf.mxu0 }
 0x394   : > { %v5952_v38 = vadd.f32 %v5933_v24, %v2019_v60  ;;  %v2017_v16 = vadd.f32 %v1968_v34, %v1807_v27  ;;  %v2066_v1 = vadd.f32 %v2065_v43, %v2064_v25  ;;  %v2073_v27 = vadd.f32 %v2072_v11, %v2071_v29  ;;  %v1838_v43 = vpop.f32.mrf.mxu1 }
 0x395   : > { %v4157_v18 = vpop.f32.mrf.mxu0  ;;  %v1844_v25 = vadd.f32 %v4137_v47, %v5925_v9  ;;  %v1839_v9 = vadd.f32 %v1838_v43, %v5931_v56 }
 0x396   : > { %v5961_v37 = vadd.f32 %v5933_v24, %v2017_v16  ;;  %v2085_v39 = vadd.f32 %v5952_v38, %v5955_v42  ;;  %v2022_v45 = vadd.f32 %v4157_v18, %v1828_v13  ;;  %v2067_v44 = vrot.slane %v2066_v1, 2 }
 0x397   : > { %v1981_v46 = vpop.f32.mrf.mxu0  ;;  %v2074_v29 = vrot.slane %v2073_v27, 2 }
 0x398   : > { %v2078_v35 = vadd.f32 %v5961_v37, %v5958_v52  ;;  %v2020_v6 = vadd.f32 %v1981_v46, %v1820_v12  ;;  %v2086_v33 = vrot.slane %v2085_v39, 4  ;;  %v5968_v2 = vadd.f32 %v5933_v24, %v2022_v45 }
 0x399   : > { %v4158_v51 = vpop.f32.mrf.mxu0  ;;  %v1836_v46 = vadd.f32 %v1835_v28, %v5927_v63 }
 0x39a   : > { %v2079_v61 = vrot.slane %v2078_v35, 4  ;;  %v2023_v7 = vadd.f32 %v4158_v51, %v1831_v40  ;;  %v5974_v0 = vadd.f32 %v5933_v24, %v2020_v6  ;;  %v2087_v18 = vadd.f32 %v2086_v33, %v2085_v39 }
 0x39b   : > { %v1984_v60 = vpop.f32.mrf.mxu0  ;;  %v2068_v40 = vadd.f32 %v2067_v44, %v2066_v1  ;;  %v2075_v6 = vadd.f32 %v2074_v29, %v2073_v27 }
 0x39c   : > { %v2080_v34 = vadd.f32 %v2079_v61, %v2078_v35  ;;  %v2021_v16 = vadd.f32 %v1984_v60, %v1823_v57  ;;  %v5971_v30 = vadd.f32 %v5933_v24, %v2023_v7  ;;  %v1847_v35 = vadd.f32 %v4138_v55, %v5929_v22 }
 0x39d   : > { %v4161_v3 = vpop.f32.mrf.mxu0  ;;  %v2088_v33 = vrot.slane %v2087_v18, 2  ;;  %v2069_v54 = vrot.slane %v2068_v40, 1  ;;  %v2076_v55 = vrot.slane %v2075_v6, 1 }
 0x39e   : > { %v2081_v36 = vrot.slane %v2080_v34, 2  ;;  %v5977_v32 = vadd.f32 %v5933_v24, %v2021_v16  ;;  %v2099_v13 = vadd.f32 %v5971_v30, %v5968_v2  ;;  %v2026_v51 = vadd.f32 %v4161_v3, %v1844_v25 }
 0x39f   : > { %v1997_v11 = vpop.f32.mrf.mxu0  ;;  %v2070_v43 = vadd.f32 %v2069_v54, %v2068_v40 }
 0x3a0   : > { %v2092_v12 = vadd.f32 %v5977_v32, %v5974_v0  ;;  %v2100_v45 = vrot.slane %v2099_v13, 4  ;;  %v2082_v47 = vadd.f32 %v2081_v36, %v2080_v34  ;;  %v2024_v39 = vadd.f32 %v1997_v11, %v1836_v46 }
 0x3a1   : > { %v4162_v57 = vpop.f32.mrf.mxu0  ;;  %v5988_v31 = vadd.f32 %v5933_v24, %v2026_v51  ;;  %v2089_v34 = vadd.f32 %v2088_v33, %v2087_v18 }
 0x3a2   : > { %v2093_v61 = vrot.slane %v2092_v12, 4  ;;  %v2101_v7 = vadd.f32 %v2100_v45, %v2099_v13  ;;  %v2027_v60 = vadd.f32 %v4162_v57, %v1847_v35  ;;  %v2083_v22 = vrot.slane %v2082_v47, 1 }
 0x3a3   : > { %v2000_v16 = vpop.f32.mrf.mxu0  ;;  %v5994_v56 = vadd.f32 %v5933_v24, %v2024_v39  ;;  %v2077_v35 = vadd.f32 %v2076_v55, %v2075_v6  ;;  %v2090_v45 = vrot.slane %v2089_v34, 1 }
 0x3a4   : > { %v2094_v63 = vadd.f32 %v2093_v61, %v2092_v12  ;;  %v2025_v28 = vadd.f32 %v2000_v16, %v1839_v9  ;;  %v5991_v44 = vadd.f32 %v5933_v24, %v2027_v60  ;;  %v2102_v3 = vrot.slane %v2101_v7, 2 }
 0x3a5   : > { %v2084_v11 = vadd.f32 %v2083_v22, %v2082_v47  ;;  %v2128_v18 = vsel %vm6739_vm2, %v2077_v35, %v2070_v43  ;;  %v2091_v60 = vadd.f32 %v2090_v45, %v2089_v34  ;;  %vm6744_vm2 = vcmask 1046534  }
 0x3a6   : > { %v2095_v1 = vrot.slane %v2094_v63, 2  ;;  %v5997_v27 = vadd.f32 %v5933_v24, %v2025_v28  ;;  %v2113_v36 = vadd.f32 %v5991_v44, %v5988_v31  ;;  %v2103_v51 = vadd.f32 %v2102_v3, %v2101_v7 }
 0x3a7   : > { %v2129_v61 = vsel %vm6740_vm1, %v2084_v11, %v2128_v18  ;;  %vm6745_vm1 = vcmask 1047559  }
 0x3a8   : > { %v2096_v25 = vadd.f32 %v2095_v1, %v2094_v63  ;;  %v2106_v29 = vadd.f32 %v5997_v27, %v5994_v56  ;;  %v2114_v13 = vrot.slane %v2113_v36, 4  ;;  %v2104_v16 = vrot.slane %v2103_v51, 1 }
 0x3a9   : > { %v2130_v47 = vsel %vm6741_vm7, %v2091_v60, %v2129_v61  ;;  %vm6747_vm7 = vcmask 1042434  }
 0x3aa   : > { %v2097_v46 = vrot.slane %v2096_v25, 1  ;;  %v2107_v12 = vrot.slane %v2106_v29, 4  ;;  %v2115_v24 = vadd.f32 %v2114_v13, %v2113_v36  ;;  %v2105_v7 = vadd.f32 %v2104_v16, %v2103_v51 }
 0x3ac   : > { %v2108_v57 = vadd.f32 %v2107_v12, %v2106_v29  ;;  %v2116_v9 = vrot.slane %v2115_v24, 2  ;;  %v2098_v39 = vadd.f32 %v2097_v46, %v2096_v25 }
 0x3ae   : > { %v2109_v33 = vrot.slane %v2108_v57, 2  ;;  %v2117_v63 = vadd.f32 %v2116_v9, %v2115_v24  ;;  %v2131_v6 = vsel %vm6742_vm10, %v2098_v39, %v2130_v47  ;;  %vm6748_vm10 = vcmask 1043459  }
 0x3af   : > { %v2132_v55 = vsel %vm6743_vm0, %v2105_v7, %v2131_v6  ;;  %vm6746_vm0 = vcmask 1041409  }
 0x3b0   : > { %v2110_v54 = vadd.f32 %v2109_v33, %v2108_v57  ;;  %v2118_v40 = vrot.slane %v2117_v63, 1 }
 0x3b2   : > { %v2111_v28 = vrot.slane %v2110_v54, 1  ;;  %v2119_v1 = vadd.f32 %v2118_v40, %v2117_v63 }
 0x3b4   : > { %v2112_v22 = vadd.f32 %v2111_v28, %v2110_v54 }
 0x3b6   : > { %v2133_v3 = vsel %vm6744_vm2, %v2112_v22, %v2132_v55  ;;  %vm6749_vm2 = vcmask 1044484  }
 0x3b7   : > { %v2134_v36 = vsel %vm6745_vm1, %v2119_v1, %v2133_v3  ;;  %vm6750_vm1 = vcmask 1045509  }
 0x3b8   : > { %4196 = vmatmul.mubr.f32.vlgmr.msra.gmra.mxu1 %v2134_v36 }
 0x478   : > { %v2202_v34 = vpop.f32.mrf.mxu1 }
 0x479   : > { %v2207_v25 = vcombine.high %v2202_v34, %v2202_v34  ;;  %v2214_v29 = vrot.slane %v2202_v34, %v5338_v23 }
 0x47a   : > { %v4197_v43 = vpop.f32.mrf.mxu1 }
 0x47b   : > { %v2221_v13 = vrot.slane %v2207_v25, %v5338_v23  ;;  %v2222_v11 = vcombine.high %v2214_v29, %v2214_v29  ;;  %v2230_v46 = vrot.slane %v2214_v29, %v5338_v23 }
 0x47d   : > { %v2223_v12 = vcombine.high %v2221_v13, %v2221_v13  ;;  %v2237_v35 = vrot.slane %v2221_v13, %v5338_v23  ;;  %v2244_v45 = vrot.slane %v2222_v11, %v5338_v23  ;;  %v2252_v51 = vcombine.high %v2230_v46, %v2230_v46 }
 0x47e   : > { %v2259_v24 = vrot.slane %v2230_v46, %v5342_v19 }
 0x47f   : > { %v2251_v57 = vrot.slane %v2223_v12, %v5338_v23  ;;  %v2253_v18 = vcombine.high %v2237_v35, %v2237_v35  ;;  %v2254_v9 = vcombine.high %v2244_v45, %v2244_v45  ;;  %v2263_v61 = vrot.slane %v2244_v45, %v5342_v19 }
 0x480   : > { %v2267_v39 = vrot.slane %v2252_v51, %v5342_v19  ;;  %v2275_v33 = vrot.slane %v2237_v35, %v5342_v19  ;;  %v6021_v60 = vsub.f32 %v5939_v17, %v2259_v24  ;;  %v6024_v16 = vsub.f32 %v5936_v41, %v2259_v24 }
 0x481   : > { %v2255_v63 = vcombine.high %v2251_v57, %v2251_v57  ;;  %v2271_v54 = vrot.slane %v2254_v9, %v5342_v19  ;;  %v2279_v40 = vrot.slane %v2251_v57, %v5342_v19  ;;  %v2283_v47 = vrot.slane %v2253_v18, %v5342_v19 }
 0x482   : > { %v6030_v28 = vsub.f32 %v5945_v58, %v2263_v61  ;;  %v6033_v6 = vsub.f32 %v5942_v48, %v2263_v61  ;;  %v6036_v7 = vsub.f32 %v5958_v52, %v2267_v39  ;;  %v6039_v17 = vsub.f32 %v5961_v37, %v2267_v39 }
 0x483   : > { %v2287_v41 = vrot.slane %v2255_v63, %v5342_v19  ;;  %v6043_v22 = vsub.f32 %v5955_v42, %v2271_v54  ;;  %v6046_v1 = vsub.f32 %v5952_v38, %v2271_v54  ;;  %v6049_v58 = vsub.f32 %v5974_v0, %v2275_v33 }
 0x484   : > { %v6052_v48 = vsub.f32 %v5977_v32, %v2275_v33  ;;  %v6055_v52 = vsub.f32 %v5968_v2, %v2279_v40  ;;  %v6058_v37 = vsub.f32 %v5971_v30, %v2279_v40  ;;  %v6061_v55 = vsub.f32 %v5994_v56, %v2283_v47 }
 0x485   : > { %v6064_v42 = vsub.f32 %v5997_v27, %v2283_v47  ;;  %v6067_v38 = vsub.f32 %v5988_v31, %v2287_v41  ;;  %v6070_v0 = vsub.f32 %v5991_v44, %v2287_v41  ;;  %v2312_v32 = vmul.f32 %v6021_v60, %v6021_v60 }
 0x486   : > { %v2313_v2 = vmul.f32 %v6024_v16, %v6024_v16  ;;  %v2314_v30 = vmul.f32 %v6030_v28, %v6030_v28  ;;  %v2315_v56 = vmul.f32 %v6033_v6, %v6033_v6  ;;  %v2316_v27 = vmul.f32 %v6036_v7, %v6036_v7 }
 0x487   : > { %v2317_v31 = vmul.f32 %v6039_v17, %v6039_v17  ;;  %v2318_v44 = vmul.f32 %v6043_v22, %v6043_v22  ;;  %v2319_v3 = vmul.f32 %v6046_v1, %v6046_v1  ;;  %v2320_v36 = vmul.f32 %v6049_v58, %v6049_v58 }
 0x488   : > { %v2321_v34 = vmul.f32 %v6052_v48, %v6052_v48  ;;  %v2322_v25 = vmul.f32 %v6055_v52, %v6055_v52  ;;  %v2323_v29 = vmul.f32 %v6058_v37, %v6058_v37  ;;  %v2324_v43 = vmul.f32 %v6061_v55, %v6061_v55 }
 0x489   : > { %v2325_v13 = vmul.f32 %v6064_v42, %v6064_v42  ;;  %v2326_v11 = vmul.f32 %v6067_v38, %v6067_v38  ;;  %v2327_v46 = vmul.f32 %v6070_v0, %v6070_v0  ;;  %v2328_v12 = vadd.f32 %v2313_v2, %v2312_v32 }
 0x48a   : > { %v2335_v35 = vadd.f32 %v2315_v56, %v2314_v30  ;;  %v2342_v45 = vadd.f32 %v2317_v31, %v2316_v27  ;;  %v2349_v51 = vadd.f32 %v2319_v3, %v2318_v44  ;;  %v2356_v24 = vadd.f32 %v2321_v34, %v2320_v36 }
 0x48b   : > { %v2329_v57 = vrot.slane %v2328_v12, 4  ;;  %v2363_v18 = vadd.f32 %v2323_v29, %v2322_v25  ;;  %v2370_v9 = vadd.f32 %v2325_v13, %v2324_v43  ;;  %v2377_v61 = vadd.f32 %v2327_v46, %v2326_v11 }
 0x48c   : > { %v2336_v39 = vrot.slane %v2335_v35, 4  ;;  %v2343_v33 = vrot.slane %v2342_v45, 4  ;;  %v2350_v63 = vrot.slane %v2349_v51, 4  ;;  %v2357_v54 = vrot.slane %v2356_v24, 4 }
 0x48d   : > { %v2330_v40 = vadd.f32 %v2329_v57, %v2328_v12  ;;  %v2364_v47 = vrot.slane %v2363_v18, 4  ;;  %v2371_v41 = vrot.slane %v2370_v9, 4  ;;  %v2378_v21 = vrot.slane %v2377_v61, 4 }
 0x48e   : > { %v2337_v15 = vadd.f32 %v2336_v39, %v2335_v35  ;;  %v2344_v26 = vadd.f32 %v2343_v33, %v2342_v45  ;;  %v2351_v14 = vadd.f32 %v2350_v63, %v2349_v51  ;;  %v2358_v32 = vadd.f32 %v2357_v54, %v2356_v24 }
 0x48f   : > { %v2331_v2 = vrot.slane %v2330_v40, 2  ;;  %v2365_v30 = vadd.f32 %v2364_v47, %v2363_v18  ;;  %v2372_v56 = vadd.f32 %v2371_v41, %v2370_v9  ;;  %v2379_v27 = vadd.f32 %v2378_v21, %v2377_v61 }
 0x490   : > { %v2338_v31 = vrot.slane %v2337_v15, 2  ;;  %v2345_v44 = vrot.slane %v2344_v26, 2  ;;  %v2352_v3 = vrot.slane %v2351_v14, 2  ;;  %v2359_v36 = vrot.slane %v2358_v32, 2 }
 0x491   : > { %v2332_v34 = vadd.f32 %v2331_v2, %v2330_v40  ;;  %v2366_v25 = vrot.slane %v2365_v30, 2  ;;  %v2373_v29 = vrot.slane %v2372_v56, 2  ;;  %v2380_v43 = vrot.slane %v2379_v27, 2 }
 0x492   : > { %v2339_v13 = vadd.f32 %v2338_v31, %v2337_v15  ;;  %v2346_v11 = vadd.f32 %v2345_v44, %v2344_v26  ;;  %v2353_v46 = vadd.f32 %v2352_v3, %v2351_v14  ;;  %v2360_v12 = vadd.f32 %v2359_v36, %v2358_v32  ;;  %v4482_v3 = vld [vmem:[#allocation11 + $0x78] sm:$0xff]   ;;  %v4483_v36 = vld [vmem:[#allocation11 + $0x70] sm:$0xff]  }
 0x493   : > { %v2333_v35 = vrot.slane %v2332_v34, 1  ;;  %v2367_v45 = vadd.f32 %v2366_v25, %v2365_v30  ;;  %v2374_v51 = vadd.f32 %v2373_v29, %v2372_v56  ;;  %v2381_v9 = vadd.f32 %v2380_v43, %v2379_v27  ;;  %v4486_v25 = vld [vmem:[#allocation11 + $0x30] sm:$0xff]   ;;  %4233 = vmatprep.subr.bf16.mxu1 %v4482_v3  ;;  %v4485_v29 = vld [vmem:[#allocation11 + $0x68] sm:$0xff]  }
 0x494   : > { %v2340_v24 = vrot.slane %v2339_v13, 1  ;;  %v2347_v57 = vrot.slane %v2346_v11, 1  ;;  %v2354_v18 = vrot.slane %v2353_v46, 1  ;;  %v2361_v61 = vrot.slane %v2360_v12, 1  ;;  %4234 = vmatpush3.bf16.msra.mxu1 %v4482_v3  ;;  %v4488_v43 = vld [vmem:[#allocation11 + $0x28] sm:$0xff]  }
 0x495   : > { %v2334_v21 = vadd.f32 %v2333_v35, %v2332_v34  ;;  %v2368_v54 = vrot.slane %v2367_v45, 1  ;;  %v2375_v40 = vrot.slane %v2374_v51, 1  ;;  %v2382_v47 = vrot.slane %v2381_v9, 1  ;;  %v4484_v34 = vld [vmem:[#allocation11 + $0x38] sm:$0xff]   ;;  %4235 = vmatprep.subr.bf16.mxu1 %v4483_v36  ;;  %v4491_v35 = vld [vmem:[#allocation11 + $0x50] sm:$0xff]  }
 0x496   : > { %v2341_v39 = vadd.f32 %v2340_v24, %v2339_v13  ;;  %v2348_v33 = vadd.f32 %v2347_v57, %v2346_v11  ;;  %v2355_v63 = vadd.f32 %v2354_v18, %v2353_v46  ;;  %v2362_v26 = vadd.f32 %v2361_v61, %v2360_v12  ;;  %4265 = vmatprep.subr.bf16.mxu0 %v4484_v34  ;;  %v4487_v13 = vld [vmem:[#allocation11 + $0x60] sm:$0xff]   ;;  %v4489_v46 = vld [vmem:[#allocation11 + $0x58] sm:$0xff]   ;;  %v4496_v57 = vld [vmem:[#allocation11 + $0x8] sm:$0xff]  }
 0x497   : > { %v2369_v41 = vadd.f32 %v2368_v54, %v2367_v45  ;;  %v2376_v2 = vadd.f32 %v2375_v40, %v2374_v51  ;;  %v2383_v56 = vadd.f32 %v2382_v47, %v2381_v9  ;;  %v4490_v11 = vld [vmem:[#allocation11 + $0x20] sm:$0xff]   ;;  %v4492_v12 = vld [vmem:[#allocation11 + $0x18] sm:$0xff]   ;;  %v4494_v45 = vld [vmem:[#allocation11 + $0x10] sm:$0xff]  }
 0x498   : > { %v2392_v15 = vsel %vm6746_vm0, %v2341_v39, %v2334_v21  ;;  %4236 = vmatpush3.bf16.msra.mxu1 %v4483_v36  ;;  %v4493_v51 = vld [vmem:[#allocation11 + $0x48] sm:$0xff]   ;;  %v4495_v24 = vld [vmem:[#allocation11 + $0x40] sm:$0xff]   ;;  %v6111_v18 = vld [vmem:[#allocation11 + $0xb8] sm:$0xff]  }
 0x499   : > { %v2393_v14 = vsel %vm6747_vm7, %v2348_v33, %v2392_v15  ;;  %4237 = vmatprep.subr.bf16.mxu1 %v4485_v29  ;;  %v4498_v9 = vld [vmem:[#allocation11] sm:$0xff]   ;;  %v6114_v21 = vld [vmem:[#allocation13 + $0x18] sm:$0xff]  }
 0x49a   : > { %v2394_v32 = vsel %vm6748_vm10, %v2355_v63, %v2393_v14  ;;  %v6129_v36 = vld [vmem:[#allocation5 + $0x4] ss:$0 sm:$0xff]  ;;  %vm4934_vm10 = vmmov 1  }
 0x49b   : > { %v2395_v30 = vsel %vm6749_vm2, %v2362_v26, %v2394_v32  ;;  %vm3825_vm2 = vmpackc.low %vm4934_vm10, %vm5611_vm9 }
 0x49c   : > { %v2396_v27 = vsel %vm6750_vm1, %v2369_v41, %v2395_v30  ;;  %4238 = vmatpush3.bf16.msra.mxu1 %v4485_v29  ;;  %v6122_v30 = vld [vmem:[#allocation5 + $0x3] ss:$0 sm:$0xff]  ;;  %vm6292_vm1 = vmpackc.low %vm4934_vm10, %vm5635_vm11 }
 0x49d   : > { %v2397_v31 = vsel %vm6751_vm3, %v2376_v2, %v2396_v27  ;;  %4239 = vmatprep.subr.bf16.mxu1 %v4487_v13  ;;  %vm6753_vm3 = vcmp.lt.s32.totalorder %v5335_v4, 1  ;;  %vm3831_vm9 = vmpackc.low %vm4934_vm10, %vm5641_vm12 }
 0x49e   : > { %v2398_v44 = vsel %vm6752_vm4, %v2383_v56, %v2397_v31  ;;  %vm6754_vm4 = vmmov %vm6753_vm3 }
 0x49f   : > { %4231 = vmatmul.mubr.f32.vlgmr.msra.gmra.mxu0 %v2398_v44  ;;  %vm6755_vm0 = vmmov %vm6753_vm3 }
 0x4a0   : > { %4266 = vmatpush3.bf16.msra.mxu0 %v4484_v34  ;;  %4240 = vmatpush3.bf16.msra.mxu1 %v4487_v13  ;;  %vm6756_vm7 = vmmov %vm6755_vm0 }
 0x4a1   : > { %4267 = vmatprep.subr.bf16.mxu0 %v4486_v25  ;;  %4241 = vmatprep.subr.bf16.mxu1 %v4489_v46  ;;  %vm6761_vm11 = vmmov %vm6755_vm0 }
 0x4a2   : > { %vm6762_vm12 = vmmov %vm6755_vm0 }
 0x4a4   : > { %4268 = vmatpush3.bf16.msra.mxu0 %v4486_v25  ;;  %4242 = vmatpush3.bf16.msra.mxu1 %v4489_v46 }
 0x4a5   : > { %4269 = vmatprep.subr.bf16.mxu0 %v4488_v43  ;;  %4243 = vmatprep.subr.bf16.mxu1 %v4491_v35 }
 0x4a8   : > { %4270 = vmatpush3.bf16.msra.mxu0 %v4488_v43  ;;  %4244 = vmatpush3.bf16.msra.mxu1 %v4491_v35 }
 0x4a9   : > { %4271 = vmatprep.subr.bf16.mxu0 %v4490_v11  ;;  %4245 = vmatprep.subr.bf16.mxu1 %v4493_v51 }
 0x4ac   : > { %4272 = vmatpush3.bf16.msra.mxu0 %v4490_v11  ;;  %4246 = vmatpush3.bf16.msra.mxu1 %v4493_v51 }
 0x4ad   : > { %4273 = vmatprep.subr.bf16.mxu0 %v4492_v12  ;;  %4247 = vmatprep.subr.bf16.mxu1 %v4495_v24 }
 0x4b0   : > { %4274 = vmatpush3.bf16.msra.mxu0 %v4492_v12  ;;  %4248 = vmatpush3.bf16.msra.mxu1 %v4495_v24 }
 0x4b1   : > { %4275 = vmatprep.subr.bf16.mxu0 %v4494_v45  ;;  %4297 = vmatprep.subr.bf16.mxu1 %v6111_v18 }
 0x4b4   : > { %4276 = vmatpush3.bf16.msra.mxu0 %v4494_v45 }
 0x4b5   : > { %4277 = vmatprep.subr.bf16.mxu0 %v4496_v57 }
 0x4b8   : > { %4278 = vmatpush3.bf16.msra.mxu0 %v4496_v57 }
 0x4b9   : > { %4279 = vmatprep.subr.bf16.mxu0 %v4498_v9 }
 0x4bc   : > { %4280 = vmatpush3.bf16.msra.mxu0 %v4498_v9 }
 0x4bd   : > { %4329 = vmatprep.subr.bf16.mxu0 %v6114_v21 }
 0x55f   : > { %v2466_v61 = vpop.f32.mrf.mxu0 }
 0x560   : > { %v2467_v39 = vadd.f32 1e-05, %v2466_v61 }
 0x561   : > { %v4232_v33 = vpop.f32.mrf.mxu0 }
 0x562   : > { %4576 = vrsqrt.f32 %v2467_v39 }
 0x56f   : > { %v4577_v63 = vpop.eup %4576 }
 0x570   : > { %v2472_v54 = vcombine.high %v4577_v63, %v4577_v63  ;;  %v2479_v40 = vrot.slane %v4577_v63, %v5338_v23 }
 0x572   : > { %v2486_v47 = vrot.slane %v2472_v54, %v5338_v23  ;;  %v2487_v15 = vcombine.high %v2479_v40, %v2479_v40  ;;  %v2495_v26 = vrot.slane %v2479_v40, %v5338_v23 }
 0x574   : > { %v2488_v14 = vcombine.high %v2486_v47, %v2486_v47  ;;  %v2509_v41 = vrot.slane %v2487_v15, %v5338_v23  ;;  %v2524_v32 = vrot.slane %v2495_v26, %v5342_v19  ;;  %v2517_v2 = vcombine.high %v2495_v26, %v2495_v26 }
 0x575   : > { %v2502_v56 = vrot.slane %v2486_v47, %v5338_v23 }
 0x576   : > { %v2516_v27 = vrot.slane %v2488_v14, %v5338_v23  ;;  %v2561_v31 = vmul.f32 %v2524_v32, %v6021_v60  ;;  %v2562_v44 = vmul.f32 %v2524_v32, %v6024_v16  ;;  %v2528_v3 = vrot.slane %v2509_v41, %v5342_v19 }
 0x577   : > { %v2532_v34 = vrot.slane %v2517_v2, %v5342_v19  ;;  %v2519_v25 = vcombine.high %v2509_v41, %v2509_v41  ;;  %v2540_v29 = vrot.slane %v2502_v56, %v5342_v19  ;;  %v2518_v43 = vcombine.high %v2502_v56, %v2502_v56 }
 0x578   : > { %v2520_v13 = vcombine.high %v2516_v27, %v2516_v27  ;;  %v2581_v11 = vmul.f32 %v6122_v30, %v2561_v31  ;;  %v2582_v46 = vmul.f32 %v6122_v30, %v2562_v44  ;;  %v2563_v23 = vmul.f32 %v2528_v3, %v6030_v28 }
 0x579   : > { %v2564_v60 = vmul.f32 %v2528_v3, %v6033_v6  ;;  %v2565_v16 = vmul.f32 %v2532_v34, %v6036_v7  ;;  %v2566_v12 = vmul.f32 %v2532_v34, %v6039_v17  ;;  %v2536_v35 = vrot.slane %v2519_v25, %v5342_v19 }
 0x57a   : > { %v6141_v45 = vrot.slane %v2520_v13, %v5342_v19  ;;  %v6144_v51 = vadd.f32 %v6129_v36, %v2581_v11  ;;  %v6147_v24 = vadd.f32 %v6129_v36, %v2582_v46  ;;  %v2583_v57 = vmul.f32 %v6122_v30, %v2563_v23 }
 0x57b   : > { %v2584_v28 = vmul.f32 %v6122_v30, %v2564_v60  ;;  %v2585_v6 = vmul.f32 %v6122_v30, %v2565_v16  ;;  %v2586_v7 = vmul.f32 %v6122_v30, %v2566_v12  ;;  %v2567_v17 = vmul.f32 %v2536_v35, %v6043_v22 }
 0x57c   : > { %v3793_v9 = vmul.f32 -1.442695, %v6144_v51  ;;  %v3794_v61 = vmul.f32 -1.442695, %v6147_v24  ;;  %v6157_v39 = vadd.f32 %v6129_v36, %v2583_v57  ;;  %v2576_v33 = vmul.f32 %v6141_v45, %v6070_v0 }
 0x57d   : > { %v6162_v63 = vadd.f32 %v6129_v36, %v2584_v28  ;;  %v6165_v54 = vadd.f32 %v6129_v36, %v2585_v6  ;;  %v6168_v40 = vadd.f32 %v6129_v36, %v2586_v7  ;;  %v2568_v22 = vmul.f32 %v2536_v35, %v6046_v1 }
 0x57e   : > { %4578 = vpow2.f32 %v3793_v9  ;;  %v3795_v47 = vmul.f32 -1.442695, %v6157_v39  ;;  %v2596_v15 = vmul.f32 %v6122_v30, %v2576_v33  ;;  %v2587_v26 = vmul.f32 %v6122_v30, %v2567_v17 }
 0x57f   : > { %4580 = vpow2.f32 %v3794_v61  ;;  %v3796_v0 = vmul.f32 -1.442695, %v6162_v63  ;;  %v3797_v14 = vmul.f32 -1.442695, %v6165_v54  ;;  %v3798_v41 = vmul.f32 -1.442695, %v6168_v40 }
 0x580   : > { %4582 = vpow2.f32 %v3795_v47  ;;  %v6178_v32 = vadd.f32 %v6129_v36, %v2596_v15  ;;  %v2588_v1 = vmul.f32 %v6122_v30, %v2568_v22  ;;  %v6182_v2 = vadd.f32 %v6129_v36, %v2587_v26 }
 0x581   : > { %4584 = vpow2.f32 %v3796_v0  ;;  %v2569_v56 = vmul.f32 %v2540_v29, %v6049_v58  ;;  %v2570_v31 = vmul.f32 %v2540_v29, %v6052_v48  ;;  %v2544_v44 = vrot.slane %v2516_v27, %v5342_v19 }
 0x582   : > { %4586 = vpow2.f32 %v3797_v14  ;;  %v3808_v3 = vmul.f32 -1.442695, %v6178_v32  ;;  %v6189_v34 = vadd.f32 %v6129_v36, %v2588_v1  ;;  %v3799_v25 = vmul.f32 -1.442695, %v6182_v2 }
 0x583   : > { %4588 = vpow2.f32 %v3798_v41  ;;  %v2589_v13 = vmul.f32 %v6122_v30, %v2569_v56  ;;  %v2590_v11 = vmul.f32 %v6122_v30, %v2570_v31  ;;  %v2571_v46 = vmul.f32 %v2544_v44, %v6055_v52 }
 0x584   : > { %4590 = vpow2.f32 %v3808_v3  ;;  %v3800_v58 = vmul.f32 -1.442695, %v6189_v34  ;;  %v2572_v48 = vmul.f32 %v2544_v44, %v6058_v37  ;;  %v2548_v27 = vrot.slane %v2518_v43, %v5342_v19 }
 0x585   : > { %4592 = vpow2.f32 %v3799_v25  ;;  %v6199_v29 = vadd.f32 %v6129_v36, %v2589_v13  ;;  %v6202_v23 = vadd.f32 %v6129_v36, %v2590_v11  ;;  %v2591_v60 = vmul.f32 %v6122_v30, %v2571_v46 }
 0x586   : > { %4594 = vpow2.f32 %v3800_v58  ;;  %v2592_v16 = vmul.f32 %v6122_v30, %v2572_v48  ;;  %v2573_v19 = vmul.f32 %v2548_v27, %v6061_v55  ;;  %v2574_v35 = vmul.f32 %v2548_v27, %v6064_v42 }
 0x587   : > { %v3801_v52 = vmul.f32 -1.442695, %v6199_v29  ;;  %v3802_v12 = vmul.f32 -1.442695, %v6202_v23  ;;  %v6209_v37 = vadd.f32 %v6129_v36, %v2591_v60  ;;  %v2575_v42 = vmul.f32 %v6141_v45, %v6067_v38 }
 0x588   : > { %v6213_v43 = vadd.f32 %v6129_v36, %v2592_v16  ;;  %v2593_v7 = vmul.f32 %v6122_v30, %v2573_v19  ;;  %v2594_v55 = vmul.f32 %v6122_v30, %v2574_v35 }
 0x589   : > { %4596 = vpow2.f32 %v3801_v52  ;;  %v3803_v57 = vmul.f32 -1.442695, %v6209_v37  ;;  %v2595_v38 = vmul.f32 %v6122_v30, %v2575_v42 }
 0x58a   : > { %4598 = vpow2.f32 %v3802_v12  ;;  %v3804_v28 = vmul.f32 -1.442695, %v6213_v43  ;;  %v6223_v0 = vadd.f32 %v6129_v36, %v2593_v7  ;;  %v6226_v1 = vadd.f32 %v6129_v36, %v2594_v55 }
 0x58b   : > { %v4579_v6 = vpop.eup %4578  ;;  %4600 = vpow2.f32 %v3803_v57  ;;  %v6232_v58 = vadd.f32 %v6129_v36, %v2595_v38 }
 0x58c   : > { %v4581_v17 = vpop.eup %4580  ;;  %v2665_v9 = vadd.f32 1.0, %v4579_v6  ;;  %4602 = vpow2.f32 %v3804_v28  ;;  %v3805_v13 = vmul.f32 -1.442695, %v6223_v0  ;;  %v3806_v46 = vmul.f32 -1.442695, %v6226_v1 }
 0x58d   : > { %v4583_v61 = vpop.eup %4582  ;;  %v2666_v33 = vadd.f32 1.0, %v4581_v17  ;;  %v3807_v19 = vmul.f32 -1.442695, %v6232_v58 }
 0x58e   : > { %v4585_v22 = vpop.eup %4584  ;;  %4604 = vrcp.f32 %v2665_v9  ;;  %v2667_v47 = vadd.f32 1.0, %v4583_v61 }
 0x58f   : > { %v4587_v15 = vpop.eup %4586  ;;  %4606 = vrcp.f32 %v2666_v33  ;;  %v2668_v26 = vadd.f32 1.0, %v4585_v22 }
 0x590   : > { %v4589_v14 = vpop.eup %4588  ;;  %4608 = vrcp.f32 %v2667_v47  ;;  %v2669_v41 = vadd.f32 1.0, %v4587_v15 }
 0x591   : > { %v4591_v56 = vpop.eup %4590  ;;  %4610 = vrcp.f32 %v2668_v26  ;;  %v2670_v31 = vadd.f32 1.0, %v4589_v14  ;;  %v4499_v26 = vld [vmem:[#allocation11 + $0xb0] sm:$0xff]  }
 0x592   : > { %v4593_v45 = vpop.eup %4592  ;;  %4612 = vrcp.f32 %v2669_v41  ;;  %v2680_v44 = vadd.f32 1.0, %v4591_v56 }
 0x593   : > { %v4595_v3 = vpop.eup %4594  ;;  %4614 = vrcp.f32 %v2670_v31  ;;  %v2671_v25 = vadd.f32 1.0, %v4593_v45 }
 0x594   : > { %4616 = vrcp.f32 %v2680_v44  ;;  %v2672_v11 = vadd.f32 1.0, %v4595_v3 }
 0x595   : > { %4618 = vrcp.f32 %v2671_v25 }
 0x596   : > { %v4597_v48 = vpop.eup %4596  ;;  %4620 = vrcp.f32 %v2672_v11  ;;  %v4501_v11 = vld [vmem:[#allocation11 + $0xa8] sm:$0xff]  }
 0x597   : > { %v4599_v27 = vpop.eup %4598  ;;  %v2673_v30 = vadd.f32 1.0, %v4597_v48  ;;  %4622 = vpow2.f32 %v3805_v13 }
 0x598   : > { %v4601_v60 = vpop.eup %4600  ;;  %v2674_v16 = vadd.f32 1.0, %v4599_v27  ;;  %4624 = vpow2.f32 %v3806_v46 }
 0x599   : > { %v4603_v52 = vpop.eup %4602  ;;  %4626 = vrcp.f32 %v2673_v30  ;;  %v2675_v12 = vadd.f32 1.0, %v4601_v60 }
 0x59a   : > { %4628 = vrcp.f32 %v2674_v16  ;;  %v2676_v35 = vadd.f32 1.0, %v4603_v52 }
 0x59b   : > { %v4605_v57 = vpop.eup %4604  ;;  %4630 = vrcp.f32 %v2675_v12 }
 0x59c   : > { %v4607_v28 = vpop.eup %4606  ;;  %v6236_v36 = vmul.f32 %v4605_v57, %v6144_v51  ;;  %4632 = vrcp.f32 %v2676_v35 }
 0x59d   : > { %v4609_v6 = vpop.eup %4608  ;;  %v6239_v7 = vmul.f32 %v4607_v28, %v6147_v24  ;;  %4634 = vpow2.f32 %v3807_v19 }
 0x59e   : > { %v4611_v17 = vpop.eup %4610  ;;  %v6242_v9 = vmul.f32 %v4609_v6, %v6157_v39  ;;  %v2729_v41 = vrot.slane %v6236_v36, 7  ;;  %v4503_v6 = vld [vmem:[#allocation13 + $0x10] sm:$0xff]  }
 0x59f   : > { %v4613_v55 = vpop.eup %4612  ;;  %v2849_v61 = vpack.c.bf16 %v6239_v7, %v6236_v36  ;;  %v6247_v33 = vmul.f32 %v4611_v17, %v6162_v63 }
 0x5a0   : > { %v4615_v42 = vpop.eup %4614  ;;  %v2731_v51 = vrot.slane %v6242_v9, 7  ;;  %v6251_v22 = vmul.f32 %v4613_v55, %v6165_v54  ;;  %v2730_v54 = vrot.slane %v6239_v7, 7 }
 0x5a1   : > { %v4617_v24 = vpop.eup %4616  ;;  %4249 = vmatprep.mubr.bf16.mxu1 %v2849_v61  ;;  %v2732_v47 = vrot.slane %v6247_v33, 7  ;;  %v2850_v39 = vpack.c.bf16 %v6247_v33, %v6242_v9  ;;  %v6257_v15 = vmul.f32 %v4615_v42, %v6168_v40  ;;  %v4502_v42 = vld [vmem:[#allocation11 + $0xa0] sm:$0xff]  }
 0x5a2   : > { %v4619_v14 = vpop.eup %4618  ;;  %v6260_v63 = vmul.f32 %v4617_v24, %v6178_v32  ;;  %v2733_v38 = vrot.slane %v6251_v22, 7  ;;  %v2758_v32 = vsel %vm6753_vm3, %v2730_v54, %v2731_v51  ;;  %vm6759_vm3 = vmmov %vm6755_vm0 }
 0x5a3   : > { %v4621_v56 = vpop.eup %4620  ;;  %4250 = vmatmul.mubr.bf16.vlgmr.msra.gmra.mxu1 %v2850_v39  ;;  %v2851_v31 = vpack.c.bf16 %v6257_v15, %v6251_v22  ;;  %v6270_v44 = vmul.f32 %v4619_v14, %v6182_v2  ;;  %v2757_v13 = vsel %vm6754_vm4, %v2731_v51, %v2732_v47  ;;  %v2759_v2 = vsel %vm6755_vm0, %v2729_v41, %v2730_v54  ;;  %vm6760_vm4 = vmmov %vm6755_vm0  ;;  %v4506_v39 = vld [vmem:[#allocation13 + $0x8] sm:$0xff]  }
 0x5a4   : > { %v4623_v45 = vpop.eup %4622  ;;  %4298 = vmatpush3.bf16.msra.mxu1 %v6111_v18  ;;  %v2744_v40 = vrot.slane %v6260_v63, 7  ;;  %v6275_v25 = vmul.f32 %v4621_v56, %v6189_v34  ;;  %v2734_v18 = vrot.slane %v6257_v15, 7  ;;  %v2756_v59 = vsel %vm6760_vm4, %v2732_v47, %v2733_v38  ;;  %vm6767_vm4 = vmmov %vm6755_vm0 }
 0x5a5   : > { %v4625_v3 = vpop.eup %4624  ;;  %4253 = vmatprep.mubr.bf16.mxu1 %v2851_v31  ;;  %4299 = vmatprep.subr.bf16.mxu1 %v4499_v26  ;;  %v2677_v46 = vadd.f32 1.0, %v4623_v45  ;;  %v3829_v35 = vpack.c.bf16 %v2757_v13, %v2758_v32  ;;  %v2735_v20 = vrot.slane %v6270_v44, 7  ;;  %v4509_v45 = vld [vmem:[#allocation13] sm:$0xff]   ;;  %v4505_v32 = vld [vmem:[#allocation11 + $0x90] sm:$0xff]   ;;  %v2783_v49 = vrot.slane %v6270_v44, 1 }
 0x5a6   : > { %v4627_v48 = vpop.eup %4626  ;;  %v2760_v27 = vsel %vm6756_vm7, %v2744_v40, %v2729_v41  ;;  %v2678_v34 = vadd.f32 1.0, %v4625_v3  ;;  %v2755_v12 = vsel %vm6759_vm3, %v2733_v38, %v2734_v18  ;;  %v2736_v17 = vrot.slane %v6275_v25, 7  ;;  %v4504_v41 = vld [vmem:[#allocation11 + $0x98] sm:$0xff]   ;;  %vm3834_vm7 = vmpackc.low %vm4934_vm10, %vm5678_vm13 }
 0x5a7   : > { %v4629_v30 = vpop.eup %4628  ;;  %v3826_v60 = vpack.c.bf16 %v2759_v2, %v2760_v27  ;;  %v6297_v52 = vmul.f32 %v4627_v48, %v6199_v29  ;;  %4636 = vrcp.f32 %v2677_v46  ;;  %v2852_v29 = vpack.c.bf16 %v6275_v25, %v6270_v44  ;;  %vm6764_vm13 = vmmov %vm6755_vm0  ;;  %v4507_v46 = vld [vmem:[#allocation11 + $0x88] sm:$0xff]  }
 0x5a8   : > { %v4631_v19 = vpop.eup %4630  ;;  %4300 = vmatpush3.bf16.msra.mxu1 %v4499_v26  ;;  %v6304_v57 = vmul.f32 %v4629_v30, %v6202_v23  ;;  %4638 = vrcp.f32 %v2678_v34  ;;  %v3832_v61 = vpack.c.bf16 %v2755_v12, %v2756_v59  ;;  %v2754_v53 = vsel %vm6761_vm11, %v2734_v18, %v2735_v20  ;;  %vm3840_vm3 = vmpackc.low %vm4934_vm10, %vm5730_vm15 }
 0x5a9   : > { %v4633_v28 = vpop.eup %4632  ;;  %4281 = vmatprep.mubr.msk.bf16.mxu0 %vm3825_vm2, %v3826_v60  ;;  %4301 = vmatprep.subr.bf16.mxu1 %v4501_v11  ;;  %v2737_v24 = vrot.slane %v6297_v52, 7  ;;  %v6323_v26 = vmul.f32 %v4631_v19, %v6209_v37  ;;  %vm6763_vm2 = vmmov %vm6755_vm0  ;;  %v2779_v2 = vrot.slane %v6242_v9, 1  ;;  %v2777_v60 = vrot.slane %v6236_v36, 1  ;;  %v4508_v9 = vld [vmem:[#allocation11 + $0x80] sm:$0xff]  }
 0x5aa   : > { %v4635_v55 = vpop.eup %4634  ;;  %4282 = vmatmul.mubr.msk.bf16.vlgmr.msra.gmra.mxu0 %vm6292_vm1, %v3829_v35  ;;  %v2853_v23 = vpack.c.bf16 %v6304_v57, %v6297_v52  ;;  %v2738_v47 = vrot.slane %v6304_v57, 7  ;;  %v6326_v14 = vmul.f32 %v4633_v28, %v6213_v43  ;;  %vm3837_vm1 = vmpackc.low %vm4934_vm10, %vm5682_vm14  ;;  %vm6768_vm11 = vcmp.lt.s32.totalorder %v5335_v4, 7 }
 0x5ab   : > { %4254 = vmatmul.mubr.bf16.gmra.mxu1 %v2852_v29  ;;  %4330 = vmatpush3.bf16.msra.mxu0 %v6114_v21  ;;  %v2679_v51 = vadd.f32 1.0, %v4635_v55  ;;  %v2753_v21 = vsel %vm6762_vm12, %v2735_v20, %v2736_v17  ;;  %v2752_v54 = vsel %vm6755_vm0, %v2736_v17, %v2737_v24  ;;  %v2739_v38 = vrot.slane %v6323_v26, 7  ;;  %vm6765_vm14 = vmmov %vm6755_vm0 }
 0x5ac   : > { %4257 = vmatprep.mubr.bf16.mxu1 %v2853_v23  ;;  %4285 = vmatprep.mubr.msk.bf16.mxu0 %vm3831_vm9, %v3832_v61  ;;  %v3835_v56 = vpack.c.bf16 %v2753_v21, %v2754_v53  ;;  %v2751_v37 = vsel %vm6763_vm2, %v2737_v24, %v2738_v47  ;;  %v2854_v43 = vpack.c.bf16 %v6326_v14, %v6323_v26  ;;  %v2740_v5 = vrot.slane %v6326_v14, 7  ;;  %vm6766_vm15 = vmmov %vm6755_vm0  ;;  %v6779_v53 = vld [vmem:[#allocation21_spill] sm:$0xff]  ;;  %v4645_v21 = vld [vmem:[%s5177_s18 + $0x18] sm:$0xff] }
 0x5ad   : > { %4302 = vmatpush3.bf16.msra.mxu1 %v4501_v11  ;;  %4331 = vmatprep.subr.bf16.mxu0 %v4503_v6  ;;  %4640 = vrcp.f32 %v2679_v51  ;;  %v3838_v31 = vpack.c.bf16 %v2751_v37, %v2752_v54  ;;  %v2750_v13 = vsel %vm6765_vm14, %v2738_v47, %v2739_v38  ;;  %vm3843_vm9 = vmpackc.low %vm4934_vm10, %vm5739_vm8  ;;  %v2780_v20 = vrot.slane %v6247_v33, 1  ;;  %v4642_v33 = vld [vmem:[%s5177_s18] sm:$0xff]  ;;  %v4647_v37 = vld [vmem:[%s5177_s18 + $0x28] sm:$0xff] }
 0x5ae   : > { %4303 = vmatprep.subr.bf16.mxu1 %v4502_v42  ;;  %v2749_v3 = vsel %vm6764_vm13, %v2739_v38, %v2740_v5  ;;  %vm6769_vm12 = vmmov %vm6768_vm11  ;;  %v2781_v28 = vrot.slane %v6251_v22, 1  ;;  %v4643_v22 = vld [vmem:[%s5177_s18 + $0x8] sm:$0xff]  ;;  %v2782_v61 = vrot.slane %v6257_v15, 1  ;;  %vm6775_vm13 = vcmask 523264  }
 0x5af   : > { %4332 = vmatpush3.bf16.msra.mxu0 %v4503_v6  ;;  %v3841_v27 = vpack.c.bf16 %v2749_v3, %v2750_v13  ;;  %vm3857_vm0 = vmpackc.low %vm5754_vm6, %vm4934_vm10  ;;  %v3370_v55 = vpack.c.bf16 %v4643_v22, %v4642_v33  ;;  %v2784_v47 = vrot.slane %v6275_v25, 1  ;;  %v2787_v54 = vrot.slane %v6323_v26, 1  ;;  %v4657_v33 = vld [vmem:[%s5177_s18 + $0x78] sm:$0xff] }
 0x5b0   : > { %4333 = vmatprep.subr.bf16.mxu0 %v4506_v39  ;;  %vm6770_vm8 = vmmov %vm6763_vm2  ;;  %v2786_v38 = vrot.slane %v6304_v57, 1  ;;  %v2788_v3 = vrot.slane %v6326_v14, 1 }
 0x5b1   : > { %4304 = vmatpush3.bf16.msra.mxu1 %v4502_v42  ;;  %vm3846_vm6 = vmpackc.low %vm4934_vm10, %vm5781_vm5  ;;  %v6776_v42 = vld [vmem:[#allocation20_spill] sm:$0xff] }
 0x5b2   : > { %4286 = vmatmul.mubr.msk.bf16.gmra.mxu0 %vm3834_vm7, %v3835_v56  ;;  %4305 = vmatprep.subr.bf16.mxu1 %v4504_v41  ;;  %vm6771_vm7 = vmmov %vm6763_vm2  ;;  %vm6777_vm14 = vnez %v6776_v42  ;;  %v4646_v56 = vld [vmem:[%s5177_s18 + $0x20] sm:$0xff] }
 0x5b3   : > { %4258 = vmatmul.mubr.bf16.gmra.mxu1 %v2854_v43  ;;  %4289 = vmatprep.mubr.msk.bf16.mxu0 %vm3837_vm1, %v3838_v31  ;;  %vm6772_vm2 = vmmov %vm6768_vm11  ;;  %v3372_v43 = vpack.c.bf16 %v4647_v37, %v4646_v56  ;;  %v2785_v31 = vrot.slane %v6297_v52, 1 }
 0x5b4   : > { %4334 = vmatpush3.bf16.msra.mxu0 %v4506_v39  ;;  %v4637_v50 = vpop.eup %4636  ;;  %vm6773_vm1 = vmmov %vm6772_vm2  ;;  %v4644_v39 = vld [vmem:[%s5177_s18 + $0x10] sm:$0xff] }
 0x5b5   : > { %4306 = vmatpush3.bf16.msra.mxu1 %v4504_v41  ;;  %4335 = vmatprep.subr.bf16.mxu0 %v4509_v45  ;;  %v4639_v11 = vpop.eup %4638  ;;  %v6349_v18 = vmul.f32 %v4637_v50, %v6223_v0  ;;  %v2805_v62 = vsel %vm6773_vm1, %v2779_v2, %v2780_v20  ;;  %vm6774_vm5 = vmmov %vm6773_vm1  ;;  %v3371_v41 = vpack.c.bf16 %v4645_v21, %v4644_v39 }
 0x5b6   : > { %4307 = vmatprep.subr.bf16.mxu1 %v4505_v32  ;;  %v6352_v48 = vmul.f32 %v4639_v11, %v6226_v1  ;;  %v2778_v1 = vrot.slane %v6239_v7, 1  ;;  %v2802_v44 = vsel %vm6774_vm5, %v2782_v61, %v2783_v49  ;;  %v2799_v57 = vsel %vm6773_vm1, %v2785_v31, %v2786_v38  ;;  %v4648_v11 = vld [vmem:[%s5177_s18 + $0x30] sm:$0xff] }
 0x5b7   : > { %v2741_v34 = vrot.slane %v6349_v18, 7  ;;  %v2789_v13 = vrot.slane %v6349_v18, 1 }
 0x5b8   : > { %4336 = vmatpush3.bf16.msra.mxu0 %v4509_v45  ;;  %v2855_v30 = vpack.c.bf16 %v6352_v48, %v6349_v18  ;;  %v2742_v0 = vrot.slane %v6352_v48, 7  ;;  %v2806_v7 = vsel %vm6768_vm11, %v2778_v1, %v2779_v2  ;;  %vm6781_vm11 = vmmov %vm6773_vm1  ;;  %v6786_v45 = vld [vmem:[#allocation22_spill] sm:$0xff] }
 0x5b9   : > { %4308 = vmatpush3.bf16.msra.mxu1 %v4505_v32  ;;  %v2748_v8 = vsel %vm6766_vm15, %v2740_v5, %v2741_v34  ;;  %vm6778_vm15 = vmmov %vm6773_vm1  ;;  %v2800_v5 = vsel %vm6781_vm11, %v2784_v47, %v2785_v31  ;;  %v6788_v32 = vld [vmem:[#allocation23_spill] sm:$0xff] }
 0x5ba   : > { %v4641_v16 = vpop.eup %4640  ;;  %4290 = vmatmul.mubr.msk.bf16.gmra.mxu0 %vm3840_vm3, %v3841_v27  ;;  %4309 = vmatprep.subr.bf16.mxu1 %v4507_v46  ;;  %v2747_v59 = vsel %vm6767_vm4, %v2741_v34, %v2742_v0  ;;  %vm3860_vm3 = vmpackc.low %vm6777_vm14, %vm4934_vm10  ;;  %v2803_v15 = vsel %vm6778_vm15, %v2781_v28, %v2782_v61  ;;  %vm6780_vm4 = vnez %v6779_v53  ;;  %vm6789_vm5 = vnez %v6788_v32  ;;  %v4650_v34 = vld [vmem:[%s5177_s18 + $0x40] sm:$0xff] }
 0x5bb   : > { %4261 = vmatprep.mubr.bf16.mxu1 %v2855_v30  ;;  %v6367_v12 = vmul.f32 %v4641_v16, %v6232_v58  ;;  %v3844_v19 = vpack.c.bf16 %v2747_v59, %v2748_v8  ;;  %v2807_v58 = vsel %vm6769_vm12, %v2777_v60, %v2778_v1  ;;  %v3864_v24 = vpack.c.bf16 %v2802_v44, %v2803_v15  ;;  %vm6782_vm12 = vmmov %vm6773_vm1  ;;  %v4651_v30 = vld [vmem:[%s5177_s18 + $0x48] sm:$0xff] }
 0x5bc   : > { %v3858_v29 = vpack.c.bf16 %v2806_v7, %v2807_v58  ;;  %v2801_v25 = vsel %vm6782_vm12, %v2783_v49, %v2784_v47  ;;  %v2790_v1 = vrot.slane %v6352_v48, 1  ;;  %vm6790_vm14 = vmmov %vm6773_vm1  ;;  %v6795_v8 = vld [vmem:[#allocation24_spill] sm:$0xff]  ;;  %v2792_v7 = vrot.slane %v6260_v63, 1  ;;  %v4656_v49 = vld [vmem:[%s5177_s18 + $0x70] sm:$0xff] }
 0x5bd   : > { %v2856_v35 = vpack.c.bf16 %v6260_v63, %v6367_v12  ;;  %4310 = vmatpush3.bf16.msra.mxu1 %v4507_v46  ;;  %v2743_v10 = vrot.slane %v6367_v12, 7  ;;  %4293 = vmatprep.mubr.msk.bf16.mxu0 %vm3843_vm9, %v3844_v19  ;;  %vm3863_vm9 = vmpackc.low %vm6780_vm4, %vm4934_vm10  ;;  %v3867_v52 = vpack.c.bf16 %v2800_v5, %v2801_v25  ;;  %v4649_v46 = vld [vmem:[%s5177_s18 + $0x38] sm:$0xff]  ;;  %v2791_v27 = vrot.slane %v6367_v12, 1  ;;  %v6798_v12 = vld [vmem:[#allocation25_spill] sm:$0xff] }
 0x5be   : > { %4311 = vmatprep.subr.bf16.mxu1 %v4508_v9  ;;  %v3373_v2 = vpack.c.bf16 %v4649_v46, %v4648_v11  ;;  %v2796_v14 = vsel %vm6790_vm14, %v2788_v3, %v2789_v13  ;;  %vm6793_vm4 = vmmov %vm6773_vm1  ;;  %vm6796_vm11 = vnez %v6795_v8  ;;  %v4652_v19 = vld [vmem:[%s5177_s18 + $0x50] sm:$0xff]  ;;  %v6804_v63 = vld [vmem:[#allocation26_spill] sm:$0xff]  ;;  %v3377_v22 = vpack.c.bf16 %v4657_v33, %v4656_v49 }
 0x5bf   : > { %4262 = vmatmul.mubr.bf16.gmra.mxu1 %v2856_v35  ;;  %v2745_v6 = vsel %vm6770_vm8, %v2743_v10, %v2744_v40  ;;  %v2746_v17 = vsel %vm6771_vm7, %v2742_v0, %v2743_v10  ;;  %v2804_v40 = vsel %vm6772_vm2, %v2780_v20, %v2781_v28  ;;  %vm6784_vm8 = vmmov %vm6773_vm1  ;;  %v3374_v0 = vpack.c.bf16 %v4651_v30, %v4650_v34  ;;  %v4653_v35 = vld [vmem:[%s5177_s18 + $0x58] sm:$0xff]  ;;  %v4654_v10 = vld [vmem:[%s5177_s18 + $0x60] sm:$0xff] }
 0x5c0   : > { %4313 = vmatprep.mubr.msk.bf16.mxu1 %vm3857_vm0, %v3858_v29  ;;  %v3847_v23 = vpack.c.bf16 %v2745_v6, %v2746_v17  ;;  %v3861_v51 = vpack.c.bf16 %v2804_v40, %v2805_v62  ;;  %vm6783_vm0 = vmmov %vm6775_vm13  ;;  %v2798_v26 = vsel %vm6784_vm8, %v2786_v38, %v2787_v54  ;;  %v2794_v16 = vsel %vm6793_vm4, %v2790_v1, %v2791_v27  ;;  %v4655_v20 = vld [vmem:[%s5177_s18 + $0x68] sm:$0xff]  ;;  %v6515_v11 = vld [vmem:[#allocation5 + $0x5] ss:$0 sm:$0xff] }
 0x5c1   : > { %4312 = vmatpush3.bf16.msra.mxu1 %v4508_v9  ;;  %vm6785_vm7 = vmmov %vm6783_vm0  ;;  %v3870_v50 = vpack.c.bf16 %v2798_v26, %v2799_v57  ;;  %vm6799_vm8 = vnez %v6798_v12  ;;  %v3375_v58 = vpack.c.bf16 %v4653_v35, %v4652_v19  ;;  %v3376_v28 = vpack.c.bf16 %v4655_v20, %v4654_v10 }
 0x5c2   : > { %4294 = vmatmul.mubr.msk.bf16.gmra.mxu0 %vm3846_vm6, %v3847_v23  ;;  %vm6787_vm6 = vnez %v6786_v45  ;;  %vm6792_vm15 = vmmov %vm6783_vm0 }
 0x5c3   : > { %4337 = vmatprep.mubr.msk.bf16.mxu0 %vm6775_vm13, %v3370_v55  ;;  %vm3866_vm2 = vmpackc.low %vm6787_vm6, %vm4934_vm10 }
 0x5c4   : > { %vm3869_vm13 = vmpackc.low %vm6789_vm5, %vm4934_vm10 }
 0x5c5   : > { %vm3872_vm12 = vmpackc.low %vm6796_vm11, %vm4934_vm10 }
 0x5c7   : > { %4314 = vmatmul.mubr.msk.bf16.vlgmr.msra.gmra.mxu1 %vm3860_vm3, %v3861_v51  ;;  %vm6791_vm3 = vmmov %vm6773_vm1 }
 0x5c8   : > { %4317 = vmatprep.mubr.msk.bf16.mxu1 %vm3863_vm9, %v3864_v24  ;;  %v2797_v18 = vsel %vm6791_vm3, %v2787_v54, %v2788_v3  ;;  %vm6794_vm9 = vmmov %vm6783_vm0 }
 0x5c9   : > { %v3873_v48 = vpack.c.bf16 %v2796_v14, %v2797_v18 }
 0x5ca   : > { %4338 = vmatmul.mubr.msk.bf16.vlgmr.msra.gmra.mxu0 %vm6783_vm0, %v3371_v41  ;;  %vm6797_vm0 = vmmov %vm6773_vm1 }
 0x5cb   : > { %4341 = vmatprep.mubr.msk.bf16.mxu0 %vm6785_vm7, %v3372_v43  ;;  %v2795_v9 = vsel %vm6797_vm0, %v2789_v13, %v2790_v1  ;;  %vm3875_vm7 = vmpackc.low %vm6799_vm8, %vm4934_vm10 }
 0x5cc   : > { %v3876_v59 = vpack.c.bf16 %v2794_v16, %v2795_v9  ;;  %vm6800_vm6 = vmmov %vm6797_vm0 }
 0x5cd   : > { %v2793_v29 = vsel %vm6800_vm6, %v2791_v27, %v2792_v7  ;;  %vm6802_vm1 = vmmov %vm6794_vm9  ;;  %v6519_v27 = vld [vmem:[#allocation5 + $0x6] ss:$0 sm:$0xff] }
 0x5ce   : > { %vm6803_vm5 = vmmov %vm6802_vm1 }
 0x5cf   : > { %4318 = vmatmul.mubr.msk.bf16.gmra.mxu1 %vm3866_vm2, %v3867_v52  ;;  %vm6801_vm2 = vmmov %vm6797_vm0 }
 0x5d0   : > { %4321 = vmatprep.mubr.msk.bf16.mxu1 %vm3869_vm13, %v3870_v50  ;;  %v2808_v6 = vsel %vm6801_vm2, %v2792_v7, %v2777_v60  ;;  %vm6805_vm13 = vnez %v6804_v63  ;;  %vm6806_vm3 = vmmov %vm6802_vm1 }
 0x5d1   : > { %vm3878_vm14 = vmpackc.low %vm6805_vm13, %vm4934_vm10  ;;  %v3879_v17 = vpack.c.bf16 %v2808_v6, %v2793_v29 }
 0x5d2   : > { %4342 = vmatmul.mubr.msk.bf16.gmra.mxu0 %vm6792_vm15, %v3373_v2 }
 0x5d3   : > { %4345 = vmatprep.mubr.msk.bf16.mxu0 %vm6794_vm9, %v3374_v0 }
 0x5d7   : > { %4322 = vmatmul.mubr.msk.bf16.gmra.mxu1 %vm3872_vm12, %v3873_v48 }
 0x5d8   : > { %4325 = vmatprep.mubr.msk.bf16.mxu1 %vm3875_vm7, %v3876_v59 }
 0x5da   : > { %4346 = vmatmul.mubr.msk.bf16.gmra.mxu0 %vm6802_vm1, %v3375_v58 }
 0x5db   : > { %4349 = vmatprep.mubr.msk.bf16.mxu0 %vm6803_vm5, %v3376_v28 }
 0x5df   : > { %4326 = vmatmul.mubr.msk.bf16.gmra.mxu1 %vm3878_vm14, %v3879_v17 }
 0x5e2   : > { %4350 = vmatmul.mubr.msk.bf16.gmra.mxu0 %vm6806_vm3, %v3377_v22 }
 0x663   : > { %v4251_v55 = vpop.f32.mrf.mxu1 }
 0x665   : > { %v2956_v36 = vpop.f32.mrf.mxu1 }
 0x667   : > { %v4252_v23 = vpop.f32.mrf.mxu1 }
 0x669   : > { %v2959_v4 = vpop.f32.mrf.mxu1 }
 0x66a   : > { %v4283_v60 = vpop.f32.mrf.mxu0 }
 0x66b   : > { %v4255_v61 = vpop.f32.mrf.mxu1  ;;  %v3110_v32 = vadd.f32 %v4283_v60, %v4251_v55 }
 0x66c   : > { %v3101_v40 = vpop.f32.mrf.mxu0 }
 0x66d   : > { %v2972_v62 = vpop.f32.mrf.mxu1  ;;  %v3102_v13 = vadd.f32 %v3101_v40, %v2956_v36 }
 0x66e   : > { %v4284_v44 = vpop.f32.mrf.mxu0 }
 0x66f   : > { %v4256_v42 = vpop.f32.mrf.mxu1  ;;  %v3113_v30 = vadd.f32 %v4284_v44, %v4252_v23 }
 0x670   : > { %v3104_v51 = vpop.f32.mrf.mxu0 }
 0x671   : > { %v6483_v15 = vpop.f32.mrf.mxu1  ;;  %v3105_v8 = vadd.f32 %v3104_v51, %v2959_v4 }
 0x672   : > { %v4287_v53 = vpop.f32.mrf.mxu0 }
 0x673   : > { %v6485_v24 = vpop.f32.mrf.mxu1  ;;  %v3126_v35 = vadd.f32 %v4287_v53, %v4255_v61 }
 0x674   : > { %v3117_v47 = vpop.f32.mrf.mxu0 }
 0x675   : > { %v6487_v39 = vpop.f32.mrf.mxu1  ;;  %v3118_v63 = vadd.f32 %v3117_v47, %v2972_v62 }
 0x676   : > { %v4288_v21 = vpop.f32.mrf.mxu0 }
 0x677   : > { %v6489_v41 = vpop.f32.mrf.mxu1  ;;  %v3129_v23 = vadd.f32 %v4288_v21, %v4256_v42 }
 0x678   : > { %v3120_v54 = vpop.f32.mrf.mxu0 }
 0x679   : > { %v6493_v37 = vpop.f32.mrf.mxu1  ;;  %v3121_v51 = vadd.f32 %v3120_v54, %v6483_v15 }
 0x67a   : > { %v6491_v56 = vpop.f32.mrf.mxu0 }
 0x67c   : > { %v6495_v43 = vpop.f32.mrf.mxu0 }
 0x67e   : > { %v6497_v31 = vpop.f32.mrf.mxu0 }
 0x67f   : > { %v6499_v38 = vpop.f32.mrf.mxu1 }
 0x680   : > { %v6501_v5 = vpop.f32.mrf.mxu0 }
 0x681   : > { %v6503_v25 = vpop.f32.mrf.mxu1 }
 0x682   : > { %v6505_v26 = vpop.f32.mrf.mxu0 }
 0x683   : > { %v6507_v45 = vpop.f32.mrf.mxu1 }
 0x684   : > { %v6509_v52 = vpop.f32.mrf.mxu0 }
 0x685   : > { %v6511_v57 = vpop.f32.mrf.mxu1 }
 0x686   : > { %v6513_v50 = vpop.f32.mrf.mxu0 }
 0x687   : > { %v4315_v3 = vpop.f32.mrf.mxu1 }
 0x688   : > { %v3336_v46 = vadd.f32 %v4315_v3, %v3110_v32  ;;  %v6517_v2 = vpop.f32.mrf.mxu0 }
 0x689   : > { %v3271_v34 = vpop.f32.mrf.mxu1 }
 0x68a   : > { %v3334_v0 = vadd.f32 %v3271_v34, %v3102_v13  ;;  %v4339_v1 = vpop.f32.mrf.mxu0  ;;  %v3356_v14 = vadd.f32 %v6515_v11, %v3336_v46  ;;  %v3142_v13 = vadd.f32 %v6491_v56, %v6485_v24 }
 0x68b   : > { %v4316_v18 = vpop.f32.mrf.mxu1  ;;  %v3481_v16 = vadd.f32 %v4339_v1, %v6519_v27  ;;  %v3134_v1 = vadd.f32 %v6495_v43, %v6487_v39 }
 0x68c   : > { %v3337_v48 = vadd.f32 %v4316_v18, %v3113_v30  ;;  %v3472_v9 = vpop.f32.mrf.mxu0  ;;  %v3354_v12 = vadd.f32 %v6515_v11, %v3334_v0 }
 0x68d   : > { %v3274_v59 = vpop.f32.mrf.mxu1  ;;  %v3537_v7 = vadd.f32 %v3481_v16, %v3356_v14  ;;  %v3473_v19 = vadd.f32 %v6519_v27, %v3472_v9 }
 0x68e   : > { %v3335_v58 = vadd.f32 %v3274_v59, %v3105_v8  ;;  %v4340_v10 = vpop.f32.mrf.mxu0  ;;  %v3357_v20 = vadd.f32 %v6515_v11, %v3337_v48  ;;  %v3145_v48 = vadd.f32 %v6497_v31, %v6489_v41 }
 0x68f   : > { %v4319_v28 = vpop.f32.mrf.mxu1  ;;  %3553 = vst [vmem:[%s6528_s8 + $0x10] sm:$0xff] %v3537_v7  ;;  %v3535_v29 = vadd.f32 %v3473_v19, %v3354_v12  ;;  %v3484_v6 = vadd.f32 %v4340_v10, %v6519_v27  ;;  %v3137_v19 = vadd.f32 %v6501_v5, %v6493_v37 }
 0x690   : > { %v3340_v17 = vadd.f32 %v4319_v28, %v3126_v35  ;;  %v3475_v49 = vpop.f32.mrf.mxu0  ;;  %v3355_v33 = vadd.f32 %v6515_v11, %v3335_v58  ;;  %v3158_v28 = vadd.f32 %v6505_v26, %v6499_v38 }
 0x691   : > { %v3287_v22 = vpop.f32.mrf.mxu1  ;;  %3551 = vst [vmem:[%s6528_s8] sm:$0xff] %v3535_v29  ;;  %v3538_v55 = vadd.f32 %v3484_v6, %v3357_v20  ;;  %v3476_v36 = vadd.f32 %v6519_v27, %v3475_v49  ;;  %v3150_v49 = vadd.f32 %v6509_v52, %v6503_v25 }
 0x692   : > { %v3338_v4 = vadd.f32 %v3287_v22, %v3118_v63  ;;  %v4343_v60 = vpop.f32.mrf.mxu0  ;;  %v3360_v61 = vadd.f32 %v6515_v11, %v3340_v17 }
 0x693   : > { %v4320_v40 = vpop.f32.mrf.mxu1  ;;  %3554 = vst [vmem:[%s6528_s8 + $0x18] sm:$0xff] %v3538_v55  ;;  %v3536_v44 = vadd.f32 %v3476_v36, %v3355_v33  ;;  %v3497_v62 = vadd.f32 %v4343_v60, %v6519_v27 }
 0x694   : > { %v3341_v53 = vadd.f32 %v4320_v40, %v3129_v23  ;;  %v3488_v47 = vpop.f32.mrf.mxu0  ;;  %v3358_v32 = vadd.f32 %v6515_v11, %v3338_v4  ;;  %v3161_v23 = vadd.f32 %v6513_v50, %v6507_v45 }
 0x695   : > { %v3290_v3 = vpop.f32.mrf.mxu1  ;;  %3552 = vst [vmem:[%s6528_s8 + $0x8] sm:$0xff] %v3536_v44  ;;  %v3541_v42 = vadd.f32 %v3497_v62, %v3360_v61  ;;  %v3489_v21 = vadd.f32 %v6519_v27, %v3488_v47  ;;  %v3153_v44 = vadd.f32 %v6517_v2, %v6511_v57 }
 0x696   : > { %v3339_v46 = vadd.f32 %v3290_v3, %v3121_v51  ;;  %v4344_v34 = vpop.f32.mrf.mxu0  ;;  %v3361_v30 = vadd.f32 %v6515_v11, %v3341_v53 }
 0x697   : > { %v4323_v0 = vpop.f32.mrf.mxu1  ;;  %3557 = vst [vmem:[%s6528_s8 + $0x30] sm:$0xff] %v3541_v42  ;;  %v3539_v15 = vadd.f32 %v3489_v21, %v3358_v32  ;;  %v3500_v54 = vadd.f32 %v4344_v34, %v6519_v27 }
 0x698   : > { %v3344_v14 = vadd.f32 %v4323_v0, %v3142_v13  ;;  %v3491_v18 = vpop.f32.mrf.mxu0  ;;  %v3359_v16 = vadd.f32 %v6515_v11, %v3339_v46 }
 0x699   : > { %v3303_v8 = vpop.f32.mrf.mxu1  ;;  %3555 = vst [vmem:[%s6528_s8 + $0x20] sm:$0xff] %v3539_v15  ;;  %v3542_v24 = vadd.f32 %v3500_v54, %v3361_v30  ;;  %v3492_v56 = vadd.f32 %v6519_v27, %v3491_v18 }
 0x69a   : > { %v3342_v9 = vadd.f32 %v3303_v8, %v3134_v1  ;;  %v4347_v12 = vpop.f32.mrf.mxu0  ;;  %v3364_v59 = vadd.f32 %v6515_v11, %v3344_v14 }
 0x69b   : > { %v4324_v7 = vpop.f32.mrf.mxu1  ;;  %3558 = vst [vmem:[%s6528_s8 + $0x38] sm:$0xff] %v3542_v24  ;;  %v3540_v39 = vadd.f32 %v3492_v56, %v3359_v16  ;;  %v3513_v43 = vadd.f32 %v4347_v12, %v6519_v27 }
 0x69c   : > { %v3345_v35 = vadd.f32 %v4324_v7, %v3145_v48  ;;  %v3504_v58 = vpop.f32.mrf.mxu0  ;;  %v3362_v10 = vadd.f32 %v6515_v11, %v3342_v9 }
 0x69d   : > { %v3306_v20 = vpop.f32.mrf.mxu1  ;;  %3556 = vst [vmem:[%s6528_s8 + $0x28] sm:$0xff] %v3540_v39  ;;  %v3545_v41 = vadd.f32 %v3513_v43, %v3364_v59  ;;  %v3505_v31 = vadd.f32 %v6519_v27, %v3504_v58 }
 0x69e   : > { %v3343_v29 = vadd.f32 %v3306_v20, %v3137_v19  ;;  %v4348_v6 = vpop.f32.mrf.mxu0  ;;  %v3365_v63 = vadd.f32 %v6515_v11, %v3345_v35 }
 0x69f   : > { %v4327_v17 = vpop.f32.mrf.mxu1  ;;  %3561 = vst [vmem:[%s6528_s8 + $0x50] sm:$0xff] %v3545_v41  ;;  %v3543_v37 = vadd.f32 %v3505_v31, %v3362_v10  ;;  %v3516_v5 = vadd.f32 %v4348_v6, %v6519_v27 }
 0x6a0   : > { %v3348_v33 = vadd.f32 %v4327_v17, %v3158_v28  ;;  %v3507_v22 = vpop.f32.mrf.mxu0  ;;  %v3363_v55 = vadd.f32 %v6515_v11, %v3343_v29 }
 0x6a1   : > { %v3319_v36 = vpop.f32.mrf.mxu1  ;;  %3559 = vst [vmem:[%s6528_s8 + $0x40] sm:$0xff] %v3543_v37  ;;  %v3546_v38 = vadd.f32 %v3516_v5, %v3365_v63  ;;  %v3508_v26 = vadd.f32 %v6519_v27, %v3507_v22 }
 0x6a2   : > { %v3346_v4 = vadd.f32 %v3319_v36, %v3150_v49  ;;  %v4351_v60 = vpop.f32.mrf.mxu0  ;;  %v3368_v61 = vadd.f32 %v6515_v11, %v3348_v33 }
 0x6a3   : > { %v4328_v40 = vpop.f32.mrf.mxu1  ;;  %3562 = vst [vmem:[%s6528_s8 + $0x58] sm:$0xff] %v3546_v38  ;;  %v3544_v25 = vadd.f32 %v3508_v26, %v3363_v55  ;;  %v3529_v52 = vadd.f32 %v4351_v60, %v6519_v27 }
 0x6a4   : > { %v3349_v62 = vadd.f32 %v4328_v40, %v3161_v23  ;;  %v3520_v51 = vpop.f32.mrf.mxu0  ;;  %v3366_v45 = vadd.f32 %v6515_v11, %v3346_v4 }
 0x6a5   : > { %v3322_v50 = vpop.f32.mrf.mxu1  ;;  %3560 = vst [vmem:[%s6528_s8 + $0x48] sm:$0xff] %v3544_v25  ;;  %v3549_v53 = vadd.f32 %v3529_v52, %v3368_v61  ;;  %v3521_v47 = vadd.f32 %v6519_v27, %v3520_v51 }
 0x6a6   : > { %v3347_v32 = vadd.f32 %v3322_v50, %v3153_v44  ;;  %v4352_v3 = vpop.f32.mrf.mxu0  ;;  %v3369_v42 = vadd.f32 %v6515_v11, %v3349_v62 }
 0x6a7   : > { %3565 = vst [vmem:[%s6528_s8 + $0x70] sm:$0xff] %v3549_v53  ;;  %v3547_v21 = vadd.f32 %v3521_v47, %v3366_v45  ;;  %v3532_v57 = vadd.f32 %v4352_v3, %v6519_v27 }
 0x6a8   : > { %v3523_v2 = vpop.f32.mrf.mxu0  ;;  %v3367_v13 = vadd.f32 %v6515_v11, %v3347_v32 }
 0x6a9   : > { %3563 = vst [vmem:[%s6528_s8 + $0x60] sm:$0xff] %v3547_v21  ;;  %v3550_v46 = vadd.f32 %v3532_v57, %v3369_v42  ;;  %v3524_v34 = vadd.f32 %v6519_v27, %v3523_v2 }
 0x6ab   : > { %3566 = vst [vmem:[%s6528_s8 + $0x78] sm:$0xff] %v3550_v46  ;;  %v3548_v30 = vadd.f32 %v3524_v34, %v3367_v13 }
 0x6ad   : > { %3564 = vst [vmem:[%s6528_s8 + $0x68] sm:$0xff] %v3548_v30 }
 0x6ae   : > { %4855 = shalt.err (!%p4852_p3)
}
 0x6af   : > { %s4856_s10 = scalar_lea.hbm %s6593_s11, 2048  ;;  %s4860_s18 = scalar_lea.hbm %s6647_s7, 4096 }
 0x6b0   : > { %p4857_p6 = scmp.ne.s32.totalorder %s6593_s11, %s4856_s10  ;;  %p4861_p10 = scmp.lt.s32.totalorder %s6593_s11, %s6647_s7 }
 0x6b1   : > { %p4862_p7 = scmp.lt.s32.totalorder %s4860_s18, %s4856_s10 }
 0x6b2   : > { %p4858_p11 = pnand %p4857_p6, %p6807_p5 }
 0x6b3   : > { %p4863_p0 = por %p4862_p7, %p4861_p10 }
 0x6b4   : > { %p4859_p12 = pneg %p4858_p11 }
 0x6b6   : > { %p4864_p2 = pnand %p4863_p0, %p4859_p12 }
 0x6b8   : > { %4867 = shalt.err (!%p4864_p2)
}
 0x6b9   : > { %s4936_s13 = smov 128   ;;  %s4937_s17 = smov 8  }
 0x6ba   : > { %4379 = dma.vmem_to_hbm [thread:$0]  (%p6807_p5), %s6595_s19, 2048, %s6593_s11, %s3568_s30, %s4936_s13, %s4936_s13, %s4937_s17  }
 0x6bb PF: > { %s3597_s22 = sand.u32 1, %s4906_s24   ;;  %p6808_p8 = scmp.ne.s32.totalorder %s6687_s28, 0 }
 0x6bc   : > { %p6809_p9 = scmp.ge.s32.totalorder %s4918_s27, 2  ;;  %s3598_s20 = scalar_lea.sflag [#allocation4], %s3597_s22 }
 0x6be   : > { %p4405_p4 = pnand %p6809_p9, %p6808_p8 }
 0x6c0   : > { %p4406_p13 = pneg %p4405_p4 }
 0x6c2   : > { %4901 = dma.done.wait (%p4406_p13), %s3598_s20, 2048  }
 0x6c3   : > { %4903 = vsyncadd (%p4406_p13), %s3598_s20, 4294965248  ;;  %p23_p1 = scmp.ge.s32.totalorder %s5096_s14, 4   ;;  %s6810_s24 = smov %s4910_s25 }
 0x6c4   : > { %s6811_s25 = smov %s4914_s26  ;;  %s6812_s26 = smov %s5107_s21 }
 0x6c5   : > { %s6813_s27 = smov %s5096_s14  ;;  %25 = sbr.rel (!%p23_p1) target bundleno = 10 (0xa), region = 121 }
 0x6ca   :  { %3603 = vsyncpa [#allocation3], 1 }
 0x6cb   :  { %3605 = vsyncpa [#allocation3 + $0x1], 1 }
 0x6cc   :  { %3606 = vsyncpa [#allocation6], 1 }
 0x6cd   :  { %3607 = vsyncpa [#allocation9], 1 }
 0x6ce   :  { %3608 = vsyncpa [#allocation12], 1 }
 0x6cf   :  { %3609 = vsyncpa [#allocation4], 1 }
 0x6d0   :  { %3611 = vsyncpa [#allocation4 + $0x1], 1 }

</bundles_post_ra>
